<compile_context>
chip_gen: v7x
topology: tpu7x:2x2x1
jax: 0.10.0
libtpu: 0.0.40
codegen_flags: <defaults>
</compile_context>

<pallas_src>
import functools

import jax
import jax.numpy as jnp
from jax.experimental import pallas as pl
from jax.experimental.pallas import tpu as pltpu

_MXU_DTYPE = jnp.bfloat16          # inter-kernel activations + weights; f32 accumulate inside
_VMEM_LIMIT = 64 * 1024 * 1024     # scoped-VMEM cap; actual per-call usage stays far below


def _pick_tile(dim, target, align):
    """Largest tile <= target that divides `dim` and is `align`-aligned, else full dim."""
    if dim <= target:
        return dim
    t = (target // align) * align
    while t >= align:
        if dim % t == 0:
            return t
        t -= align
    return dim   # TODO(synk): ragged dims fall back to one full block (may be large)


# ----------------------------------------------------------------------------
# Tiled linear: y = x @ W + b   (+ optional ReLU).  bf16 in / bf16 out, f32 acc.
# ----------------------------------------------------------------------------
def _linear_kernel(x_ref, w_ref, b_ref, o_ref, acc_ref, *, activation):
    @pl.when(pl.program_id(2) == 0)
    def _():
        acc_ref[...] = jnp.zeros_like(acc_ref)

    acc_ref[...] += jnp.dot(x_ref[...], w_ref[...], preferred_element_type=jnp.float32)

    @pl.when(pl.program_id(2) == pl.num_programs(2) - 1)
    def _():
        y = acc_ref[...] + b_ref[...]
        if activation == "relu":
            y = jnp.maximum(y, 0.0)
        o_ref[...] = y.astype(o_ref.dtype)


def linear_pallas(x, w, b, activation=None, tm=512, tn=512, tk=512):
    """x: (N, K) bf16, w: (K, M) bf16 (pre-packed), b: (M,) f32 -> (N, M) bf16."""
    N, K = x.shape
    M = w.shape[1]
    tm = _pick_tile(N, tm, 8)       # decoder regime: N=B*T small -> tm=N, weights stream once
    tn = _pick_tile(M, tn, 128)
    tk = _pick_tile(K, tk, 128)
    return pl.pallas_call(
        functools.partial(_linear_kernel, activation=activation),
        out_shape=jax.ShapeDtypeStruct((N, M), _MXU_DTYPE),
        grid=(N // tm, M // tn, K // tk),
        in_specs=[
            pl.BlockSpec((tm, tk), lambda i, j, k: (i, k)),
            pl.BlockSpec((tk, tn), lambda i, j, k: (k, j)),
            pl.BlockSpec((1, tn), lambda i, j, k: (0, j)),
        ],
        out_specs=pl.BlockSpec((tm, tn), lambda i, j, k: (i, j)),
        scratch_shapes=[pltpu.VMEM((tm, tn), jnp.float32)],
        compiler_params=pltpu.CompilerParams(
            dimension_semantics=("parallel", "parallel", "arbitrary"),
            vmem_limit_bytes=_VMEM_LIMIT),
    )(x, w, b.reshape(1, M))


# ----------------------------------------------------------------------------
# Tiled linear with fused residual-add + LayerNorm epilogue:
#   out = LayerNorm(x @ W + b + residual)
# ----------------------------------------------------------------------------
def _linear_res_ln_kernel(x_ref, w_ref, b_ref, r_ref, g_ref, bb_ref, o_ref,
                          acc_ref, *, eps):
    @pl.when(pl.program_id(1) == 0)
    def _():
        acc_ref[...] = jnp.zeros_like(acc_ref)

    acc_ref[...] += jnp.dot(x_ref[...], w_ref[...], preferred_element_type=jnp.float32)

    @pl.when(pl.program_id(1) == pl.num_programs(1) - 1)
    def _():
        y = acc_ref[...] + b_ref[...] + r_ref[...].astype(jnp.float32)
        mu = jnp.mean(y, axis=-1, keepdims=True)
        var = jnp.mean(y * y, axis=-1, keepdims=True) - mu * mu      # single reduction pass
        yhat = (y - mu) * jax.lax.rsqrt(var + eps)
        o_ref[...] = (yhat * g_ref[...] + bb_ref[...]).astype(o_ref.dtype)


def linear_add_ln_pallas(x, w, b, residual, gamma, beta, eps=1e-5, tk=512):
    """LayerNorm(x @ W + b + residual) over last dim.  x: (N, K) bf16 -> (N, E) bf16."""
    N, K = x.shape
    E = w.shape[1]
    # keep the (tm, E) f32 accumulator + residual/out blocks modest (v7x has 64 MiB VMEM/TC)
    tm_target = max(8, min(512, (4 * 1024 * 1024) // max(E * 4, 1)))
    tm = _pick_tile(N, tm_target, 8)
    tk = _pick_tile(K, tk, 128)
    return pl.pallas_call(
        functools.partial(_linear_res_ln_kernel, eps=eps),
        out_shape=jax.ShapeDtypeStruct((N, E), _MXU_DTYPE),
        grid=(N // tm, K // tk),
        in_specs=[
            pl.BlockSpec((tm, tk), lambda i, k: (i, k)),
            pl.BlockSpec((tk, E), lambda i, k: (k, 0)),
            pl.BlockSpec((1, E), lambda i, k: (0, 0)),
            pl.BlockSpec((tm, E), lambda i, k: (i, 0)),
            pl.BlockSpec((1, E), lambda i, k: (0, 0)),
            pl.BlockSpec((1, E), lambda i, k: (0, 0)),
        ],
        out_specs=pl.BlockSpec((tm, E), lambda i, k: (i, 0)),
        scratch_shapes=[pltpu.VMEM((tm, E), jnp.float32)],
        compiler_params=pltpu.CompilerParams(
            dimension_semantics=("parallel", "arbitrary"),
            vmem_limit_bytes=_VMEM_LIMIT),
    )(x, w, b.reshape(1, E), residual, gamma.reshape(1, E), beta.reshape(1, E))


# ----------------------------------------------------------------------------
# Plain LayerNorm (final decoder norm) -- tiled over rows.
# ----------------------------------------------------------------------------
def _ln_kernel(x_ref, g_ref, b_ref, o_ref, *, eps):
    y = x_ref[...].astype(jnp.float32)
    mu = jnp.mean(y, axis=-1, keepdims=True)
    var = jnp.mean(y * y, axis=-1, keepdims=True) - mu * mu
    o_ref[...] = ((y - mu) * jax.lax.rsqrt(var + eps) * g_ref[...]
                  + b_ref[...]).astype(o_ref.dtype)


def layernorm_pallas(x, gamma, beta, eps=1e-5, tm=512, out_dtype=None):
    N, E = x.shape
    tm = _pick_tile(N, tm, 8)
    out_dtype = out_dtype or x.dtype
    return pl.pallas_call(
        functools.partial(_ln_kernel, eps=eps),
        out_shape=jax.ShapeDtypeStruct((N, E), out_dtype),
        grid=(N // tm,),
        in_specs=[
            pl.BlockSpec((tm, E), lambda i: (i, 0)),
            pl.BlockSpec((1, E), lambda i: (0, 0)),
            pl.BlockSpec((1, E), lambda i: (0, 0)),
        ],
        out_specs=pl.BlockSpec((tm, E), lambda i: (i, 0)),
        compiler_params=pltpu.CompilerParams(
            dimension_semantics=("parallel",),
            vmem_limit_bytes=_VMEM_LIMIT),
    )(x, gamma.reshape(1, E), beta.reshape(1, E))


# ----------------------------------------------------------------------------
# Blocked / flash attention.
#   q: (B*H, T, Dh), k/v: (B*H, S, Dh) bf16 (scale pre-folded into q weights)
#   mask: None | (1, T, S) | (B, T, S) additive f32
# grid = (B*H, T/tq, S/tk); online softmax with f32 m/l/acc scratch.
# ----------------------------------------------------------------------------
def _flash_kernel(*refs, has_mask):
    if has_mask:
        q_ref, k_ref, v_ref, mask_ref, o_ref, m_sc, l_sc, acc_sc = refs
    else:
        q_ref, k_ref, v_ref, o_ref, m_sc, l_sc, acc_sc = refs
    kb = pl.program_id(2)

    @pl.when(kb == 0)
    def _():
        m_sc[...] = jnp.full_like(m_sc, -jnp.inf)
        l_sc[...] = jnp.zeros_like(l_sc)
        acc_sc[...] = jnp.zeros_like(acc_sc)

    s = jax.lax.dot_general(q_ref[0], k_ref[0], (((1,), (1,)), ((), ())),
                            preferred_element_type=jnp.float32)        # (tq, tk)
    if has_mask:
        s = s + mask_ref[0]

    m_prev = m_sc[...]
    m_new = jnp.maximum(m_prev, jnp.max(s, axis=-1, keepdims=True))
    alpha = jnp.exp(m_prev - m_new)
    p = jnp.exp(s - m_new)
    l_sc[...] = alpha * l_sc[...] + jnp.sum(p, axis=-1, keepdims=True)
    acc_sc[...] = alpha * acc_sc[...] + jnp.dot(p.astype(v_ref.dtype), v_ref[0],
                                                preferred_element_type=jnp.float32)
    m_sc[...] = m_new

    @pl.when(kb == pl.num_programs(2) - 1)
    def _():
        o_ref[0] = (acc_sc[...] * pl.reciprocal(l_sc[...], approx=True)).astype(o_ref.dtype)


def flash_attention_pallas(q, k, v, mask=None, nhead=1):
    BH, T, Dh = q.shape
    S = k.shape[1]
    tq = _pick_tile(T, 256, 8)
    # the mask's last dim must be 128-aligned (or full), so align tk harder when masked
    tk = _pick_tile(S, 512, 128) if mask is not None else _pick_tile(S, 512, 8)

    in_specs = [
        pl.BlockSpec((1, tq, Dh), lambda b, qi, ki: (b, qi, 0)),
        pl.BlockSpec((1, tk, Dh), lambda b, qi, ki: (b, ki, 0)),
        pl.BlockSpec((1, tk, Dh), lambda b, qi, ki: (b, ki, 0)),
    ]
    args = [q, k, v]
    if mask is not None:
        if mask.shape[0] == 1:   # batch-invariant mask: never broadcast to B
            in_specs.append(pl.BlockSpec((1, tq, tk), lambda b, qi, ki: (0, qi, ki)))
        else:
            h = nhead
            in_specs.append(pl.BlockSpec((1, tq, tk), lambda b, qi, ki: (b // h, qi, ki)))
        args.append(mask)

    return pl.pallas_call(
        functools.partial(_flash_kernel, has_mask=mask is not None),
        out_shape=jax.ShapeDtypeStruct((BH, T, Dh), _MXU_DTYPE),
        grid=(BH, T // tq, S // tk),
        in_specs=in_specs,
        out_specs=pl.BlockSpec((1, tq, Dh), lambda b, qi, ki: (b, qi, 0)),
        scratch_shapes=[pltpu.VMEM((tq, 1), jnp.float32),
                        pltpu.VMEM((tq, 1), jnp.float32),
                        pltpu.VMEM((tq, Dh), jnp.float32)],
        compiler_params=pltpu.CompilerParams(
            dimension_semantics=("parallel", "parallel", "arbitrary"),
            vmem_limit_bytes=_VMEM_LIMIT),
    )(*args)


def mha_self_pallas(qkv_flat, B, T, nhead, mask=None):
    """qkv_flat: (B*T, 3E) bf16 fused projection -> (B*T, E) bf16."""
    E = qkv_flat.shape[-1] // 3
    Dh = E // nhead
    qkv = qkv_flat.reshape(B, T, 3, nhead, Dh).transpose(2, 0, 3, 1, 4)   # (3, B, H, T, Dh)
    q = qkv[0].reshape(B * nhead, T, Dh)
    k = qkv[1].reshape(B * nhead, T, Dh)
    v = qkv[2].reshape(B * nhead, T, Dh)
    o = flash_attention_pallas(q, k, v, mask, nhead)                      # (B*H, T, Dh)
    return o.reshape(B, nhead, T, Dh).transpose(0, 2, 1, 3).reshape(B * T, E)


def mha_cross_pallas(q_flat, kv_flat, B, T, S, nhead, mask=None):
    """q_flat: (B*T, E), kv_flat: (B*S, 2E) bf16 -> (B*T, E) bf16."""
    E = q_flat.shape[-1]
    Dh = E // nhead
    q = q_flat.reshape(B, T, nhead, Dh).transpose(0, 2, 1, 3).reshape(B * nhead, T, Dh)
    kv = kv_flat.reshape(B, S, 2, nhead, Dh).transpose(2, 0, 3, 1, 4)     # (2, B, H, S, Dh)
    k = kv[0].reshape(B * nhead, S, Dh)
    v = kv[1].reshape(B * nhead, S, Dh)
    o = flash_attention_pallas(q, k, v, mask, nhead)
    return o.reshape(B, nhead, T, Dh).transpose(0, 2, 1, 3).reshape(B * T, E)


# ----------------------------------------------------------------------------
# Fused feed-forward block: LN(relu(x@W1+b1)@W2 + b2 + x) in a single pallas_call.
# Falls back to two tiled kernels if the full-width weights are too big for VMEM.
# ----------------------------------------------------------------------------
def _ffn_kernel(x_ref, w1_ref, b1_ref, w2_ref, b2_ref, g_ref, bb_ref, o_ref, *, eps):
    x = x_ref[...]                                                        # (tm, E) bf16
    h = jnp.dot(x, w1_ref[...], preferred_element_type=jnp.float32) + b1_ref[...]
    h = jnp.maximum(h, 0.0).astype(_MXU_DTYPE)
    y = jnp.dot(h, w2_ref[...], preferred_element_type=jnp.float32) + b2_ref[...]
    y = y + x.astype(jnp.float32)
    mu = jnp.mean(y, axis=-1, keepdims=True)
    var = jnp.mean(y * y, axis=-1, keepdims=True) - mu * mu
    o_ref[...] = ((y - mu) * jax.lax.rsqrt(var + eps) * g_ref[...]
                  + bb_ref[...]).astype(o_ref.dtype)


_FFN_FUSE_WEIGHT_BYTES = 8 * 1024 * 1024   # both bf16 weights, with double-buffer headroom


def ffn_block_pallas(x, w1, b1, w2, b2, gamma, beta, eps=1e-5):
    N, E = x.shape
    H = w1.shape[1]
    if 4 * E * H > _FFN_FUSE_WEIGHT_BYTES:
        # large model path: two tiled GEMM kernels (ReLU fused in ff1, add+LN fused in ff2)
        h = linear_pallas(x, w1, b1, activation="relu")
        return linear_add_ln_pallas(h, w2, b2, x, gamma, beta, eps=eps)
    tm = _pick_tile(N, 256, 8)
    return pl.pallas_call(
        functools.partial(_ffn_kernel, eps=eps),
        out_shape=jax.ShapeDtypeStruct((N, E), _MXU_DTYPE),
        grid=(N // tm,),
        in_specs=[
            pl.BlockSpec((tm, E), lambda i: (i, 0)),
            pl.BlockSpec((E, H), lambda i: (0, 0)),
            pl.BlockSpec((1, H), lambda i: (0, 0)),
            pl.BlockSpec((H, E), lambda i: (0, 0)),
            pl.BlockSpec((1, E), lambda i: (0, 0)),
            pl.BlockSpec((1, E), lambda i: (0, 0)),
            pl.BlockSpec((1, E), lambda i: (0, 0)),
        ],
        out_specs=pl.BlockSpec((tm, E), lambda i: (i, 0)),
        compiler_params=pltpu.CompilerParams(
            dimension_semantics=("parallel",),
            vmem_limit_bytes=_VMEM_LIMIT),
    )(x, w1, b1.reshape(1, H), w2, b2.reshape(1, E),
      gamma.reshape(1, E), beta.reshape(1, E))


# ----------------------------------------------------------------------------
# Decoder layer / stack (JAX glue around the kernels)
# ----------------------------------------------------------------------------
def _build_mask(B, T, S, attn_mask, key_padding_mask):
    """Optional attn_mask (T,S) + key_padding_mask (B,S) -> additive (1|B, T, S)."""
    if attn_mask is None and key_padding_mask is None:
        return None
    m = None
    if attn_mask is not None:
        am = attn_mask
        if am.dtype == jnp.bool_:
            am = jnp.where(am, -1e9, 0.0)        # finite large-negative (NaN-safe)
        m = am.astype(jnp.float32)[None, :, :]   # (1, T, S): not broadcast to B
    if key_padding_mask is not None:
        kp = jnp.where(key_padding_mask, -1e9, 0.0).astype(jnp.float32)   # (B, S)
        kp = jnp.broadcast_to(kp[:, None, :], (B, T, S))
        m = kp if m is None else m + kp
    return m


def decoder_layer(x_flat, mem_flat, B, T, S, p, nhead,
                  tgt_mask_add=None, mem_mask_add=None):
    # --- self-attention block (post-norm): fused QKV -> flash attn -> out-proj+add+LN ---
    qkv = linear_pallas(x_flat, p["sa_qkv_w"], p["sa_qkv_b"])                 # (B*T, 3E)
    sa = mha_self_pallas(qkv, B, T, nhead, tgt_mask_add)                      # (B*T, E)
    x_flat = linear_add_ln_pallas(sa, p["sa_out_w"], p["sa_out_b"],
                                  x_flat, p["ln1_g"], p["ln1_b"])
    # --- cross-attention block ---
    q = linear_pallas(x_flat, p["ca_q_w"], p["ca_q_b"])                       # (B*T, E)
    kv = linear_pallas(mem_flat, p["ca_kv_w"], p["ca_kv_b"])                  # (B*S, 2E)
    ca = mha_cross_pallas(q, kv, B, T, S, nhead, mem_mask_add)                # (B*T, E)
    x_flat = linear_add_ln_pallas(ca, p["ca_out_w"], p["ca_out_b"],
                                  x_flat, p["ln2_g"], p["ln2_b"])
    # --- feed-forward block: single fused kernel (ff1+ReLU+ff2+residual+LN) ---
    x_flat = ffn_block_pallas(x_flat, p["ff1_w"], p["ff1_b"], p["ff2_w"], p["ff2_b"],
                              p["ln3_g"], p["ln3_b"])
    return x_flat


def decoder_base_forward(tgt, memory, params, nhead,
                         tgt_mask=None, memory_mask=None,
                         tgt_key_padding_mask=None, memory_key_padding_mask=None):
    """Equivalent of Decoder_base.forward.  tgt: (T,B,E), memory: (S,B,E) f32 -> (T,B,E) f32."""
    T, B, E = tgt.shape
    S = memory.shape[0]
    assert E % nhead == 0, "embedding size must be divisible by nhead"
    # single layout change to batch-major rows; activations kept in bf16 between kernels
    x_flat = jnp.transpose(tgt, (1, 0, 2)).reshape(B * T, E).astype(_MXU_DTYPE)
    mem_flat = jnp.transpose(memory, (1, 0, 2)).reshape(B * S, E).astype(_MXU_DTYPE)
    tgt_mask_add = _build_mask(B, T, T, tgt_mask, tgt_key_padding_mask)
    mem_mask_add = _build_mask(B, T, S, memory_mask, memory_key_padding_mask)
    for p in params["layers"]:
        x_flat = decoder_layer(x_flat, mem_flat, B, T, S, p, nhead,
                               tgt_mask_add, mem_mask_add)
    if params.get("final_norm") is not None:
        g, b = params["final_norm"]
        out = layernorm_pallas(x_flat, g, b, out_dtype=jnp.float32)
    else:
        out = x_flat.astype(jnp.float32)
    return out.reshape(B, T, E).transpose(1, 0, 2)                             # (T, B, E)


# ----------------------------------------------------------------------------
# Parameter init: weights pre-packed as (K, M) bf16 (MXU inputs); biases / LN f32.
# Softmax scale (1/sqrt(Dh)) is folded into the Q weight columns (and Q bias).
# ----------------------------------------------------------------------------
def init_params(key, nlayers, ninp, nhid, nhead, with_final_norm=True):
    scale = float(ninp // nhead) ** -0.5

    def dense(k, kin, kout, col_scale=None):
        w = 0.02 * jax.random.normal(k, (kin, kout), jnp.float32)
        if col_scale is not None:
            w = w * col_scale
        return w.astype(_MXU_DTYPE)

    qkv_col_scale = jnp.concatenate(
        [jnp.full((ninp,), scale, jnp.float32), jnp.ones((2 * ninp,), jnp.float32)])

    layers = []
    for _ in range(nlayers):
        key, *ks = jax.random.split(key, 8)
        layers.append(dict(
            sa_qkv_w=dense(ks[0], ninp, 3 * ninp, col_scale=qkv_col_scale),
            sa_qkv_b=jnp.zeros((3 * ninp,), jnp.float32),        # scale folded (bias is 0)
            sa_out_w=dense(ks[1], ninp, ninp),
            sa_out_b=jnp.zeros((ninp,), jnp.float32),
            ca_q_w=dense(ks[2], ninp, ninp, col_scale=scale),
            ca_q_b=jnp.zeros((ninp,), jnp.float32),
            ca_kv_w=dense(ks[3], ninp, 2 * ninp),
            ca_kv_b=jnp.zeros((2 * ninp,), jnp.float32),
            ca_out_w=dense(ks[4], ninp, ninp),
            ca_out_b=jnp.zeros((ninp,), jnp.float32),
            ff1_w=dense(ks[5], ninp, nhid),
            ff1_b=jnp.zeros((nhid,), jnp.float32),
            ff2_w=dense(ks[6], nhid, ninp),
            ff2_b=jnp.zeros((ninp,), jnp.float32),
            ln1_g=jnp.ones((ninp,), jnp.float32), ln1_b=jnp.zeros((ninp,), jnp.float32),
            ln2_g=jnp.ones((ninp,), jnp.float32), ln2_b=jnp.zeros((ninp,), jnp.float32),
            ln3_g=jnp.ones((ninp,), jnp.float32), ln3_b=jnp.zeros((ninp,), jnp.float32),
        ))
    final_norm = (jnp.ones((ninp,), jnp.float32),
                  jnp.zeros((ninp,), jnp.float32)) if with_final_norm else None
    return {"layers": layers, "final_norm": final_norm}


# ----------------------------------------------------------------------------
if __name__ == "__main__":
    # HPs = (nn_mode, ninp, nhid, nlayers, nhead, dropout, activation, norm, his_mask)
    ninp, nhid, nlayers, nhead = 32, 64, 2, 4
    T, S, B = 8, 12, 2                      # tgt seq, memory seq, batch

    key = jax.random.PRNGKey(0)
    key, k_tgt, k_mem, k_par = jax.random.split(key, 4)
    tgt = jax.random.normal(k_tgt, (T, B, ninp), jnp.float32)       # (T, B, E)
    memory = jax.random.normal(k_mem, (S, B, ninp), jnp.float32)    # (S, B, E)

    params = init_params(k_par, nlayers, ninp, nhid, nhead, with_final_norm=True)

    # TODO(synk): dropout is treated as identity (eval mode); no stochastic path.
    fwd = jax.jit(functools.partial(decoder_base_forward, nhead=nhead))
    out = fwd(tgt, memory, params)
    out = jax.block_until_ready(out)
    assert out.shape == (T, B, ninp) and bool(jnp.all(jnp.isfinite(out)))
    print("KERNEL_OK")
</pallas_src>

<mosaic_0001>
module attributes {stable_mosaic.version = 11 : i64} {
  func.func @_linear_kernel(%arg0: i32, %arg1: i32, %arg2: i32, %arg3: memref<16x32xbf16, #tpu.memory_space<vmem>>, %arg4: memref<32x96xbf16, #tpu.memory_space<vmem>>, %arg5: memref<1x96xf32, #tpu.memory_space<vmem>>, %arg6: memref<16x96xbf16, #tpu.memory_space<vmem>>, %arg7: memref<16x96xf32, #tpu.memory_space<vmem>>) attributes {dimension_semantics = [#tpu.dimension_semantics<parallel>, #tpu.dimension_semantics<parallel>, #tpu.dimension_semantics<arbitrary>], iteration_bounds = array<i64: 1, 1, 1>, scalar_prefetch = 0 : i64, scratch_operands = 1 : i64, tpu.core_type = #tpu.core_type<tc>, window_params = [{transform_indices = @transform_0, window_bounds = array<i64: 16, 32>}, {transform_indices = @transform_1, window_bounds = array<i64: 32, 96>}, {transform_indices = @transform_2, window_bounds = array<i64: 1, 96>}, {transform_indices = @transform_3, window_bounds = array<i64: 16, 96>}]} {
    %c0_i32 = arith.constant 0 : i32
    %0 = arith.cmpi eq, %arg2, %c0_i32 : i32
    %1 = arith.extui %0 : i1 to i32
    %c0_i32_0 = arith.constant 0 : i32
    %2 = arith.cmpi ne, %1, %c0_i32_0 : i32
    scf.if %2 {
      %cst_10 = arith.constant 0.000000e+00 : f32
      %12 = vector.broadcast %cst_10 : f32 to vector<16x96xf32>
      %c0_11 = arith.constant 0 : index
      %c0_12 = arith.constant 0 : index
      %13 = vector.load %arg7[%c0_11, %c0_12] : memref<16x96xf32, #tpu.memory_space<vmem>>, vector<16x96xf32>
      tpu.vector_store %arg7[%c0_11, %c0_12], %12 {strides = array<i32>} : memref<16x96xf32, #tpu.memory_space<vmem>>, vector<16x96xf32>,
    } else {
    }
    %c0 = arith.constant 0 : index
    %c0_1 = arith.constant 0 : index
    %3 = vector.load %arg7[%c0, %c0_1] : memref<16x96xf32, #tpu.memory_space<vmem>>, vector<16x96xf32>
    %c0_2 = arith.constant 0 : index
    %c0_3 = arith.constant 0 : index
    %4 = vector.load %arg3[%c0_2, %c0_3] : memref<16x32xbf16, #tpu.memory_space<vmem>>, vector<16x32xbf16>
    %c0_4 = arith.constant 0 : index
    %c0_5 = arith.constant 0 : index
    %5 = vector.load %arg4[%c0_4, %c0_5] : memref<32x96xbf16, #tpu.memory_space<vmem>>, vector<32x96xbf16>
    %cst = arith.constant dense<0.000000e+00> : vector<16x96xf32>
    %6 = tpu.matmul %4, %5, %cst {dimension_numbers = #tpu.dot_dimension_numbers<[1], [0], [0], [1], [0, 0, 1, 1], [], []>} : vector<16x32xbf16>, vector<32x96xbf16>, vector<16x96xf32> -> vector<16x96xf32>
    %7 = arith.addf %3, %6 : vector<16x96xf32>
    %c0_6 = arith.constant 0 : index
    %c0_7 = arith.constant 0 : index
    %8 = vector.load %arg7[%c0_6, %c0_7] : memref<16x96xf32, #tpu.memory_space<vmem>>, vector<16x96xf32>
    tpu.vector_store %arg7[%c0_6, %c0_7], %7 {strides = array<i32>} : memref<16x96xf32, #tpu.memory_space<vmem>>, vector<16x96xf32>,
    %c0_i32_8 = arith.constant 0 : i32
    %9 = arith.cmpi eq, %arg2, %c0_i32_8 : i32
    %10 = arith.extui %9 : i1 to i32
    %c0_i32_9 = arith.constant 0 : i32
    %11 = arith.cmpi ne, %10, %c0_i32_9 : i32
    scf.if %11 {
      %c0_10 = arith.constant 0 : index
      %c0_11 = arith.constant 0 : index
      %12 = vector.load %arg7[%c0_10, %c0_11] : memref<16x96xf32, #tpu.memory_space<vmem>>, vector<16x96xf32>
      %c0_12 = arith.constant 0 : index
      %c0_13 = arith.constant 0 : index
      %13 = vector.load %arg5[%c0_12, %c0_13] : memref<1x96xf32, #tpu.memory_space<vmem>>, vector<1x96xf32>
      %14 = vector.broadcast %13 : vector<1x96xf32> to vector<16x96xf32>
      %15 = arith.addf %12, %14 : vector<16x96xf32>
      %16 = arith.truncf %15 : vector<16x96xf32> to vector<16x96xbf16>
      %c0_14 = arith.constant 0 : index
      %c0_15 = arith.constant 0 : index
      %17 = vector.load %arg6[%c0_14, %c0_15] : memref<16x96xbf16, #tpu.memory_space<vmem>>, vector<16x96xbf16>
      tpu.vector_store %arg6[%c0_14, %c0_15], %16 {strides = array<i32>} : memref<16x96xbf16, #tpu.memory_space<vmem>>, vector<16x96xbf16>,
    } else {
    }
    return
  }
  func.func @transform_0(%arg0: i32, %arg1: i32, %arg2: i32) -> (i32, i32) {
    %c0_i32 = arith.constant 0 : i32
    return %arg0, %arg2 : i32, i32
  }
  func.func @transform_1(%arg0: i32, %arg1: i32, %arg2: i32) -> (i32, i32) {
    %c0_i32 = arith.constant 0 : i32
    return %arg2, %arg1 : i32, i32
  }
  func.func @transform_2(%arg0: i32, %arg1: i32, %arg2: i32) -> (i32, i32) {
    %c0_i32 = arith.constant 0 : i32
    %c0_i32_0 = arith.constant 0 : i32
    return %c0_i32, %arg1 : i32, i32
  }
  func.func @transform_3(%arg0: i32, %arg1: i32, %arg2: i32) -> (i32, i32) {
    %c0_i32 = arith.constant 0 : i32
    return %arg0, %arg1 : i32, i32
  }
}

module attributes {stable_mosaic.version = 11 : i64} {
  func.func @_flash_kernel(%arg0: i32, %arg1: i32, %arg2: i32, %arg3: memref<1x8x8xbf16, #tpu.memory_space<vmem>>, %arg4: memref<1x8x8xbf16, #tpu.memory_space<vmem>>, %arg5: memref<1x8x8xbf16, #tpu.memory_space<vmem>>, %arg6: memref<1x8x8xbf16, #tpu.memory_space<vmem>>, %arg7: memref<8x1xf32, #tpu.memory_space<vmem>>, %arg8: memref<8x1xf32, #tpu.memory_space<vmem>>, %arg9: memref<8x8xf32, #tpu.memory_space<vmem>>) attributes {dimension_semantics = [#tpu.dimension_semantics<parallel>, #tpu.dimension_semantics<parallel>, #tpu.dimension_semantics<arbitrary>], iteration_bounds = array<i64: 8, 1, 1>, scalar_prefetch = 0 : i64, scratch_operands = 3 : i64, tpu.core_type = #tpu.core_type<tc>, window_params = [{transform_indices = @transform_0, window_bounds = array<i64: 1, 8, 8>}, {transform_indices = @transform_1, window_bounds = array<i64: 1, 8, 8>}, {transform_indices = @transform_2, window_bounds = array<i64: 1, 8, 8>}, {transform_indices = @transform_3, window_bounds = array<i64: 1, 8, 8>}]} {
    %c0_i32 = arith.constant 0 : i32
    %0 = arith.cmpi eq, %arg2, %c0_i32 : i32
    %1 = arith.extui %0 : i1 to i32
    %c0_i32_0 = arith.constant 0 : i32
    %2 = arith.cmpi ne, %1, %c0_i32_0 : i32
    scf.if %2 {
      %cst_26 = arith.constant 0xFF800000 : f32
      %36 = vector.broadcast %cst_26 : f32 to vector<8x1xf32>
      %c0_27 = arith.constant 0 : index
      %c0_28 = arith.constant 0 : index
      %37 = vector.load %arg7[%c0_27, %c0_28] : memref<8x1xf32, #tpu.memory_space<vmem>>, vector<8x1xf32>
      tpu.vector_store %arg7[%c0_27, %c0_28], %36 {strides = array<i32>} : memref<8x1xf32, #tpu.memory_space<vmem>>, vector<8x1xf32>,
      %cst_29 = arith.constant 0.000000e+00 : f32
      %38 = vector.broadcast %cst_29 : f32 to vector<8x1xf32>
      %c0_30 = arith.constant 0 : index
      %c0_31 = arith.constant 0 : index
      %39 = vector.load %arg8[%c0_30, %c0_31] : memref<8x1xf32, #tpu.memory_space<vmem>>, vector<8x1xf32>
      tpu.vector_store %arg8[%c0_30, %c0_31], %38 {strides = array<i32>} : memref<8x1xf32, #tpu.memory_space<vmem>>, vector<8x1xf32>,
      %cst_32 = arith.constant 0.000000e+00 : f32
      %40 = vector.broadcast %cst_32 : f32 to vector<8x8xf32>
      %c0_33 = arith.constant 0 : index
      %c0_34 = arith.constant 0 : index
      %41 = vector.load %arg9[%c0_33, %c0_34] : memref<8x8xf32, #tpu.memory_space<vmem>>, vector<8x8xf32>
      tpu.vector_store %arg9[%c0_33, %c0_34], %40 {strides = array<i32>} : memref<8x8xf32, #tpu.memory_space<vmem>>, vector<8x8xf32>,
    } else {
    }
    %c0 = arith.constant 0 : index
    %c0_1 = arith.constant 0 : index
    %c0_2 = arith.constant 0 : index
    %3 = vector.load %arg3[%c0, %c0_1, %c0_2] : memref<1x8x8xbf16, #tpu.memory_space<vmem>>, vector<1x8x8xbf16>
    %4 = vector.shape_cast %3 : vector<1x8x8xbf16> to vector<8x8xbf16>
    %c0_3 = arith.constant 0 : index
    %c0_4 = arith.constant 0 : index
    %c0_5 = arith.constant 0 : index
    %5 = vector.load %arg4[%c0_3, %c0_4, %c0_5] : memref<1x8x8xbf16, #tpu.memory_space<vmem>>, vector<1x8x8xbf16>
    %6 = vector.shape_cast %5 : vector<1x8x8xbf16> to vector<8x8xbf16>
    %cst = arith.constant dense<0.000000e+00> : vector<8x8xf32>
    %7 = tpu.matmul %4, %6, %cst {dimension_numbers = #tpu.dot_dimension_numbers<[1], [1], [0], [0], [0, 0, 1, 0], [], []>} : vector<8x8xbf16>, vector<8x8xbf16>, vector<8x8xf32> -> vector<8x8xf32>
    %c0_6 = arith.constant 0 : index
    %c0_7 = arith.constant 0 : index
    %8 = vector.load %arg7[%c0_6, %c0_7] : memref<8x1xf32, #tpu.memory_space<vmem>>, vector<8x1xf32>
    %cst_8 = arith.constant dense<0xFF800000> : vector<8xf32>
    %9 = vector.multi_reduction <maximumf>, %7, %cst_8 [1] : vector<8x8xf32> to vector<8xf32>
    %10 = vector.shape_cast %9 : vector<8xf32> to vector<8x1xf32>
    %11 = arith.maximumf %8, %10 : vector<8x1xf32>
    %12 = arith.subf %8, %11 : vector<8x1xf32>
    %13 = math.exp %12 : vector<8x1xf32>
    %14 = vector.broadcast %11 : vector<8x1xf32> to vector<8x8xf32>
    %15 = arith.subf %7, %14 : vector<8x8xf32>
    %16 = math.exp %15 : vector<8x8xf32>
    %c0_9 = arith.constant 0 : index
    %c0_10 = arith.constant 0 : index
    %17 = vector.load %arg8[%c0_9, %c0_10] : memref<8x1xf32, #tpu.memory_space<vmem>>, vector<8x1xf32>
    %18 = arith.mulf %13, %17 : vector<8x1xf32>
    %cst_11 = arith.constant dense<0.000000e+00> : vector<8xf32>
    %19 = vector.multi_reduction <add>, %16, %cst_11 [1] : vector<8x8xf32> to vector<8xf32>
    %20 = vector.shape_cast %19 : vector<8xf32> to vector<8x1xf32>
    %21 = arith.addf %18, %20 : vector<8x1xf32>
    %c0_12 = arith.constant 0 : index
    %c0_13 = arith.constant 0 : index
    %22 = vector.load %arg8[%c0_12, %c0_13] : memref<8x1xf32, #tpu.memory_space<vmem>>, vector<8x1xf32>
    tpu.vector_store %arg8[%c0_12, %c0_13], %21 {strides = array<i32>} : memref<8x1xf32, #tpu.memory_space<vmem>>, vector<8x1xf32>,
    %c0_14 = arith.constant 0 : index
    %c0_15 = arith.constant 0 : index
    %23 = vector.load %arg9[%c0_14, %c0_15] : memref<8x8xf32, #tpu.memory_space<vmem>>, vector<8x8xf32>
    %24 = vector.broadcast %13 : vector<8x1xf32> to vector<8x8xf32>
    %25 = arith.mulf %24, %23 : vector<8x8xf32>
    %26 = arith.truncf %16 : vector<8x8xf32> to vector<8x8xbf16>
    %c0_16 = arith.constant 0 : index
    %c0_17 = arith.constant 0 : index
    %c0_18 = arith.constant 0 : index
    %27 = vector.load %arg5[%c0_16, %c0_17, %c0_18] : memref<1x8x8xbf16, #tpu.memory_space<vmem>>, vector<1x8x8xbf16>
    %28 = vector.shape_cast %27 : vector<1x8x8xbf16> to vector<8x8xbf16>
    %cst_19 = arith.constant dense<0.000000e+00> : vector<8x8xf32>
    %29 = tpu.matmul %26, %28, %cst_19 {dimension_numbers = #tpu.dot_dimension_numbers<[1], [0], [0], [1], [0, 0, 1, 1], [], []>} : vector<8x8xbf16>, vector<8x8xbf16>, vector<8x8xf32> -> vector<8x8xf32>
    %30 = arith.addf %25, %29 : vector<8x8xf32>
    %c0_20 = arith.constant 0 : index
    %c0_21 = arith.constant 0 : index
    %31 = vector.load %arg9[%c0_20, %c0_21] : memref<8x8xf32, #tpu.memory_space<vmem>>, vector<8x8xf32>
    tpu.vector_store %arg9[%c0_20, %c0_21], %30 {strides = array<i32>} : memref<8x8xf32, #tpu.memory_space<vmem>>, vector<8x8xf32>,
    %c0_22 = arith.constant 0 : index
    %c0_23 = arith.constant 0 : index
    %32 = vector.load %arg7[%c0_22, %c0_23] : memref<8x1xf32, #tpu.memory_space<vmem>>, vector<8x1xf32>
    tpu.vector_store %arg7[%c0_22, %c0_23], %11 {strides = array<i32>} : memref<8x1xf32, #tpu.memory_space<vmem>>, vector<8x1xf32>,
    %c0_i32_24 = arith.constant 0 : i32
    %33 = arith.cmpi eq, %arg2, %c0_i32_24 : i32
    %34 = arith.extui %33 : i1 to i32
    %c0_i32_25 = arith.constant 0 : i32
    %35 = arith.cmpi ne, %34, %c0_i32_25 : i32
    scf.if %35 {
      %c0_26 = arith.constant 0 : index
      %c0_27 = arith.constant 0 : index
      %36 = vector.load %arg9[%c0_26, %c0_27] : memref<8x8xf32, #tpu.memory_space<vmem>>, vector<8x8xf32>
      %c0_28 = arith.constant 0 : index
      %c0_29 = arith.constant 0 : index
      %37 = vector.load %arg8[%c0_28, %c0_29] : memref<8x1xf32, #tpu.memory_space<vmem>>, vector<8x1xf32>
      %38 = tpu.reciprocal %37 {approx = true} : vector<8x1xf32> -> vector<8x1xf32>
      %39 = vector.broadcast %38 : vector<8x1xf32> to vector<8x8xf32>
      %40 = arith.mulf %36, %39 : vector<8x8xf32>
      %41 = arith.truncf %40 : vector<8x8xf32> to vector<8x8xbf16>
      %c0_30 = arith.constant 0 : index
      %c0_31 = arith.constant 0 : index
      %c0_32 = arith.constant 0 : index
      %42 = vector.load %arg6[%c0_30, %c0_31, %c0_32] : memref<1x8x8xbf16, #tpu.memory_space<vmem>>, vector<1x8x8xbf16>
      %43 = vector.shape_cast %42 : vector<1x8x8xbf16> to vector<8x8xbf16>
      %44 = vector.shape_cast %41 : vector<8x8xbf16> to vector<1x8x8xbf16>
      tpu.vector_store %arg6[%c0_30, %c0_31, %c0_32], %44 {strides = array<i32>} : memref<1x8x8xbf16, #tpu.memory_space<vmem>>, vector<1x8x8xbf16>,
    } else {
    }
    return
  }
  func.func @transform_0(%arg0: i32, %arg1: i32, %arg2: i32) -> (i32, i32, i32) {
    %c0_i32 = arith.constant 0 : i32
    %c0_i32_0 = arith.constant 0 : i32
    return %arg0, %arg1, %c0_i32 : i32, i32, i32
  }
  func.func @transform_1(%arg0: i32, %arg1: i32, %arg2: i32) -> (i32, i32, i32) {
    %c0_i32 = arith.constant 0 : i32
    %c0_i32_0 = arith.constant 0 : i32
    return %arg0, %arg2, %c0_i32 : i32, i32, i32
  }
  func.func @transform_2(%arg0: i32, %arg1: i32, %arg2: i32) -> (i32, i32, i32) {
    %c0_i32 = arith.constant 0 : i32
    %c0_i32_0 = arith.constant 0 : i32
    return %arg0, %arg2, %c0_i32 : i32, i32, i32
  }
  func.func @transform_3(%arg0: i32, %arg1: i32, %arg2: i32) -> (i32, i32, i32) {
    %c0_i32 = arith.constant 0 : i32
    %c0_i32_0 = arith.constant 0 : i32
    return %arg0, %arg1, %c0_i32 : i32, i32, i32
  }
}

module attributes {stable_mosaic.version = 11 : i64} {
  func.func @_linear_res_ln_kernel(%arg0: i32, %arg1: i32, %arg2: memref<16x32xbf16, #tpu.memory_space<vmem>>, %arg3: memref<32x32xbf16, #tpu.memory_space<vmem>>, %arg4: memref<1x32xf32, #tpu.memory_space<vmem>>, %arg5: memref<16x32xbf16, #tpu.memory_space<vmem>>, %arg6: memref<1x32xf32, #tpu.memory_space<vmem>>, %arg7: memref<1x32xf32, #tpu.memory_space<vmem>>, %arg8: memref<16x32xbf16, #tpu.memory_space<vmem>>, %arg9: memref<16x32xf32, #tpu.memory_space<vmem>>) attributes {dimension_semantics = [#tpu.dimension_semantics<parallel>, #tpu.dimension_semantics<arbitrary>], iteration_bounds = array<i64: 1, 1>, scalar_prefetch = 0 : i64, scratch_operands = 1 : i64, tpu.core_type = #tpu.core_type<tc>, window_params = [{transform_indices = @transform_0, window_bounds = array<i64: 16, 32>}, {transform_indices = @transform_1, window_bounds = array<i64: 32, 32>}, {pipeline_mode = #tpu.pipeline_mode<synchronous>, transform_indices = @transform_2, window_bounds = array<i64: 1, 32>}, {transform_indices = @transform_3, window_bounds = array<i64: 16, 32>}, {pipeline_mode = #tpu.pipeline_mode<synchronous>, transform_indices = @transform_4, window_bounds = array<i64: 1, 32>}, {pipeline_mode = #tpu.pipeline_mode<synchronous>, transform_indices = @transform_5, window_bounds = array<i64: 1, 32>}, {transform_indices = @transform_6, window_bounds = array<i64: 16, 32>}]} {
    %c0_i32 = arith.constant 0 : i32
    %0 = arith.cmpi eq, %arg1, %c0_i32 : i32
    %1 = arith.extui %0 : i1 to i32
    %c0_i32_0 = arith.constant 0 : i32
    %2 = arith.cmpi ne, %1, %c0_i32_0 : i32
    scf.if %2 {
      %cst_10 = arith.constant 0.000000e+00 : f32
      %12 = vector.broadcast %cst_10 : f32 to vector<16x32xf32>
      %c0_11 = arith.constant 0 : index
      %c0_12 = arith.constant 0 : index
      %13 = vector.load %arg9[%c0_11, %c0_12] : memref<16x32xf32, #tpu.memory_space<vmem>>, vector<16x32xf32>
      tpu.vector_store %arg9[%c0_11, %c0_12], %12 {strides = array<i32>} : memref<16x32xf32, #tpu.memory_space<vmem>>, vector<16x32xf32>,
    } else {
    }
    %c0 = arith.constant 0 : index
    %c0_1 = arith.constant 0 : index
    %3 = vector.load %arg9[%c0, %c0_1] : memref<16x32xf32, #tpu.memory_space<vmem>>, vector<16x32xf32>
    %c0_2 = arith.constant 0 : index
    %c0_3 = arith.constant 0 : index
    %4 = vector.load %arg2[%c0_2, %c0_3] : memref<16x32xbf16, #tpu.memory_space<vmem>>, vector<16x32xbf16>
    %c0_4 = arith.constant 0 : index
    %c0_5 = arith.constant 0 : index
    %5 = vector.load %arg3[%c0_4, %c0_5] : memref<32x32xbf16, #tpu.memory_space<vmem>>, vector<32x32xbf16>
    %cst = arith.constant dense<0.000000e+00> : vector<16x32xf32>
    %6 = tpu.matmul %4, %5, %cst {dimension_numbers = #tpu.dot_dimension_numbers<[1], [0], [0], [1], [0, 0, 1, 1], [], []>} : vector<16x32xbf16>, vector<32x32xbf16>, vector<16x32xf32> -> vector<16x32xf32>
    %7 = arith.addf %3, %6 : vector<16x32xf32>
    %c0_6 = arith.constant 0 : index
    %c0_7 = arith.constant 0 : index
    %8 = vector.load %arg9[%c0_6, %c0_7] : memref<16x32xf32, #tpu.memory_space<vmem>>, vector<16x32xf32>
    tpu.vector_store %arg9[%c0_6, %c0_7], %7 {strides = array<i32>} : memref<16x32xf32, #tpu.memory_space<vmem>>, vector<16x32xf32>,
    %c0_i32_8 = arith.constant 0 : i32
    %9 = arith.cmpi eq, %arg1, %c0_i32_8 : i32
    %10 = arith.extui %9 : i1 to i32
    %c0_i32_9 = arith.constant 0 : i32
    %11 = arith.cmpi ne, %10, %c0_i32_9 : i32
    scf.if %11 {
      %c0_10 = arith.constant 0 : index
      %c0_11 = arith.constant 0 : index
      %12 = vector.load %arg9[%c0_10, %c0_11] : memref<16x32xf32, #tpu.memory_space<vmem>>, vector<16x32xf32>
      %c0_12 = arith.constant 0 : index
      %c0_13 = arith.constant 0 : index
      %13 = vector.load %arg4[%c0_12, %c0_13] : memref<1x32xf32, #tpu.memory_space<vmem>>, vector<1x32xf32>
      %14 = vector.broadcast %13 : vector<1x32xf32> to vector<16x32xf32>
      %15 = arith.addf %12, %14 : vector<16x32xf32>
      %c0_14 = arith.constant 0 : index
      %c0_15 = arith.constant 0 : index
      %16 = vector.load %arg5[%c0_14, %c0_15] : memref<16x32xbf16, #tpu.memory_space<vmem>>, vector<16x32xbf16>
      %17 = arith.extf %16 : vector<16x32xbf16> to vector<16x32xf32>
      %18 = arith.addf %15, %17 : vector<16x32xf32>
      %cst_16 = arith.constant dense<0.000000e+00> : vector<16xf32>
      %19 = vector.multi_reduction <add>, %18, %cst_16 [1] : vector<16x32xf32> to vector<16xf32>
      %20 = vector.shape_cast %19 : vector<16xf32> to vector<16x1xf32>
      %cst_17 = arith.constant 3.200000e+01 : f32
      %21 = vector.broadcast %cst_17 : f32 to vector<16x1xf32>
      %22 = arith.divf %20, %21 : vector<16x1xf32>
      %23 = arith.mulf %18, %18 : vector<16x32xf32>
      %cst_18 = arith.constant dense<0.000000e+00> : vector<16xf32>
      %24 = vector.multi_reduction <add>, %23, %cst_18 [1] : vector<16x32xf32> to vector<16xf32>
      %25 = vector.shape_cast %24 : vector<16xf32> to vector<16x1xf32>
      %cst_19 = arith.constant 3.200000e+01 : f32
      %26 = vector.broadcast %cst_19 : f32 to vector<16x1xf32>
      %27 = arith.divf %25, %26 : vector<16x1xf32>
      %28 = arith.mulf %22, %22 : vector<16x1xf32>
      %29 = arith.subf %27, %28 : vector<16x1xf32>
      %30 = vector.broadcast %22 : vector<16x1xf32> to vector<16x32xf32>
      %31 = arith.subf %18, %30 : vector<16x32xf32>
      %cst_20 = arith.constant 9.99999974E-6 : f32
      %32 = vector.broadcast %cst_20 : f32 to vector<16x1xf32>
      %33 = arith.addf %29, %32 : vector<16x1xf32>
      %34 = math.rsqrt %33 : vector<16x1xf32>
      %35 = vector.broadcast %34 : vector<16x1xf32> to vector<16x32xf32>
      %36 = arith.mulf %31, %35 : vector<16x32xf32>
      %c0_21 = arith.constant 0 : index
      %c0_22 = arith.constant 0 : index
      %37 = vector.load %arg6[%c0_21, %c0_22] : memref<1x32xf32, #tpu.memory_space<vmem>>, vector<1x32xf32>
      %38 = vector.broadcast %37 : vector<1x32xf32> to vector<16x32xf32>
      %39 = arith.mulf %36, %38 : vector<16x32xf32>
      %c0_23 = arith.constant 0 : index
      %c0_24 = arith.constant 0 : index
      %40 = vector.load %arg7[%c0_23, %c0_24] : memref<1x32xf32, #tpu.memory_space<vmem>>, vector<1x32xf32>
      %41 = vector.broadcast %40 : vector<1x32xf32> to vector<16x32xf32>
      %42 = arith.addf %39, %41 : vector<16x32xf32>
      %43 = arith.truncf %42 : vector<16x32xf32> to vector<16x32xbf16>
      %c0_25 = arith.constant 0 : index
      %c0_26 = arith.constant 0 : index
      %44 = vector.load %arg8[%c0_25, %c0_26] : memref<16x32xbf16, #tpu.memory_space<vmem>>, vector<16x32xbf16>
      tpu.vector_store %arg8[%c0_25, %c0_26], %43 {strides = array<i32>} : memref<16x32xbf16, #tpu.memory_space<vmem>>, vector<16x32xbf16>,
    } else {
    }
    return
  }
  func.func @transform_0(%arg0: i32, %arg1: i32) -> (i32, i32) {
    %c0_i32 = arith.constant 0 : i32
    return %arg0, %arg1 : i32, i32
  }
  func.func @transform_1(%arg0: i32, %arg1: i32) -> (i32, i32) {
    %c0_i32 = arith.constant 0 : i32
    %c0_i32_0 = arith.constant 0 : i32
    return %arg1, %c0_i32 : i32, i32
  }
  func.func @transform_2(%arg0: i32, %arg1: i32) -> (i32, i32) {
    %c0_i32 = arith.constant 0 : i32
    %c0_i32_0 = arith.constant 0 : i32
    %c0_i32_1 = arith.constant 0 : i32
    return %c0_i32, %c0_i32_0 : i32, i32
  }
  func.func @transform_3(%arg0: i32, %arg1: i32) -> (i32, i32) {
    %c0_i32 = arith.constant 0 : i32
    %c0_i32_0 = arith.constant 0 : i32
    return %arg0, %c0_i32 : i32, i32
  }
  func.func @transform_4(%arg0: i32, %arg1: i32) -> (i32, i32) {
    %c0_i32 = arith.constant 0 : i32
    %c0_i32_0 = arith.constant 0 : i32
    %c0_i32_1 = arith.constant 0 : i32
    return %c0_i32, %c0_i32_0 : i32, i32
  }
  func.func @transform_5(%arg0: i32, %arg1: i32) -> (i32, i32) {
    %c0_i32 = arith.constant 0 : i32
    %c0_i32_0 = arith.constant 0 : i32
    %c0_i32_1 = arith.constant 0 : i32
    return %c0_i32, %c0_i32_0 : i32, i32
  }
  func.func @transform_6(%arg0: i32, %arg1: i32) -> (i32, i32) {
    %c0_i32 = arith.constant 0 : i32
    %c0_i32_0 = arith.constant 0 : i32
    return %arg0, %c0_i32 : i32, i32
  }
}

module attributes {stable_mosaic.version = 11 : i64} {
  func.func @_linear_kernel(%arg0: i32, %arg1: i32, %arg2: i32, %arg3: memref<16x32xbf16, #tpu.memory_space<vmem>>, %arg4: memref<32x32xbf16, #tpu.memory_space<vmem>>, %arg5: memref<1x32xf32, #tpu.memory_space<vmem>>, %arg6: memref<16x32xbf16, #tpu.memory_space<vmem>>, %arg7: memref<16x32xf32, #tpu.memory_space<vmem>>) attributes {dimension_semantics = [#tpu.dimension_semantics<parallel>, #tpu.dimension_semantics<parallel>, #tpu.dimension_semantics<arbitrary>], iteration_bounds = array<i64: 1, 1, 1>, scalar_prefetch = 0 : i64, scratch_operands = 1 : i64, tpu.core_type = #tpu.core_type<tc>, window_params = [{transform_indices = @transform_0, window_bounds = array<i64: 16, 32>}, {transform_indices = @transform_1, window_bounds = array<i64: 32, 32>}, {transform_indices = @transform_2, window_bounds = array<i64: 1, 32>}, {transform_indices = @transform_3, window_bounds = array<i64: 16, 32>}]} {
    %c0_i32 = arith.constant 0 : i32
    %0 = arith.cmpi eq, %arg2, %c0_i32 : i32
    %1 = arith.extui %0 : i1 to i32
    %c0_i32_0 = arith.constant 0 : i32
    %2 = arith.cmpi ne, %1, %c0_i32_0 : i32
    scf.if %2 {
      %cst_10 = arith.constant 0.000000e+00 : f32
      %12 = vector.broadcast %cst_10 : f32 to vector<16x32xf32>
      %c0_11 = arith.constant 0 : index
      %c0_12 = arith.constant 0 : index
      %13 = vector.load %arg7[%c0_11, %c0_12] : memref<16x32xf32, #tpu.memory_space<vmem>>, vector<16x32xf32>
      tpu.vector_store %arg7[%c0_11, %c0_12], %12 {strides = array<i32>} : memref<16x32xf32, #tpu.memory_space<vmem>>, vector<16x32xf32>,
    } else {
    }
    %c0 = arith.constant 0 : index
    %c0_1 = arith.constant 0 : index
    %3 = vector.load %arg7[%c0, %c0_1] : memref<16x32xf32, #tpu.memory_space<vmem>>, vector<16x32xf32>
    %c0_2 = arith.constant 0 : index
    %c0_3 = arith.constant 0 : index
    %4 = vector.load %arg3[%c0_2, %c0_3] : memref<16x32xbf16, #tpu.memory_space<vmem>>, vector<16x32xbf16>
    %c0_4 = arith.constant 0 : index
    %c0_5 = arith.constant 0 : index
    %5 = vector.load %arg4[%c0_4, %c0_5] : memref<32x32xbf16, #tpu.memory_space<vmem>>, vector<32x32xbf16>
    %cst = arith.constant dense<0.000000e+00> : vector<16x32xf32>
    %6 = tpu.matmul %4, %5, %cst {dimension_numbers = #tpu.dot_dimension_numbers<[1], [0], [0], [1], [0, 0, 1, 1], [], []>} : vector<16x32xbf16>, vector<32x32xbf16>, vector<16x32xf32> -> vector<16x32xf32>
    %7 = arith.addf %3, %6 : vector<16x32xf32>
    %c0_6 = arith.constant 0 : index
    %c0_7 = arith.constant 0 : index
    %8 = vector.load %arg7[%c0_6, %c0_7] : memref<16x32xf32, #tpu.memory_space<vmem>>, vector<16x32xf32>
    tpu.vector_store %arg7[%c0_6, %c0_7], %7 {strides = array<i32>} : memref<16x32xf32, #tpu.memory_space<vmem>>, vector<16x32xf32>,
    %c0_i32_8 = arith.constant 0 : i32
    %9 = arith.cmpi eq, %arg2, %c0_i32_8 : i32
    %10 = arith.extui %9 : i1 to i32
    %c0_i32_9 = arith.constant 0 : i32
    %11 = arith.cmpi ne, %10, %c0_i32_9 : i32
    scf.if %11 {
      %c0_10 = arith.constant 0 : index
      %c0_11 = arith.constant 0 : index
      %12 = vector.load %arg7[%c0_10, %c0_11] : memref<16x32xf32, #tpu.memory_space<vmem>>, vector<16x32xf32>
      %c0_12 = arith.constant 0 : index
      %c0_13 = arith.constant 0 : index
      %13 = vector.load %arg5[%c0_12, %c0_13] : memref<1x32xf32, #tpu.memory_space<vmem>>, vector<1x32xf32>
      %14 = vector.broadcast %13 : vector<1x32xf32> to vector<16x32xf32>
      %15 = arith.addf %12, %14 : vector<16x32xf32>
      %16 = arith.truncf %15 : vector<16x32xf32> to vector<16x32xbf16>
      %c0_14 = arith.constant 0 : index
      %c0_15 = arith.constant 0 : index
      %17 = vector.load %arg6[%c0_14, %c0_15] : memref<16x32xbf16, #tpu.memory_space<vmem>>, vector<16x32xbf16>
      tpu.vector_store %arg6[%c0_14, %c0_15], %16 {strides = array<i32>} : memref<16x32xbf16, #tpu.memory_space<vmem>>, vector<16x32xbf16>,
    } else {
    }
    return
  }
  func.func @transform_0(%arg0: i32, %arg1: i32, %arg2: i32) -> (i32, i32) {
    %c0_i32 = arith.constant 0 : i32
    return %arg0, %arg2 : i32, i32
  }
  func.func @transform_1(%arg0: i32, %arg1: i32, %arg2: i32) -> (i32, i32) {
    %c0_i32 = arith.constant 0 : i32
    return %arg2, %arg1 : i32, i32
  }
  func.func @transform_2(%arg0: i32, %arg1: i32, %arg2: i32) -> (i32, i32) {
    %c0_i32 = arith.constant 0 : i32
    %c0_i32_0 = arith.constant 0 : i32
    return %c0_i32, %arg1 : i32, i32
  }
  func.func @transform_3(%arg0: i32, %arg1: i32, %arg2: i32) -> (i32, i32) {
    %c0_i32 = arith.constant 0 : i32
    return %arg0, %arg1 : i32, i32
  }
}

module attributes {stable_mosaic.version = 11 : i64} {
  func.func @_linear_kernel(%arg0: i32, %arg1: i32, %arg2: i32, %arg3: memref<24x32xbf16, #tpu.memory_space<vmem>>, %arg4: memref<32x64xbf16, #tpu.memory_space<vmem>>, %arg5: memref<1x64xf32, #tpu.memory_space<vmem>>, %arg6: memref<24x64xbf16, #tpu.memory_space<vmem>>, %arg7: memref<24x64xf32, #tpu.memory_space<vmem>>) attributes {dimension_semantics = [#tpu.dimension_semantics<parallel>, #tpu.dimension_semantics<parallel>, #tpu.dimension_semantics<arbitrary>], iteration_bounds = array<i64: 1, 1, 1>, scalar_prefetch = 0 : i64, scratch_operands = 1 : i64, tpu.core_type = #tpu.core_type<tc>, window_params = [{transform_indices = @transform_0, window_bounds = array<i64: 24, 32>}, {transform_indices = @transform_1, window_bounds = array<i64: 32, 64>}, {transform_indices = @transform_2, window_bounds = array<i64: 1, 64>}, {transform_indices = @transform_3, window_bounds = array<i64: 24, 64>}]} {
    %c0_i32 = arith.constant 0 : i32
    %0 = arith.cmpi eq, %arg2, %c0_i32 : i32
    %1 = arith.extui %0 : i1 to i32
    %c0_i32_0 = arith.constant 0 : i32
    %2 = arith.cmpi ne, %1, %c0_i32_0 : i32
    scf.if %2 {
      %cst_10 = arith.constant 0.000000e+00 : f32
      %12 = vector.broadcast %cst_10 : f32 to vector<24x64xf32>
      %c0_11 = arith.constant 0 : index
      %c0_12 = arith.constant 0 : index
      %13 = vector.load %arg7[%c0_11, %c0_12] : memref<24x64xf32, #tpu.memory_space<vmem>>, vector<24x64xf32>
      tpu.vector_store %arg7[%c0_11, %c0_12], %12 {strides = array<i32>} : memref<24x64xf32, #tpu.memory_space<vmem>>, vector<24x64xf32>,
    } else {
    }
    %c0 = arith.constant 0 : index
    %c0_1 = arith.constant 0 : index
    %3 = vector.load %arg7[%c0, %c0_1] : memref<24x64xf32, #tpu.memory_space<vmem>>, vector<24x64xf32>
    %c0_2 = arith.constant 0 : index
    %c0_3 = arith.constant 0 : index
    %4 = vector.load %arg3[%c0_2, %c0_3] : memref<24x32xbf16, #tpu.memory_space<vmem>>, vector<24x32xbf16>
    %c0_4 = arith.constant 0 : index
    %c0_5 = arith.constant 0 : index
    %5 = vector.load %arg4[%c0_4, %c0_5] : memref<32x64xbf16, #tpu.memory_space<vmem>>, vector<32x64xbf16>
    %cst = arith.constant dense<0.000000e+00> : vector<24x64xf32>
    %6 = tpu.matmul %4, %5, %cst {dimension_numbers = #tpu.dot_dimension_numbers<[1], [0], [0], [1], [0, 0, 1, 1], [], []>} : vector<24x32xbf16>, vector<32x64xbf16>, vector<24x64xf32> -> vector<24x64xf32>
    %7 = arith.addf %3, %6 : vector<24x64xf32>
    %c0_6 = arith.constant 0 : index
    %c0_7 = arith.constant 0 : index
    %8 = vector.load %arg7[%c0_6, %c0_7] : memref<24x64xf32, #tpu.memory_space<vmem>>, vector<24x64xf32>
    tpu.vector_store %arg7[%c0_6, %c0_7], %7 {strides = array<i32>} : memref<24x64xf32, #tpu.memory_space<vmem>>, vector<24x64xf32>,
    %c0_i32_8 = arith.constant 0 : i32
    %9 = arith.cmpi eq, %arg2, %c0_i32_8 : i32
    %10 = arith.extui %9 : i1 to i32
    %c0_i32_9 = arith.constant 0 : i32
    %11 = arith.cmpi ne, %10, %c0_i32_9 : i32
    scf.if %11 {
      %c0_10 = arith.constant 0 : index
      %c0_11 = arith.constant 0 : index
      %12 = vector.load %arg7[%c0_10, %c0_11] : memref<24x64xf32, #tpu.memory_space<vmem>>, vector<24x64xf32>
      %c0_12 = arith.constant 0 : index
      %c0_13 = arith.constant 0 : index
      %13 = vector.load %arg5[%c0_12, %c0_13] : memref<1x64xf32, #tpu.memory_space<vmem>>, vector<1x64xf32>
      %14 = vector.broadcast %13 : vector<1x64xf32> to vector<24x64xf32>
      %15 = arith.addf %12, %14 : vector<24x64xf32>
      %16 = arith.truncf %15 : vector<24x64xf32> to vector<24x64xbf16>
      %c0_14 = arith.constant 0 : index
      %c0_15 = arith.constant 0 : index
      %17 = vector.load %arg6[%c0_14, %c0_15] : memref<24x64xbf16, #tpu.memory_space<vmem>>, vector<24x64xbf16>
      tpu.vector_store %arg6[%c0_14, %c0_15], %16 {strides = array<i32>} : memref<24x64xbf16, #tpu.memory_space<vmem>>, vector<24x64xbf16>,
    } else {
    }
    return
  }
  func.func @transform_0(%arg0: i32, %arg1: i32, %arg2: i32) -> (i32, i32) {
    %c0_i32 = arith.constant 0 : i32
    return %arg0, %arg2 : i32, i32
  }
  func.func @transform_1(%arg0: i32, %arg1: i32, %arg2: i32) -> (i32, i32) {
    %c0_i32 = arith.constant 0 : i32
    return %arg2, %arg1 : i32, i32
  }
  func.func @transform_2(%arg0: i32, %arg1: i32, %arg2: i32) -> (i32, i32) {
    %c0_i32 = arith.constant 0 : i32
    %c0_i32_0 = arith.constant 0 : i32
    return %c0_i32, %arg1 : i32, i32
  }
  func.func @transform_3(%arg0: i32, %arg1: i32, %arg2: i32) -> (i32, i32) {
    %c0_i32 = arith.constant 0 : i32
    return %arg0, %arg1 : i32, i32
  }
}

module attributes {stable_mosaic.version = 11 : i64} {
  func.func @_flash_kernel(%arg0: i32, %arg1: i32, %arg2: i32, %arg3: memref<1x8x8xbf16, #tpu.memory_space<vmem>>, %arg4: memref<1x12x8xbf16, #tpu.memory_space<vmem>>, %arg5: memref<1x12x8xbf16, #tpu.memory_space<vmem>>, %arg6: memref<1x8x8xbf16, #tpu.memory_space<vmem>>, %arg7: memref<8x1xf32, #tpu.memory_space<vmem>>, %arg8: memref<8x1xf32, #tpu.memory_space<vmem>>, %arg9: memref<8x8xf32, #tpu.memory_space<vmem>>) attributes {dimension_semantics = [#tpu.dimension_semantics<parallel>, #tpu.dimension_semantics<parallel>, #tpu.dimension_semantics<arbitrary>], iteration_bounds = array<i64: 8, 1, 1>, scalar_prefetch = 0 : i64, scratch_operands = 3 : i64, tpu.core_type = #tpu.core_type<tc>, window_params = [{transform_indices = @transform_0, window_bounds = array<i64: 1, 8, 8>}, {transform_indices = @transform_1, window_bounds = array<i64: 1, 12, 8>}, {transform_indices = @transform_2, window_bounds = array<i64: 1, 12, 8>}, {transform_indices = @transform_3, window_bounds = array<i64: 1, 8, 8>}]} {
    %c0_i32 = arith.constant 0 : i32
    %0 = arith.cmpi eq, %arg2, %c0_i32 : i32
    %1 = arith.extui %0 : i1 to i32
    %c0_i32_0 = arith.constant 0 : i32
    %2 = arith.cmpi ne, %1, %c0_i32_0 : i32
    scf.if %2 {
      %cst_26 = arith.constant 0xFF800000 : f32
      %36 = vector.broadcast %cst_26 : f32 to vector<8x1xf32>
      %c0_27 = arith.constant 0 : index
      %c0_28 = arith.constant 0 : index
      %37 = vector.load %arg7[%c0_27, %c0_28] : memref<8x1xf32, #tpu.memory_space<vmem>>, vector<8x1xf32>
      tpu.vector_store %arg7[%c0_27, %c0_28], %36 {strides = array<i32>} : memref<8x1xf32, #tpu.memory_space<vmem>>, vector<8x1xf32>,
      %cst_29 = arith.constant 0.000000e+00 : f32
      %38 = vector.broadcast %cst_29 : f32 to vector<8x1xf32>
      %c0_30 = arith.constant 0 : index
      %c0_31 = arith.constant 0 : index
      %39 = vector.load %arg8[%c0_30, %c0_31] : memref<8x1xf32, #tpu.memory_space<vmem>>, vector<8x1xf32>
      tpu.vector_store %arg8[%c0_30, %c0_31], %38 {strides = array<i32>} : memref<8x1xf32, #tpu.memory_space<vmem>>, vector<8x1xf32>,
      %cst_32 = arith.constant 0.000000e+00 : f32
      %40 = vector.broadcast %cst_32 : f32 to vector<8x8xf32>
      %c0_33 = arith.constant 0 : index
      %c0_34 = arith.constant 0 : index
      %41 = vector.load %arg9[%c0_33, %c0_34] : memref<8x8xf32, #tpu.memory_space<vmem>>, vector<8x8xf32>
      tpu.vector_store %arg9[%c0_33, %c0_34], %40 {strides = array<i32>} : memref<8x8xf32, #tpu.memory_space<vmem>>, vector<8x8xf32>,
    } else {
    }
    %c0 = arith.constant 0 : index
    %c0_1 = arith.constant 0 : index
    %c0_2 = arith.constant 0 : index
    %3 = vector.load %arg3[%c0, %c0_1, %c0_2] : memref<1x8x8xbf16, #tpu.memory_space<vmem>>, vector<1x8x8xbf16>
    %4 = vector.shape_cast %3 : vector<1x8x8xbf16> to vector<8x8xbf16>
    %c0_3 = arith.constant 0 : index
    %c0_4 = arith.constant 0 : index
    %c0_5 = arith.constant 0 : index
    %5 = vector.load %arg4[%c0_3, %c0_4, %c0_5] : memref<1x12x8xbf16, #tpu.memory_space<vmem>>, vector<1x12x8xbf16>
    %6 = vector.shape_cast %5 : vector<1x12x8xbf16> to vector<12x8xbf16>
    %cst = arith.constant dense<0.000000e+00> : vector<8x12xf32>
    %7 = tpu.matmul %4, %6, %cst {dimension_numbers = #tpu.dot_dimension_numbers<[1], [1], [0], [0], [0, 0, 1, 0], [], []>} : vector<8x8xbf16>, vector<12x8xbf16>, vector<8x12xf32> -> vector<8x12xf32>
    %c0_6 = arith.constant 0 : index
    %c0_7 = arith.constant 0 : index
    %8 = vector.load %arg7[%c0_6, %c0_7] : memref<8x1xf32, #tpu.memory_space<vmem>>, vector<8x1xf32>
    %cst_8 = arith.constant dense<0xFF800000> : vector<8xf32>
    %9 = vector.multi_reduction <maximumf>, %7, %cst_8 [1] : vector<8x12xf32> to vector<8xf32>
    %10 = vector.shape_cast %9 : vector<8xf32> to vector<8x1xf32>
    %11 = arith.maximumf %8, %10 : vector<8x1xf32>
    %12 = arith.subf %8, %11 : vector<8x1xf32>
    %13 = math.exp %12 : vector<8x1xf32>
    %14 = vector.broadcast %11 : vector<8x1xf32> to vector<8x12xf32>
    %15 = arith.subf %7, %14 : vector<8x12xf32>
    %16 = math.exp %15 : vector<8x12xf32>
    %c0_9 = arith.constant 0 : index
    %c0_10 = arith.constant 0 : index
    %17 = vector.load %arg8[%c0_9, %c0_10] : memref<8x1xf32, #tpu.memory_space<vmem>>, vector<8x1xf32>
    %18 = arith.mulf %13, %17 : vector<8x1xf32>
    %cst_11 = arith.constant dense<0.000000e+00> : vector<8xf32>
    %19 = vector.multi_reduction <add>, %16, %cst_11 [1] : vector<8x12xf32> to vector<8xf32>
    %20 = vector.shape_cast %19 : vector<8xf32> to vector<8x1xf32>
    %21 = arith.addf %18, %20 : vector<8x1xf32>
    %c0_12 = arith.constant 0 : index
    %c0_13 = arith.constant 0 : index
    %22 = vector.load %arg8[%c0_12, %c0_13] : memref<8x1xf32, #tpu.memory_space<vmem>>, vector<8x1xf32>
    tpu.vector_store %arg8[%c0_12, %c0_13], %21 {strides = array<i32>} : memref<8x1xf32, #tpu.memory_space<vmem>>, vector<8x1xf32>,
    %c0_14 = arith.constant 0 : index
    %c0_15 = arith.constant 0 : index
    %23 = vector.load %arg9[%c0_14, %c0_15] : memref<8x8xf32, #tpu.memory_space<vmem>>, vector<8x8xf32>
    %24 = vector.broadcast %13 : vector<8x1xf32> to vector<8x8xf32>
    %25 = arith.mulf %24, %23 : vector<8x8xf32>
    %26 = arith.truncf %16 : vector<8x12xf32> to vector<8x12xbf16>
    %c0_16 = arith.constant 0 : index
    %c0_17 = arith.constant 0 : index
    %c0_18 = arith.constant 0 : index
    %27 = vector.load %arg5[%c0_16, %c0_17, %c0_18] : memref<1x12x8xbf16, #tpu.memory_space<vmem>>, vector<1x12x8xbf16>
    %28 = vector.shape_cast %27 : vector<1x12x8xbf16> to vector<12x8xbf16>
    %cst_19 = arith.constant dense<0.000000e+00> : vector<8x8xf32>
    %29 = tpu.matmul %26, %28, %cst_19 {dimension_numbers = #tpu.dot_dimension_numbers<[1], [0], [0], [1], [0, 0, 1, 1], [], []>} : vector<8x12xbf16>, vector<12x8xbf16>, vector<8x8xf32> -> vector<8x8xf32>
    %30 = arith.addf %25, %29 : vector<8x8xf32>
    %c0_20 = arith.constant 0 : index
    %c0_21 = arith.constant 0 : index
    %31 = vector.load %arg9[%c0_20, %c0_21] : memref<8x8xf32, #tpu.memory_space<vmem>>, vector<8x8xf32>
    tpu.vector_store %arg9[%c0_20, %c0_21], %30 {strides = array<i32>} : memref<8x8xf32, #tpu.memory_space<vmem>>, vector<8x8xf32>,
    %c0_22 = arith.constant 0 : index
    %c0_23 = arith.constant 0 : index
    %32 = vector.load %arg7[%c0_22, %c0_23] : memref<8x1xf32, #tpu.memory_space<vmem>>, vector<8x1xf32>
    tpu.vector_store %arg7[%c0_22, %c0_23], %11 {strides = array<i32>} : memref<8x1xf32, #tpu.memory_space<vmem>>, vector<8x1xf32>,
    %c0_i32_24 = arith.constant 0 : i32
    %33 = arith.cmpi eq, %arg2, %c0_i32_24 : i32
    %34 = arith.extui %33 : i1 to i32
    %c0_i32_25 = arith.constant 0 : i32
    %35 = arith.cmpi ne, %34, %c0_i32_25 : i32
    scf.if %35 {
      %c0_26 = arith.constant 0 : index
      %c0_27 = arith.constant 0 : index
      %36 = vector.load %arg9[%c0_26, %c0_27] : memref<8x8xf32, #tpu.memory_space<vmem>>, vector<8x8xf32>
      %c0_28 = arith.constant 0 : index
      %c0_29 = arith.constant 0 : index
      %37 = vector.load %arg8[%c0_28, %c0_29] : memref<8x1xf32, #tpu.memory_space<vmem>>, vector<8x1xf32>
      %38 = tpu.reciprocal %37 {approx = true} : vector<8x1xf32> -> vector<8x1xf32>
      %39 = vector.broadcast %38 : vector<8x1xf32> to vector<8x8xf32>
      %40 = arith.mulf %36, %39 : vector<8x8xf32>
      %41 = arith.truncf %40 : vector<8x8xf32> to vector<8x8xbf16>
      %c0_30 = arith.constant 0 : index
      %c0_31 = arith.constant 0 : index
      %c0_32 = arith.constant 0 : index
      %42 = vector.load %arg6[%c0_30, %c0_31, %c0_32] : memref<1x8x8xbf16, #tpu.memory_space<vmem>>, vector<1x8x8xbf16>
      %43 = vector.shape_cast %42 : vector<1x8x8xbf16> to vector<8x8xbf16>
      %44 = vector.shape_cast %41 : vector<8x8xbf16> to vector<1x8x8xbf16>
      tpu.vector_store %arg6[%c0_30, %c0_31, %c0_32], %44 {strides = array<i32>} : memref<1x8x8xbf16, #tpu.memory_space<vmem>>, vector<1x8x8xbf16>,
    } else {
    }
    return
  }
  func.func @transform_0(%arg0: i32, %arg1: i32, %arg2: i32) -> (i32, i32, i32) {
    %c0_i32 = arith.constant 0 : i32
    %c0_i32_0 = arith.constant 0 : i32
    return %arg0, %arg1, %c0_i32 : i32, i32, i32
  }
  func.func @transform_1(%arg0: i32, %arg1: i32, %arg2: i32) -> (i32, i32, i32) {
    %c0_i32 = arith.constant 0 : i32
    %c0_i32_0 = arith.constant 0 : i32
    return %arg0, %arg2, %c0_i32 : i32, i32, i32
  }
  func.func @transform_2(%arg0: i32, %arg1: i32, %arg2: i32) -> (i32, i32, i32) {
    %c0_i32 = arith.constant 0 : i32
    %c0_i32_0 = arith.constant 0 : i32
    return %arg0, %arg2, %c0_i32 : i32, i32, i32
  }
  func.func @transform_3(%arg0: i32, %arg1: i32, %arg2: i32) -> (i32, i32, i32) {
    %c0_i32 = arith.constant 0 : i32
    %c0_i32_0 = arith.constant 0 : i32
    return %arg0, %arg1, %c0_i32 : i32, i32, i32
  }
}

module attributes {stable_mosaic.version = 11 : i64} {
  func.func @_ffn_kernel(%arg0: i32, %arg1: memref<16x32xbf16, #tpu.memory_space<vmem>>, %arg2: memref<32x64xbf16, #tpu.memory_space<vmem>>, %arg3: memref<1x64xf32, #tpu.memory_space<vmem>>, %arg4: memref<64x32xbf16, #tpu.memory_space<vmem>>, %arg5: memref<1x32xf32, #tpu.memory_space<vmem>>, %arg6: memref<1x32xf32, #tpu.memory_space<vmem>>, %arg7: memref<1x32xf32, #tpu.memory_space<vmem>>, %arg8: memref<16x32xbf16, #tpu.memory_space<vmem>>) attributes {dimension_semantics = [#tpu.dimension_semantics<parallel>], iteration_bounds = array<i64: 1>, scalar_prefetch = 0 : i64, scratch_operands = 0 : i64, tpu.core_type = #tpu.core_type<tc>, window_params = [{transform_indices = @transform_0, window_bounds = array<i64: 16, 32>}, {pipeline_mode = #tpu.pipeline_mode<synchronous>, transform_indices = @transform_1, window_bounds = array<i64: 32, 64>}, {pipeline_mode = #tpu.pipeline_mode<synchronous>, transform_indices = @transform_2, window_bounds = array<i64: 1, 64>}, {pipeline_mode = #tpu.pipeline_mode<synchronous>, transform_indices = @transform_3, window_bounds = array<i64: 64, 32>}, {pipeline_mode = #tpu.pipeline_mode<synchronous>, transform_indices = @transform_4, window_bounds = array<i64: 1, 32>}, {pipeline_mode = #tpu.pipeline_mode<synchronous>, transform_indices = @transform_5, window_bounds = array<i64: 1, 32>}, {pipeline_mode = #tpu.pipeline_mode<synchronous>, transform_indices = @transform_6, window_bounds = array<i64: 1, 32>}, {transform_indices = @transform_7, window_bounds = array<i64: 16, 32>}]} {
    %c0 = arith.constant 0 : index
    %c0_0 = arith.constant 0 : index
    %0 = vector.load %arg1[%c0, %c0_0] : memref<16x32xbf16, #tpu.memory_space<vmem>>, vector<16x32xbf16>
    %c0_1 = arith.constant 0 : index
    %c0_2 = arith.constant 0 : index
    %1 = vector.load %arg2[%c0_1, %c0_2] : memref<32x64xbf16, #tpu.memory_space<vmem>>, vector<32x64xbf16>
    %cst = arith.constant dense<0.000000e+00> : vector<16x64xf32>
    %2 = tpu.matmul %0, %1, %cst {dimension_numbers = #tpu.dot_dimension_numbers<[1], [0], [0], [1], [0, 0, 1, 1], [], []>} : vector<16x32xbf16>, vector<32x64xbf16>, vector<16x64xf32> -> vector<16x64xf32>
    %c0_3 = arith.constant 0 : index
    %c0_4 = arith.constant 0 : index
    %3 = vector.load %arg3[%c0_3, %c0_4] : memref<1x64xf32, #tpu.memory_space<vmem>>, vector<1x64xf32>
    %4 = vector.broadcast %3 : vector<1x64xf32> to vector<16x64xf32>
    %5 = arith.addf %2, %4 : vector<16x64xf32>
    %cst_5 = arith.constant 0.000000e+00 : f32
    %6 = vector.broadcast %cst_5 : f32 to vector<16x64xf32>
    %7 = arith.maximumf %5, %6 : vector<16x64xf32>
    %8 = arith.truncf %7 : vector<16x64xf32> to vector<16x64xbf16>
    %c0_6 = arith.constant 0 : index
    %c0_7 = arith.constant 0 : index
    %9 = vector.load %arg4[%c0_6, %c0_7] : memref<64x32xbf16, #tpu.memory_space<vmem>>, vector<64x32xbf16>
    %cst_8 = arith.constant dense<0.000000e+00> : vector<16x32xf32>
    %10 = tpu.matmul %8, %9, %cst_8 {dimension_numbers = #tpu.dot_dimension_numbers<[1], [0], [0], [1], [0, 0, 1, 1], [], []>} : vector<16x64xbf16>, vector<64x32xbf16>, vector<16x32xf32> -> vector<16x32xf32>
    %c0_9 = arith.constant 0 : index
    %c0_10 = arith.constant 0 : index
    %11 = vector.load %arg5[%c0_9, %c0_10] : memref<1x32xf32, #tpu.memory_space<vmem>>, vector<1x32xf32>
    %12 = vector.broadcast %11 : vector<1x32xf32> to vector<16x32xf32>
    %13 = arith.addf %10, %12 : vector<16x32xf32>
    %14 = arith.extf %0 : vector<16x32xbf16> to vector<16x32xf32>
    %15 = arith.addf %13, %14 : vector<16x32xf32>
    %cst_11 = arith.constant dense<0.000000e+00> : vector<16xf32>
    %16 = vector.multi_reduction <add>, %15, %cst_11 [1] : vector<16x32xf32> to vector<16xf32>
    %17 = vector.shape_cast %16 : vector<16xf32> to vector<16x1xf32>
    %cst_12 = arith.constant 3.200000e+01 : f32
    %18 = vector.broadcast %cst_12 : f32 to vector<16x1xf32>
    %19 = arith.divf %17, %18 : vector<16x1xf32>
    %20 = arith.mulf %15, %15 : vector<16x32xf32>
    %cst_13 = arith.constant dense<0.000000e+00> : vector<16xf32>
    %21 = vector.multi_reduction <add>, %20, %cst_13 [1] : vector<16x32xf32> to vector<16xf32>
    %22 = vector.shape_cast %21 : vector<16xf32> to vector<16x1xf32>
    %cst_14 = arith.constant 3.200000e+01 : f32
    %23 = vector.broadcast %cst_14 : f32 to vector<16x1xf32>
    %24 = arith.divf %22, %23 : vector<16x1xf32>
    %25 = arith.mulf %19, %19 : vector<16x1xf32>
    %26 = arith.subf %24, %25 : vector<16x1xf32>
    %27 = vector.broadcast %19 : vector<16x1xf32> to vector<16x32xf32>
    %28 = arith.subf %15, %27 : vector<16x32xf32>
    %cst_15 = arith.constant 9.99999974E-6 : f32
    %29 = vector.broadcast %cst_15 : f32 to vector<16x1xf32>
    %30 = arith.addf %26, %29 : vector<16x1xf32>
    %31 = math.rsqrt %30 : vector<16x1xf32>
    %32 = vector.broadcast %31 : vector<16x1xf32> to vector<16x32xf32>
    %33 = arith.mulf %28, %32 : vector<16x32xf32>
    %c0_16 = arith.constant 0 : index
    %c0_17 = arith.constant 0 : index
    %34 = vector.load %arg6[%c0_16, %c0_17] : memref<1x32xf32, #tpu.memory_space<vmem>>, vector<1x32xf32>
    %35 = vector.broadcast %34 : vector<1x32xf32> to vector<16x32xf32>
    %36 = arith.mulf %33, %35 : vector<16x32xf32>
    %c0_18 = arith.constant 0 : index
    %c0_19 = arith.constant 0 : index
    %37 = vector.load %arg7[%c0_18, %c0_19] : memref<1x32xf32, #tpu.memory_space<vmem>>, vector<1x32xf32>
    %38 = vector.broadcast %37 : vector<1x32xf32> to vector<16x32xf32>
    %39 = arith.addf %36, %38 : vector<16x32xf32>
    %40 = arith.truncf %39 : vector<16x32xf32> to vector<16x32xbf16>
    %c0_20 = arith.constant 0 : index
    %c0_21 = arith.constant 0 : index
    %41 = vector.load %arg8[%c0_20, %c0_21] : memref<16x32xbf16, #tpu.memory_space<vmem>>, vector<16x32xbf16>
    tpu.vector_store %arg8[%c0_20, %c0_21], %40 {strides = array<i32>} : memref<16x32xbf16, #tpu.memory_space<vmem>>, vector<16x32xbf16>,
    return
  }
  func.func @transform_0(%arg0: i32) -> (i32, i32) {
    %c0_i32 = arith.constant 0 : i32
    %c0_i32_0 = arith.constant 0 : i32
    return %arg0, %c0_i32 : i32, i32
  }
  func.func @transform_1(%arg0: i32) -> (i32, i32) {
    %c0_i32 = arith.constant 0 : i32
    %c0_i32_0 = arith.constant 0 : i32
    %c0_i32_1 = arith.constant 0 : i32
    return %c0_i32, %c0_i32_0 : i32, i32
  }
  func.func @transform_2(%arg0: i32) -> (i32, i32) {
    %c0_i32 = arith.constant 0 : i32
    %c0_i32_0 = arith.constant 0 : i32
    %c0_i32_1 = arith.constant 0 : i32
    return %c0_i32, %c0_i32_0 : i32, i32
  }
  func.func @transform_3(%arg0: i32) -> (i32, i32) {
    %c0_i32 = arith.constant 0 : i32
    %c0_i32_0 = arith.constant 0 : i32
    %c0_i32_1 = arith.constant 0 : i32
    return %c0_i32, %c0_i32_0 : i32, i32
  }
  func.func @transform_4(%arg0: i32) -> (i32, i32) {
    %c0_i32 = arith.constant 0 : i32
    %c0_i32_0 = arith.constant 0 : i32
    %c0_i32_1 = arith.constant 0 : i32
    return %c0_i32, %c0_i32_0 : i32, i32
  }
  func.func @transform_5(%arg0: i32) -> (i32, i32) {
    %c0_i32 = arith.constant 0 : i32
    %c0_i32_0 = arith.constant 0 : i32
    %c0_i32_1 = arith.constant 0 : i32
    return %c0_i32, %c0_i32_0 : i32, i32
  }
  func.func @transform_6(%arg0: i32) -> (i32, i32) {
    %c0_i32 = arith.constant 0 : i32
    %c0_i32_0 = arith.constant 0 : i32
    %c0_i32_1 = arith.constant 0 : i32
    return %c0_i32, %c0_i32_0 : i32, i32
  }
  func.func @transform_7(%arg0: i32) -> (i32, i32) {
    %c0_i32 = arith.constant 0 : i32
    %c0_i32_0 = arith.constant 0 : i32
    return %arg0, %c0_i32 : i32, i32
  }
}

module attributes {stable_mosaic.version = 11 : i64} {
  func.func @_ln_kernel(%arg0: i32, %arg1: memref<16x32xbf16, #tpu.memory_space<vmem>>, %arg2: memref<1x32xf32, #tpu.memory_space<vmem>>, %arg3: memref<1x32xf32, #tpu.memory_space<vmem>>, %arg4: memref<16x32xf32, #tpu.memory_space<vmem>>) attributes {dimension_semantics = [#tpu.dimension_semantics<parallel>], iteration_bounds = array<i64: 1>, scalar_prefetch = 0 : i64, scratch_operands = 0 : i64, tpu.core_type = #tpu.core_type<tc>, window_params = [{transform_indices = @transform_0, window_bounds = array<i64: 16, 32>}, {pipeline_mode = #tpu.pipeline_mode<synchronous>, transform_indices = @transform_1, window_bounds = array<i64: 1, 32>}, {pipeline_mode = #tpu.pipeline_mode<synchronous>, transform_indices = @transform_2, window_bounds = array<i64: 1, 32>}, {transform_indices = @transform_3, window_bounds = array<i64: 16, 32>}]} {
    %c0 = arith.constant 0 : index
    %c0_0 = arith.constant 0 : index
    %0 = vector.load %arg1[%c0, %c0_0] : memref<16x32xbf16, #tpu.memory_space<vmem>>, vector<16x32xbf16>
    %1 = arith.extf %0 : vector<16x32xbf16> to vector<16x32xf32>
    %cst = arith.constant dense<0.000000e+00> : vector<16xf32>
    %2 = vector.multi_reduction <add>, %1, %cst [1] : vector<16x32xf32> to vector<16xf32>
    %3 = vector.shape_cast %2 : vector<16xf32> to vector<16x1xf32>
    %cst_1 = arith.constant 3.200000e+01 : f32
    %4 = vector.broadcast %cst_1 : f32 to vector<16x1xf32>
    %5 = arith.divf %3, %4 : vector<16x1xf32>
    %6 = arith.mulf %1, %1 : vector<16x32xf32>
    %cst_2 = arith.constant dense<0.000000e+00> : vector<16xf32>
    %7 = vector.multi_reduction <add>, %6, %cst_2 [1] : vector<16x32xf32> to vector<16xf32>
    %8 = vector.shape_cast %7 : vector<16xf32> to vector<16x1xf32>
    %cst_3 = arith.constant 3.200000e+01 : f32
    %9 = vector.broadcast %cst_3 : f32 to vector<16x1xf32>
    %10 = arith.divf %8, %9 : vector<16x1xf32>
    %11 = arith.mulf %5, %5 : vector<16x1xf32>
    %12 = arith.subf %10, %11 : vector<16x1xf32>
    %13 = vector.broadcast %5 : vector<16x1xf32> to vector<16x32xf32>
    %14 = arith.subf %1, %13 : vector<16x32xf32>
    %cst_4 = arith.constant 9.99999974E-6 : f32
    %15 = vector.broadcast %cst_4 : f32 to vector<16x1xf32>
    %16 = arith.addf %12, %15 : vector<16x1xf32>
    %17 = math.rsqrt %16 : vector<16x1xf32>
    %18 = vector.broadcast %17 : vector<16x1xf32> to vector<16x32xf32>
    %19 = arith.mulf %14, %18 : vector<16x32xf32>
    %c0_5 = arith.constant 0 : index
    %c0_6 = arith.constant 0 : index
    %20 = vector.load %arg2[%c0_5, %c0_6] : memref<1x32xf32, #tpu.memory_space<vmem>>, vector<1x32xf32>
    %21 = vector.broadcast %20 : vector<1x32xf32> to vector<16x32xf32>
    %22 = arith.mulf %19, %21 : vector<16x32xf32>
    %c0_7 = arith.constant 0 : index
    %c0_8 = arith.constant 0 : index
    %23 = vector.load %arg3[%c0_7, %c0_8] : memref<1x32xf32, #tpu.memory_space<vmem>>, vector<1x32xf32>
    %24 = vector.broadcast %23 : vector<1x32xf32> to vector<16x32xf32>
    %25 = arith.addf %22, %24 : vector<16x32xf32>
    %c0_9 = arith.constant 0 : index
    %c0_10 = arith.constant 0 : index
    %26 = vector.load %arg4[%c0_9, %c0_10] : memref<16x32xf32, #tpu.memory_space<vmem>>, vector<16x32xf32>
    tpu.vector_store %arg4[%c0_9, %c0_10], %25 {strides = array<i32>} : memref<16x32xf32, #tpu.memory_space<vmem>>, vector<16x32xf32>,
    return
  }
  func.func @transform_0(%arg0: i32) -> (i32, i32) {
    %c0_i32 = arith.constant 0 : i32
    %c0_i32_0 = arith.constant 0 : i32
    return %arg0, %c0_i32 : i32, i32
  }
  func.func @transform_1(%arg0: i32) -> (i32, i32) {
    %c0_i32 = arith.constant 0 : i32
    %c0_i32_0 = arith.constant 0 : i32
    %c0_i32_1 = arith.constant 0 : i32
    return %c0_i32, %c0_i32_0 : i32, i32
  }
  func.func @transform_2(%arg0: i32) -> (i32, i32) {
    %c0_i32 = arith.constant 0 : i32
    %c0_i32_0 = arith.constant 0 : i32
    %c0_i32_1 = arith.constant 0 : i32
    return %c0_i32, %c0_i32_0 : i32, i32
  }
  func.func @transform_3(%arg0: i32) -> (i32, i32) {
    %c0_i32 = arith.constant 0 : i32
    %c0_i32_0 = arith.constant 0 : i32
    return %arg0, %c0_i32 : i32, i32
  }
}

</mosaic_0001>

<bundles_post_ra>
// kernel: decoder_base_forward.17
= control target key start
LH: loop header
LB: loop body
LE: loop exit
PB: predicated region body
PF: predicated region fallthrough
CT: control target
= control target key end

     0   :  { %8 = vsyncpa [#allocation4], 0  ;;  %s401_s0 = inlined_call_operand.hbm [shape: bf16[16,32], index: 0, kind: input, shape index: {}]   ;;  %s402_s1 = inlined_call_operand.hbm [shape: bf16[32,96], index: 1, kind: input, shape index: {}]   ;;  %s403_s2 = inlined_call_operand.hbm [shape: f32[1,96], index: 2, kind: input, shape index: {}]   ;;  %s404_s3 = inlined_call_operand.hbm [shape: bf16[16,96], index: 3, kind: output, shape index: {}]  }
   0x1   :  { %9 = vsyncpa [#allocation7], 0 }
   0x2   :  { %10 = vsyncpa [#allocation5], 0  ;;  %s305_s12 = smov [#allocation6]   ;;  %s306_s14 = smov [#allocation3]  }
   0x3   :  { %s28_s13 = sshll.u32 %s305_s12, 4  ;;  %s16_s15 = sshll.u32 %s306_s14, 4  ;;  %s29_s13 = int_to_ptr.vmem [resolvable:$true] %s28_s13  ;;  %s333_s15 = int_to_ptr.vmem [resolvable:$true] %s16_s15 }
   0x4   :  { %s211_s18 = scalar_lea.hbm %s402_s1, 256 }
   0x5   :  { %p212_p0 = scmp.ne.s32.totalorder %s402_s1, %s211_s18  ;;  %p215_p1 = scmp.lt.u32.totalorder %s211_s18, %s402_s1 }
   0x7   :  { %p217_p2 = pnand %p215_p1, %p212_p0 }
   0x9   :  { %220 = shalt.err (!%p217_p2)
}
   0xa   :  { %s221_s23 = scalar_lea.vmem %s29_s13, 256  ;;  %p226_p4 = scmp.lt.s32.totalorder %s29_s13, %s29_s13 }
   0xb   :  { %p222_p3 = scmp.ne.s32.totalorder %s29_s13, %s221_s23  ;;  %p227_p5 = scmp.lt.s32.totalorder %s221_s23, %s221_s23 }
   0xd   :  { %p228_p6 = por %p227_p5, %p226_p4 }
   0xf   :  { %p229_p7 = pnand %p228_p6, %p222_p3 }
  0x11   :  { %232 = shalt.err (!%p229_p7)
}
  0x12   :  { %s307_s24 = smov 64   ;;  %s308_s25 = smov 4  }
  0x13   :  { %34 = dma.hbm_to_vmem [thread:$0]  %s402_s1, 256, %s29_s13, [#allocation7], %s307_s24, %s307_s24, %s308_s25  }
  0x14   :  { %s233_s30 = scalar_lea.hbm %s401_s0, 128 }
  0x15   :  { %p234_p8 = scmp.ne.s32.totalorder %s401_s0, %s233_s30  ;;  %p237_p9 = scmp.lt.u32.totalorder %s233_s30, %s401_s0 }
  0x17   :  { %p239_p10 = pnand %p237_p9, %p234_p8 }
  0x19   :  { %242 = shalt.err (!%p239_p10)
}
  0x1a   :  { %s243_s8 = scalar_lea.vmem %s333_s15, 128  ;;  %p248_p12 = scmp.lt.s32.totalorder %s333_s15, %s333_s15 }
  0x1b   :  { %p244_p11 = scmp.ne.s32.totalorder %s333_s15, %s243_s8  ;;  %p249_p13 = scmp.lt.s32.totalorder %s243_s8, %s243_s8 }
  0x1d   :  { %p250_p0 = por %p249_p13, %p248_p12 }
  0x1f   :  { %p251_p1 = pnand %p250_p0, %p244_p11 }
  0x21   :  { %254 = shalt.err (!%p251_p1)
}
  0x22   :  { %22 = dma.hbm_to_vmem [thread:$0]  %s401_s0, 128, %s333_s15, [#allocation4], %s307_s24, %s307_s24, %s308_s25  }
  0x23   :  { %s309_s10 = smov [#allocation8]   ;;  %s255_s14 = scalar_lea.hbm %s403_s2, 16 }
  0x24   :  { %s41_s11 = sshll.u32 %s309_s10, 4  ;;  %p256_p2 = scmp.ne.s32.totalorder %s403_s2, %s255_s14  ;;  %s42_s11 = int_to_ptr.vmem [resolvable:$true] %s41_s11 }
  0x25   :  { %p259_p3 = scmp.lt.u32.totalorder %s255_s14, %s403_s2 }
  0x27   :  { %p261_p4 = pnand %p259_p3, %p256_p2 }
  0x29   :  { %264 = shalt.err (!%p261_p4)
}
  0x2a   :  { %s265_s20 = scalar_lea.vmem %s42_s11, 16  ;;  %s269_s0 = scalar_lea.vmem %s42_s11, 32 }
  0x2b   :  { %p266_p5 = scmp.ne.s32.totalorder %s42_s11, %s265_s20  ;;  %p270_p6 = scmp.lt.s32.totalorder %s42_s11, %s42_s11 }
  0x2c   :  { %p271_p7 = scmp.lt.s32.totalorder %s269_s0, %s265_s20 }
  0x2e   :  { %p272_p8 = por %p271_p7, %p270_p6 }
  0x30   :  { %p273_p9 = pnand %p272_p8, %p266_p5 }
  0x32   :  { %276 = shalt.err (!%p273_p9)
}
  0x33   :  { %44 = dma.hbm_to_vmem [thread:$0]  %s403_s2, 16, %s42_s11, [#allocation7]  }
  0x34   :  { %299 = dma.done.wait [#allocation4], 128  }
  0x35   :  { %300 = vsyncadd [#allocation4], 4294967168 }
  0x36   :  { %301 = dma.done.wait [#allocation7], 272  }
  0x37   :  { %302 = vsyncadd [#allocation7], 4294967024  ;;  %vm59_vm0 = vcmask 785408   ;;  %v310_v0 = vmov 0.0   ;;  %vm311_vm1 = vmmov 0   ;;  %v208_v1 = vld [vmem:[#allocation6] sm:$0xff]  }
  0x38   :  { %60 = vst.msk [vmem:[#allocation2] sm:$0xff] %vm59_vm0, %v310_v0  ;;  %61 = vst.msk [vmem:[#allocation2 + $0x8] sm:$0xff] %vm59_vm0, %v310_v0  ;;  %192 = vmatprep.subr.bf16.mxu0 %v310_v0  ;;  %196 = vmatprep.mubr.msk.bf16.mxu0 %vm311_vm1, %v310_v0  ;;  %v209_v2 = vld [vmem:[#allocation6 + $0x8] sm:$0xff]   ;;  %v210_v3 = vld [vmem:[#allocation3] sm:$0xff]   ;;  %vm87_vm2 = vcmask 261120   ;;  %vm159_vm3 = vcmask 781312  }
  0x39   :  { %193 = vmatpush3.bf16.msra.mxu0 %v208_v1  ;;  %v184_v12 = vld [vmem:[#allocation8] ss:$0 sm:$0xff]  ;;  %s312_s2 = smov [#allocation9]  }
  0x3a   :  { %194 = vmatprep.subr.bf16.mxu0 %v310_v0  ;;  %s167_s22 = sshll.u32 %s312_s2, 4  ;;  %s168_s22 = int_to_ptr.vmem [resolvable:$true] %s167_s22 }
  0x3b   :  { %s277_s23 = scalar_lea.vmem %s168_s22, 128  ;;  %p282_p11 = scmp.lt.s32.totalorder %s168_s22, %s168_s22 }
  0x3c   :  { %p278_p10 = scmp.ne.s32.totalorder %s168_s22, %s277_s23  ;;  %p283_p12 = scmp.lt.s32.totalorder %s277_s23, %s277_s23 }
  0x3d   :  { %195 = vmatpush3.bf16.msra.mxu0 %v209_v2 }
  0x3e   :  { %p284_p13 = por %p283_p12, %p282_p11 }
  0x3f   :  { %v62_v4 = vld [vmem:[#allocation2] sm:$0xff]  ;;  %v63_v6 = vld [vmem:[#allocation2 + $0x8] sm:$0xff] }
  0x40   :  { %197 = vmatmul.mubr.msk.bf16.vlgmr.msra.gmra.mrb[0].mxu0 %vm87_vm2, %v210_v3  ;;  %p285_p0 = pnand %p284_p13, %p278_p10 }
 0x113   :  { %v125_v5 = vpop.f32.mrb[0].mxu0 }
 0x114   :  { %v132_v7 = vadd.f32 %v125_v5, %v62_v4  ;;  %v198_v8 = vpop.f32.mrb[1].mxu0 }
 0x115   :  { %v128_v9 = vpop.f32.mrb[2].mxu0 }
 0x116   :  { %135 = vst.msk [vmem:[#allocation2] sm:$0xff] %vm59_vm0, %v132_v7  ;;  %v133_v10 = vadd.f32 %v128_v9, %v63_v6  ;;  %v199_v11 = vpop.f32.mrb[3].mxu0 }
 0x118   :  { %136 = vst.msk [vmem:[#allocation2 + $0x8] sm:$0xff] %vm59_vm0, %v133_v10 }
 0x11d   :  { %v140_v13 = vld [vmem:[#allocation2] sm:$0xff] }
 0x11e   :  { %v149_v14 = vadd.f32 %v184_v12, %v140_v13 }
 0x11f   :  { %v141_v15 = vld [vmem:[#allocation2 + $0x8] sm:$0xff] }
 0x120   :  { %v150_v16 = vadd.f32 %v184_v12, %v141_v15  ;;  %v187_v17 = vpack.c.bf16 %v149_v14, %v149_v14 }
 0x122   :  { %v188_v18 = vpack.c.bf16 %v150_v16, %v150_v16  ;;  %160 = vst.msk [vmem:[#allocation9] sm:$0xf] %vm159_vm3, %v187_v17 }
 0x124   :  { %161 = vst.msk [vmem:[#allocation9 + $0x4] sm:$0xf] %vm159_vm3, %v188_v18 }
 0x125   :  { %288 = shalt.err (!%p285_p0)
}
 0x126   :  { %s289_s28 = scalar_lea.hbm %s404_s3, 128 }
 0x127   :  { %p290_p1 = scmp.ne.s32.totalorder %s404_s3, %s289_s28  ;;  %p293_p2 = scmp.lt.u32.totalorder %s289_s28, %s404_s3 }
 0x129   :  { %p295_p3 = pnand %p293_p2, %p290_p1 }
 0x12b   :  { %298 = shalt.err (!%p295_p3)
}
 0x12c   :  { %173 = dma.vmem_to_hbm [thread:$0]  %s168_s22, 128, %s404_s3, [#allocation5], %s307_s24, %s307_s24, %s308_s25  }
 0x12d   :  { %303 = dma.done.wait [#allocation5], 128  }
 0x12e   :  { %304 = vsyncadd [#allocation5], 4294967168 }
 0x12f   :  { %177 = vsyncpa [#allocation4], 1 }
 0x130   :  { %178 = vsyncpa [#allocation7], 1 }
 0x131   :  { %179 = vsyncpa [#allocation5], 1 }

// kernel: decoder_base_forward.18
= control target key start
LH: loop header
LB: loop body
LE: loop exit
PB: predicated region body
PF: predicated region fallthrough
CT: control target
= control target key end

     0   :  { %s1187_s0 = inlined_call_operand.hbm [shape: bf16[8,8,8], index: 0, kind: input, shape index: {}]   ;;  %s1188_s1 = inlined_call_operand.hbm [shape: bf16[8,8,8], index: 1, kind: input, shape index: {}]   ;;  %s1189_s2 = inlined_call_operand.hbm [shape: bf16[8,8,8], index: 2, kind: input, shape index: {}]   ;;  %s1190_s3 = inlined_call_operand.hbm [shape: bf16[8,8,8], index: 3, kind: output, shape index: {}]  }
   0x1   :  { %1196 = sst [smem:[#allocation18_spill]] %s1188_s1 }
   0x2   :  { %8 = vsyncpa [#allocation6], 0 }
   0x3   :  { %10 = vsyncpa [#allocation6 + $0x1], 0 }
   0x4   :  { %11 = vsyncpa [#allocation9], 0 }
   0x5   :  { %13 = vsyncpa [#allocation9 + $0x1], 0 }
   0x6   :  { %14 = vsyncpa [#allocation7], 0 }
   0x7   :  { %16 = vsyncpa [#allocation7 + $0x1], 0  ;;  %s914_s12 = smov 0   ;;  %s916_s13 = smov 0  }
   0x8   :  { %s918_s14 = smov 0   ;;  %s920_s15 = smov 0  }
   0x9   :  { %s922_s16 = smov 0   ;;  %s924_s17 = smov 0  }
   0xa LB: > { %1197 = sst [smem:[#allocation15_spill]] %s880_s16  ;;  %s945_s18 = sadd.s32 4294967295, %s884_s17   ;;  %s884_s17 = sphi %s924_s17, %s22_s17   ;;  %s880_s16 = sphi %s922_s16, %s1217_s16   ;;  %s876_s15 = sphi %s920_s15, %s1216_s15   ;;  %s872_s14 = sphi %s918_s14, %s1220_s14   ;;  %s868_s13 = sphi %s916_s13, %s1219_s13   ;;  %s864_s12 = sphi %s914_s12, %s1218_s12  }
   0xb   : > { %s588_s19 = sadd.s32 4294967294, %s884_s17   ;;  %s41_s20 = sadd.s32 1, %s880_s16 }
   0xc   : > { %s50_s21 = sadd.s32 1, %s872_s14  ;;  %p43_p0 = scmp.ge.s32.totalorder %s41_s20, 8 }
   0xd   : > { %p57_p1 = scmp.ne.s32.totalorder %s872_s14, %s868_s13  ;;  %p58_p2 = scmp.eq.s32.totalorder %s884_s17, 0 }
   0xe   : > { %p63_p3 = scmp.ne.s32.totalorder %s868_s13, %s864_s12  ;;  %s1222_s20 = smov (%p43_p0, %s41_s20), 0 }
   0xf   : > { %1198 = sst [smem:[#allocation16_spill]] %s1222_s20  ;;  %p957_p4 = por %p58_p2, %p57_p1 }
  0x10   : > { %p64_p5 = scmp.eq.s32.totalorder %s945_s18, 0  ;;  %s45_s23 = ssub.s32 %s880_s16, %s1222_s20 }
  0x11   : > { %p145_p6 = scmp.eq.s32.totalorder %s945_s18, 7  ;;  %p48_p7 = scmp.eq.s32.totalorder %s45_s23, 0 }
  0x12   : > { %p965_p8 = por %p64_p5, %p63_p3  ;;  %p151_p10 = scmp.eq.s32.totalorder %s588_s19, 7 }
  0x13   : > { %p969_p9 = por %p145_p6, %p57_p1  ;;  %p646_p12 = scmp.lt.s32.totalorder %s884_s17, 8 }
  0x14   : > { %s1200_s24 = scalar_select %p965_p8, 1, 0 }
  0x15   : > { %s1201_s25 = scalar_select %p969_p9, 1, 0 }
  0x16   : > { %s974_s26 = scalar_select %p48_p7, %s872_s14, %s50_s21  }
  0x17   : > { %p976_p11 = por %p151_p10, %p63_p3  ;;  %s171_s28 = sand.u32 1, %s872_s14  }
  0x18   : > { %1202 = sst [smem:[#allocation17_spill]] %s974_s26  ;;  %s984_s29 = sshll.u32 %s171_s28, 2 }
  0x19   : > { %s1203_s27 = scalar_select %p976_p11, 1, 0 }
  0x1a   : > { %s987_s30 = sshll.u32 %s880_s16, 6  ;;  %p991_p13 = pnand %p646_p12, %p957_p4 }
  0x1b   : > { %s190_s5 = sand.u32 1, %s884_s17   ;;  %s1205_s1 = sld [smem:[#allocation18_spill]] }
  0x1c   : > { %s1204_s4 = scalar_select %p991_p13, 1, 0 }
  0x1d   : > { %s194_s9 = scalar_lea.vmem [#allocation8], %s984_s29  ;;  %s1007_s11 = scalar_lea.sflag [#allocation9], %s190_s5 }
  0x1e   : > { %s202_s10 = sshll.u32 %s194_s9, 4  ;;  %p1013_p3 = pneg %p991_p13  ;;  %s1004_s10 = int_to_ptr.vmem [resolvable:$true] %s202_s10 }
  0x21   : > { %s1000_s8 = scalar_lea.hbm %s1205_s1, %s987_s30  ;;  %s713_s6 = scalar_lea.hbm %s1205_s1, 512 }
  0x22   : > { %s708_s19 = scalar_lea.hbm %s1000_s8, 64  ;;  %p714_p6 = scmp.lt.u32.totalorder %s1000_s8, %s1205_s1 }
  0x23   : > { %p709_p2 = scmp.ne.s32.totalorder %s1000_s8, %s708_s19  ;;  %p715_p7 = scmp.lt.u32.totalorder %s713_s6, %s708_s19 }
  0x24   : > { %p717_p12 = scmp.lt.u32.totalorder %s708_s19, %s1000_s8 }
  0x25   : > { %p711_p4 = pnand %p1013_p3, %p709_p2  ;;  %p716_p10 = por %p715_p7, %p714_p6 }
  0x27   : > { %p712_p5 = pneg %p711_p4  ;;  %p718_p0 = por %p717_p12, %p716_p10 }
  0x29   : > { %p719_p1 = pnand %p718_p0, %p712_p5 }
  0x2b   : > { %722 = shalt.err (!%p719_p1)
}
  0x2c   : > { %s723_s5 = scalar_lea.vmem %s1004_s10, 64  ;;  %s886_s22 = smov [#allocation8]  }
  0x2d   : > { %p724_p2 = scmp.ne.s32.totalorder %s1004_s10, %s723_s5  ;;  %s728_s23 = sshll.u32 %s886_s22, 4  ;;  %s729_s23 = int_to_ptr.vmem [resolvable:$false] %s728_s23 }
  0x2e   : > { %s730_s7 = scalar_lea.vmem %s729_s23, 128  ;;  %p731_p9 = scmp.lt.s32.totalorder %s1004_s10, %s729_s23 }
  0x2f   : > { %p726_p4 = pnand %p724_p2, %p1013_p3  ;;  %p732_p8 = scmp.lt.s32.totalorder %s730_s7, %s723_s5 }
  0x31   : > { %p727_p11 = pneg %p726_p4  ;;  %p733_p6 = por %p732_p8, %p731_p9 }
  0x33   : > { %p734_p7 = pnand %p733_p6, %p727_p11 }
  0x35   : > { %737 = shalt.err (!%p734_p7)
}
  0x36   : > { %638 = dma.hbm_to_vmem [thread:$0]  (!%p991_p13), %s1000_s8, 64, %s1004_s10, %s1007_s11  }
  0x37   : > { %p1207_p0 = scmp.lt.s32.totalorder %s884_s17, 9  ;;  %p1208_p1 = scmp.ge.s32.totalorder %s884_s17, 1 }
  0x38   : > { %s1049_s5 = scalar_lea.hbm %s1187_s0, %s987_s30  ;;  %s175_s22 = scalar_lea.vmem [#allocation5], %s984_s29 }
  0x39   : > { %p1041_p5 = pnand %p1208_p1, %p1207_p0  ;;  %s183_s23 = sshll.u32 %s175_s22, 4  ;;  %s1052_s23 = int_to_ptr.vmem [resolvable:$true] %s183_s23 }
  0x3a   : > { %s1058_s7 = scalar_lea.hbm %s1189_s2, %s987_s30  ;;  %s172_s1 = scalar_lea.sflag [#allocation6], %s171_s28 }
  0x3b   : > { %s1209_s19 = scalar_select %p1041_p5, 1, 0 }
  0x3c   : > { %s738_s20 = scalar_lea.hbm %s1049_s5, 64  ;;  %s743_s16 = scalar_lea.hbm %s1187_s0, 512 }
  0x3d   : > { %p739_p8 = scmp.ne.s32.totalorder %s1049_s5, %s738_s20  ;;  %p744_p10 = scmp.lt.u32.totalorder %s1049_s5, %s1187_s0 }
  0x3e   : > { %p745_p12 = scmp.lt.u32.totalorder %s743_s16, %s738_s20  ;;  %p747_p4 = scmp.lt.u32.totalorder %s738_s20, %s1049_s5 }
  0x3f   : > { %p741_p9 = pnand %p739_p8, %p1013_p3 }
  0x40   : > { %p746_p2 = por %p745_p12, %p744_p10 }
  0x41   : > { %p742_p11 = pneg %p741_p9 }
  0x42   : > { %p748_p6 = por %p747_p4, %p746_p2 }
  0x44   : > { %p749_p7 = pnand %p748_p6, %p742_p11 }
  0x46   : > { %752 = shalt.err (!%p749_p7)
}
  0x47   : > { %s753_s28 = scalar_lea.vmem %s1052_s23, 64  ;;  %s887_s30 = smov [#allocation5]  }
  0x48   : > { %p754_p0 = scmp.ne.s32.totalorder %s1052_s23, %s753_s28  ;;  %s758_s8 = sshll.u32 %s887_s30, 4  ;;  %s759_s8 = int_to_ptr.vmem [resolvable:$false] %s758_s8 }
  0x49   : > { %s760_s26 = scalar_lea.vmem %s759_s8, 128  ;;  %p761_p9 = scmp.lt.s32.totalorder %s1052_s23, %s759_s8 }
  0x4a   : > { %p756_p1 = pnand %p754_p0, %p1013_p3  ;;  %p762_p5 = scmp.lt.s32.totalorder %s760_s26, %s753_s28 }
  0x4c   : > { %p757_p8 = pneg %p756_p1  ;;  %p763_p10 = por %p762_p5, %p761_p9 }
  0x4e   : > { %p764_p12 = pnand %p763_p10, %p757_p8 }
  0x50   : > { %767 = shalt.err (!%p764_p12)
}
  0x51   : > { %635 = dma.hbm_to_vmem [thread:$0]  (!%p991_p13), %s1049_s5, 64, %s1052_s23, %s172_s1  }
  0x52   : > { %s213_s16 = scalar_lea.vmem [#allocation10], %s984_s29  ;;  %s768_s10 = scalar_lea.hbm %s1058_s7, 64 }
  0x53   : > { %s221_s20 = sshll.u32 %s213_s16, 4  ;;  %p769_p11 = scmp.ne.s32.totalorder %s1058_s7, %s768_s10  ;;  %s222_s20 = int_to_ptr.vmem [resolvable:$true] %s221_s20 }
  0x54   : > { %s773_s22 = scalar_lea.hbm %s1189_s2, 512  ;;  %p774_p4 = scmp.lt.u32.totalorder %s1058_s7, %s1189_s2 }
  0x55   : > { %p771_p5 = pnand %p769_p11, %p1013_p3  ;;  %p775_p6 = scmp.lt.u32.totalorder %s773_s22, %s768_s10 }
  0x56   : > { %p777_p0 = scmp.lt.u32.totalorder %s768_s10, %s1058_s7 }
  0x57   : > { %p772_p2 = pneg %p771_p5  ;;  %p776_p7 = por %p775_p6, %p774_p4 }
  0x59   : > { %p778_p1 = por %p777_p0, %p776_p7 }
  0x5b   : > { %p779_p8 = pnand %p778_p1, %p772_p2 }
  0x5d   : > { %782 = shalt.err (!%p779_p8)
}
  0x5e   : > { %s783_s1 = scalar_lea.vmem %s222_s20, 64  ;;  %s888_s29 = smov [#allocation10]  }
  0x5f   : > { %p784_p9 = scmp.ne.s32.totalorder %s222_s20, %s783_s1  ;;  %s788_s5 = sshll.u32 %s888_s29, 4  ;;  %s789_s5 = int_to_ptr.vmem [resolvable:$false] %s788_s5 }
  0x60   : > { %s790_s23 = scalar_lea.vmem %s789_s5, 128  ;;  %p791_p11 = scmp.lt.s32.totalorder %s222_s20, %s789_s5 }
  0x61   : > { %p786_p10 = pnand %p784_p9, %p1013_p3  ;;  %p792_p5 = scmp.lt.s32.totalorder %s790_s23, %s783_s1 }
  0x63   : > { %p787_p12 = pneg %p786_p10  ;;  %p793_p13 = por %p792_p5, %p791_p11 }
  0x65   : > { %p794_p4 = pnand %p793_p13, %p787_p12 }
  0x67   : > { %797 = shalt.err (!%p794_p4)
}
  0x68   : > { %p1210_p6 = scmp.ne.s32.totalorder %s1204_s4, 0  ;;  %p1211_p2 = scmp.ne.s32.totalorder %s1209_s19, 0 }
  0x69   : > { %s1105_s21 = sand.u32 (!%p1211_p2), 1, %s868_s13   ;;  %p1212_p13 = scmp.ne.s32.totalorder (!%p1211_p2), %s1200_s24, 0 }
  0x6a   : > { %641 = dma.hbm_to_vmem [thread:$0]  (!%p1210_p6), %s1058_s7, 64, %s222_s20, %s1007_s11  }
  0x6b   : > { %230 = sbr.rel (%p1211_p2) target bundleno = 938 (0x3aa), region = 32  ;;  %s1108_s8 = sshll.u32 (!%p1211_p2), %s1105_s21, 2 }
  0x6c   : > { %s233_s26 = scalar_lea.sflag (!%p1211_p2), [#allocation6], %s1105_s21  ;;  %s236_s16 = scalar_lea.vmem (!%p1211_p2), [#allocation5], %s1108_s8 }
  0x72   : > { %851 = dma.done.wait (%p1212_p13), %s233_s26, 64  }
  0x73   : > { %853 = vsyncadd (%p1212_p13), %s233_s26, 4294967232  ;;  %s241_s4 = sand.u32 1, %s945_s18   ;;  %s245_s19 = scalar_lea.vmem [#allocation8], %s1108_s8 }
  0x74   : > { %s242_s11 = scalar_lea.sflag [#allocation9], %s241_s4 }
  0x75   : > { %855 = dma.done.wait (%p1212_p13), %s242_s11, 128  }
  0x76   : > { %857 = vsyncadd (%p1212_p13), %s242_s11, 4294967168  ;;  %vm295_vm0 = vcmask 64512   ;;  %v889_v0 = vmov 0.0   ;;  %vm890_vm1 = vmmov 0   ;;  %v298_v1 = vld [vmem:[%s245_s19] sm:$0xf] }
  0x77   : > { %612 = vmatprep.subr.bf16.mxu0 %v889_v0  ;;  %296 = vst.msk [vmem:[#allocation4] sm:$0xff] %vm295_vm0, %v889_v0  ;;  %614 = vmatprep.mubr.msk.bf16.mxu0 %vm890_vm1, %v889_v0  ;;  %v304_v2 = vsel %vm295_vm0, %v298_v1, 0  ;;  %v297_v3 = vld [vmem:[%s236_s16] sm:$0xf]  ;;  %vm292_vm2 = vcmask 7168   ;;  %v891_v4 = vmov -inf  }
  0x78   : > { %618 = vmatprep.subr.bf16.mxu1 %v889_v0  ;;  %620 = vmatprep.mubr.msk.bf16.mxu1 %vm890_vm1, %v889_v0  ;;  %293 = vst.msk [vmem:[#allocation2] sm:$0xff] %vm292_vm2, %v891_v4  ;;  %294 = vst.msk [vmem:[#allocation3] sm:$0xff] %vm292_vm2, %v889_v0  ;;  %v892_v10 = vmov 0   ;;  %vm382_vm3 = vcmask 1043456   ;;  %s254_s18 = scalar_lea.vmem [#allocation10], %s1108_s8  ;;  %s605_s24 = sshll.u32 %s876_s15, 6 }
  0x79   : > { %613 = vmatpush3.bf16.xpose.msra.mxu0 %v304_v2  ;;  %700 = vset.pattern.permute.xlu0 %v892_v10  ;;  %v378_v15 = vld [vmem:[%s254_s18] sm:$0xf]  ;;  %s286_s7 = scalar_lea.vmem [#allocation11], %s1108_s8  ;;  %vm442_vm4 = vcmask 60416   ;;  %s1139_s9 = scalar_lea.hbm %s1190_s3, %s605_s24 }
  0x7a   : > { %701 = vset.pattern.permute.xlu1 %v892_v10  ;;  %v384_v16 = vsel %vm382_vm3, %v378_v15, 0  ;;  %s459_s20 = sshll.u32 %s286_s7, 4  ;;  %s445_s22 = scalar_lea.sflag [#allocation7], %s1105_s21  ;;  %s1141_s20 = int_to_ptr.vmem [resolvable:$true] %s459_s20 }
  0x7b   : > { %619 = vmatpush3.bf16.msra.mxu1 %v384_v16  ;;  %s798_s28 = scalar_lea.vmem %s1141_s20, 64  ;;  %p1213_p7 = scmp.ne.s32.totalorder %s1201_s25, 0 }
  0x7c   : > { %p799_p3 = scmp.ne.s32.totalorder %s1141_s20, %s798_s28  ;;  %s893_s15 = smov [#allocation11]  }
  0x7d   : > { %s802_s30 = sshll.u32 %s893_s15, 4  ;;  %s803_s30 = int_to_ptr.vmem [resolvable:$false] %s802_s30 }
  0x7e   : > { %v370_v31 = vld [vmem:[#allocation4] sm:$0xff]  ;;  %p800_p0 = pnand %p799_p3, %p1213_p7  ;;  %s804_s1 = scalar_lea.vmem %s803_s30, 128 }
  0x7f   : > { %v346_v11 = vld [vmem:[#allocation2] sm:$0xff]  ;;  %v362_v25 = vld [vmem:[#allocation3] sm:$0xff]  ;;  %p805_p8 = scmp.lt.s32.totalorder %s1141_s20, %s803_s30  ;;  %p806_p9 = scmp.lt.s32.totalorder %s804_s1, %s798_s28 }
  0x80   : > { %615 = vmatmul.mubr.msk.bf16.vlgmr.msra.gmra.mrb[0].mxu0 %vm295_vm0, %v297_v3  ;;  %p801_p1 = pneg %p800_p0 }
  0x81   : > { %p807_p10 = por %p806_p9, %p805_p8 }
  0x83   : > { %p808_p12 = pnand %p807_p10, %p801_p1 }
 0x153   : > { %v340_v5 = vpop.f32.mrb[0].mxu0 }
 0x154   : > { %v616_v6 = vpop.f32.mrb[1].mxu0  ;;  %v347_v7 = vsel %vm295_vm0, %v340_v5, -inf }
 0x155   : > { %348 = vmax.xlane.f32.xlu0 %v347_v7  ;;  %v343_v8 = vpop.f32.mrb[2].mxu0 }
 0x156   : > { %v617_v9 = vpop.f32.mrb[3].mxu0 }
 0x1e2   : > { %v349_v12 = vpop.xlane.xlu0 %348 }
 0x1e3   : > { %v350_v13 = vmax.f32 %v346_v11, %v349_v12 }
 0x1e5   : > { %v351_v14 = vsub.f32 %v346_v11, %v350_v13  ;;  %428 = vst.msk [vmem:[#allocation2] sm:$0xff] %vm292_vm2, %v350_v13  ;;  %356 = vperm.xlu0 %700, %v350_v13  }
 0x1e7   : > { %v352_v23 = vmul.f32 1.442695, %v351_v14 }
 0x264   : > { %v357_v17 = vpop.permute.xlu0 %356 }
 0x265   : > { %v359_v18 = vsub.f32 %v340_v5, %v357_v17 }
 0x267   : > { %v360_v19 = vmul.f32 1.442695, %v359_v18 }
 0x269   : > { %702 = vpow2.f32 %v360_v19 }
 0x26a   : > { %704 = vpow2.f32 %v352_v23 }
 0x273   : > { %v703_v20 = vpop.eup %702 }
 0x274   : > { %v364_v21 = vsel %vm295_vm0, %v703_v20, 0.0  ;;  %v377_v22 = vpack.c.bf16 %v703_v20, %v703_v20  ;;  %v705_v24 = vpop.eup %704 }
 0x275   : > { %365 = vadd.xlane.f32.xlu1 %v364_v21  ;;  %v363_v26 = vmul.f32 %v705_v24, %v362_v25 }
 0x276   : > { %621 = vmatmul.mubr.msk.bf16.vlgmr.msra.gmra.mrb[0].mxu1 %vm295_vm0, %v377_v22 }
 0x286   : > { %373 = vperm.xlu1 %701, %v705_v24  }
 0x302   : > { %v366_v27 = vpop.xlane.xlu1 %365 }
 0x303   : > { %v367_v28 = vadd.f32 %v366_v27, %v363_v26 }
 0x305   : > { %369 = vst.msk [vmem:[#allocation3] sm:$0xff] %vm292_vm2, %v367_v28 }
 0x306   : > { %v374_v32 = vpop.permute.xlu1 %373 }
 0x307   : > { %v376_v33 = vmul.f32 %v374_v32, %v370_v31 }
 0x30c   : > { %v433_v29 = vld [vmem:[#allocation3] sm:$0xff] }
 0x30d   : > { %706 = vrcp.f32 %v433_v29 }
 0x317   : > { %v707_v30 = vpop.eup %706 }
 0x318   : > { %437 = vperm.xlu1 %701, %v707_v30  }
 0x349   : > { %v420_v34 = vpop.f32.mrb[0].mxu1 }
 0x34a   : > { %v426_v35 = vadd.f32 %v420_v34, %v376_v33  ;;  %v622_v36 = vpop.f32.mrb[1].mxu1 }
 0x34b   : > { %v423_v37 = vpop.f32.mrb[2].mxu1 }
 0x34c   : > { %427 = vst.msk [vmem:[#allocation4] sm:$0xff] %vm295_vm0, %v426_v35  ;;  %v623_v38 = vpop.f32.mrb[3].mxu1 }
 0x353   : > { %v432_v39 = vld [vmem:[#allocation4] sm:$0xff] }
 0x397   : > { %v438_v40 = vpop.permute.xlu1 %437 }
 0x398   : > { %v440_v41 = vmul.f32 %v438_v40, %v432_v39 }
 0x39a   : > { %v441_v42 = vpack.c.bf16 %v440_v41, %v440_v41 }
 0x39c   : > { %443 = vst.msk [vmem:[%s286_s7] sm:$0xf] %vm442_vm4, %v441_v42 }
 0x39d   : > { %811 = shalt.err (!%p808_p12)
}
 0x39e   : > { %s812_s29 = scalar_lea.hbm %s1139_s9, 64  ;;  %s816_s21 = scalar_lea.hbm %s1190_s3, 512 }
 0x39f   : > { %p813_p11 = scmp.ne.s32.totalorder %s1139_s9, %s812_s29  ;;  %p817_p6 = scmp.lt.u32.totalorder %s1139_s9, %s1190_s3 }
 0x3a0   : > { %p818_p2 = scmp.lt.u32.totalorder %s816_s21, %s812_s29  ;;  %p820_p3 = scmp.lt.u32.totalorder %s812_s29, %s1139_s9 }
 0x3a1   : > { %p814_p5 = pnand %p813_p11, %p1213_p7 }
 0x3a2   : > { %p819_p13 = por %p818_p2, %p817_p6 }
 0x3a3   : > { %p815_p4 = pneg %p814_p5 }
 0x3a4   : > { %p821_p0 = por %p820_p3, %p819_p13 }
 0x3a6   : > { %p822_p1 = pnand %p821_p0, %p815_p4 }
 0x3a8   : > { %825 = shalt.err (!%p822_p1)
}
 0x3a9   : > { %630 = dma.vmem_to_hbm [thread:$0]  (%p1213_p7), %s1141_s20, 64, %s1139_s9, %s445_s22  }
 0x3aa PF: > { %p647_p8 = scmp.ge.s32.totalorder %s884_s17, 2  ;;  %s471_s16 = sand.u32 1, %s864_s12  }
 0x3ab   : > { %p1214_p9 = scmp.ne.s32.totalorder %s1203_s27, 0  ;;  %s472_s4 = scalar_lea.sflag [#allocation7], %s471_s16 }
 0x3ad   : > { %p643_p10 = pnand %p647_p8, %p1214_p9 }
 0x3af   : > { %859 = dma.done.wait (!%p643_p10), %s472_s4, 64  }
 0x3b0   : > { %861 = vsyncadd (!%p643_p10), %s472_s4, 4294967232  ;;  %s22_s17 = sadd.s32 1, %s884_s17   ;;  %s1215_s25 = sld [smem:[#allocation17_spill]] }
 0x3b1   : > { %p19_p12 = scmp.ge.s32.totalorder %s22_s17, 10   ;;  %s1216_s15 = sld [smem:[#allocation15_spill]] }
 0x3b2   : > { %s1217_s16 = sld [smem:[#allocation16_spill]]  ;;  %s1218_s12 = smov %s868_s13 }
 0x3b3   : > { %s1219_s13 = smov %s872_s14  ;;  %21 = sbr.rel (!%p19_p12) target bundleno = 10 (0xa), region = 109 }
 0x3b6   : > { %s1220_s14 = smov %s1215_s25 }
 0x3ba   :  { %477 = vsyncpa [#allocation6], 1 }
 0x3bb   :  { %479 = vsyncpa [#allocation6 + $0x1], 1 }
 0x3bc   :  { %480 = vsyncpa [#allocation9], 1 }
 0x3bd   :  { %482 = vsyncpa [#allocation9 + $0x1], 1 }
 0x3be   :  { %483 = vsyncpa [#allocation7], 1 }
 0x3bf   :  { %485 = vsyncpa [#allocation7 + $0x1], 1 }

// kernel: decoder_base_forward.20
= control target key start
LH: loop header
LB: loop body
LE: loop exit
PB: predicated region body
PF: predicated region fallthrough
CT: control target
= control target key end

     0   :  { %8 = vsyncpa [#allocation4], 0  ;;  %s401_s0 = inlined_call_operand.hbm [shape: bf16[16,32], index: 0, kind: input, shape index: {}]   ;;  %s402_s1 = inlined_call_operand.hbm [shape: bf16[32,32], index: 1, kind: input, shape index: {}]   ;;  %s403_s2 = inlined_call_operand.hbm [shape: f32[1,32], index: 2, kind: input, shape index: {}]   ;;  %s404_s3 = inlined_call_operand.hbm [shape: bf16[16,32], index: 3, kind: output, shape index: {}]  }
   0x1   :  { %9 = vsyncpa [#allocation7], 0 }
   0x2   :  { %10 = vsyncpa [#allocation5], 0  ;;  %s304_s12 = smov [#allocation6]   ;;  %s305_s14 = smov [#allocation3]  }
   0x3   :  { %s28_s13 = sshll.u32 %s304_s12, 4  ;;  %s16_s15 = sshll.u32 %s305_s14, 4  ;;  %s29_s13 = int_to_ptr.vmem [resolvable:$true] %s28_s13  ;;  %s332_s15 = int_to_ptr.vmem [resolvable:$true] %s16_s15 }
   0x4   :  { %s210_s18 = scalar_lea.hbm %s402_s1, 256 }
   0x5   :  { %p211_p0 = scmp.ne.s32.totalorder %s402_s1, %s210_s18  ;;  %p214_p1 = scmp.lt.u32.totalorder %s210_s18, %s402_s1 }
   0x7   :  { %p216_p2 = pnand %p214_p1, %p211_p0 }
   0x9   :  { %219 = shalt.err (!%p216_p2)
}
   0xa   :  { %s220_s23 = scalar_lea.vmem %s29_s13, 256  ;;  %p225_p4 = scmp.lt.s32.totalorder %s29_s13, %s29_s13 }
   0xb   :  { %p221_p3 = scmp.ne.s32.totalorder %s29_s13, %s220_s23  ;;  %p226_p5 = scmp.lt.s32.totalorder %s220_s23, %s220_s23 }
   0xd   :  { %p227_p6 = por %p226_p5, %p225_p4 }
   0xf   :  { %p228_p7 = pnand %p227_p6, %p221_p3 }
  0x11   :  { %231 = shalt.err (!%p228_p7)
}
  0x12   :  { %s306_s24 = smov 64   ;;  %s307_s25 = smov 4  }
  0x13   :  { %34 = dma.hbm_to_vmem [thread:$0]  %s402_s1, 256, %s29_s13, [#allocation7], %s306_s24, %s306_s24, %s307_s25  }
  0x14   :  { %s232_s30 = scalar_lea.hbm %s401_s0, 128 }
  0x15   :  { %p233_p8 = scmp.ne.s32.totalorder %s401_s0, %s232_s30  ;;  %p236_p9 = scmp.lt.u32.totalorder %s232_s30, %s401_s0 }
  0x17   :  { %p238_p10 = pnand %p236_p9, %p233_p8 }
  0x19   :  { %241 = shalt.err (!%p238_p10)
}
  0x1a   :  { %s242_s8 = scalar_lea.vmem %s332_s15, 128  ;;  %p247_p12 = scmp.lt.s32.totalorder %s332_s15, %s332_s15 }
  0x1b   :  { %p243_p11 = scmp.ne.s32.totalorder %s332_s15, %s242_s8  ;;  %p248_p13 = scmp.lt.s32.totalorder %s242_s8, %s242_s8 }
  0x1d   :  { %p249_p0 = por %p248_p13, %p247_p12 }
  0x1f   :  { %p250_p1 = pnand %p249_p0, %p243_p11 }
  0x21   :  { %253 = shalt.err (!%p250_p1)
}
  0x22   :  { %22 = dma.hbm_to_vmem [thread:$0]  %s401_s0, 128, %s332_s15, [#allocation4], %s306_s24, %s306_s24, %s307_s25  }
  0x23   :  { %s308_s10 = smov [#allocation8]   ;;  %s254_s14 = scalar_lea.hbm %s403_s2, 16 }
  0x24   :  { %s41_s11 = sshll.u32 %s308_s10, 4  ;;  %p255_p2 = scmp.ne.s32.totalorder %s403_s2, %s254_s14  ;;  %s42_s11 = int_to_ptr.vmem [resolvable:$true] %s41_s11 }
  0x25   :  { %p258_p3 = scmp.lt.u32.totalorder %s254_s14, %s403_s2 }
  0x27   :  { %p260_p4 = pnand %p258_p3, %p255_p2 }
  0x29   :  { %263 = shalt.err (!%p260_p4)
}
  0x2a   :  { %s264_s20 = scalar_lea.vmem %s42_s11, 16  ;;  %s268_s0 = scalar_lea.vmem %s42_s11, 32 }
  0x2b   :  { %p265_p5 = scmp.ne.s32.totalorder %s42_s11, %s264_s20  ;;  %p269_p6 = scmp.lt.s32.totalorder %s42_s11, %s42_s11 }
  0x2c   :  { %p270_p7 = scmp.lt.s32.totalorder %s268_s0, %s264_s20 }
  0x2e   :  { %p271_p8 = por %p270_p7, %p269_p6 }
  0x30   :  { %p272_p9 = pnand %p271_p8, %p265_p5 }
  0x32   :  { %275 = shalt.err (!%p272_p9)
}
  0x33   :  { %44 = dma.hbm_to_vmem [thread:$0]  %s403_s2, 16, %s42_s11, [#allocation7]  }
  0x34   :  { %298 = dma.done.wait [#allocation4], 128  }
  0x35   :  { %299 = vsyncadd [#allocation4], 4294967168 }
  0x36   :  { %300 = dma.done.wait [#allocation7], 272  }
  0x37   :  { %301 = vsyncadd [#allocation7], 4294967024  ;;  %vm59_vm0 = vcmask 261120   ;;  %v309_v0 = vmov 0.0   ;;  %vm310_vm1 = vmmov 0   ;;  %v207_v1 = vld [vmem:[#allocation6] sm:$0xff]  }
  0x38   :  { %191 = vmatprep.subr.bf16.mxu0 %v309_v0  ;;  %195 = vmatprep.mubr.msk.bf16.mxu0 %vm310_vm1, %v309_v0  ;;  %60 = vst.msk [vmem:[#allocation2] sm:$0xff] %vm59_vm0, %v309_v0  ;;  %61 = vst.msk [vmem:[#allocation2 + $0x8] sm:$0xff] %vm59_vm0, %v309_v0  ;;  %v208_v2 = vld [vmem:[#allocation6 + $0x8] sm:$0xff]   ;;  %v209_v3 = vld [vmem:[#allocation3] sm:$0xff]   ;;  %vm158_vm2 = vcmask 257024   ;;  %s311_s2 = smov [#allocation9]  }
  0x39   :  { %192 = vmatpush3.bf16.msra.mxu0 %v207_v1  ;;  %v183_v12 = vld [vmem:[#allocation8] ss:$0 sm:$0xff]  ;;  %s166_s22 = sshll.u32 %s311_s2, 4  ;;  %s167_s22 = int_to_ptr.vmem [resolvable:$true] %s166_s22 }
  0x3a   :  { %193 = vmatprep.subr.bf16.mxu0 %v309_v0  ;;  %s276_s23 = scalar_lea.vmem %s167_s22, 128  ;;  %p281_p11 = scmp.lt.s32.totalorder %s167_s22, %s167_s22 }
  0x3b   :  { %p277_p10 = scmp.ne.s32.totalorder %s167_s22, %s276_s23  ;;  %p282_p12 = scmp.lt.s32.totalorder %s276_s23, %s276_s23 }
  0x3d   :  { %194 = vmatpush3.bf16.msra.mxu0 %v208_v2  ;;  %p283_p13 = por %p282_p12, %p281_p11 }
  0x3f   :  { %v62_v4 = vld [vmem:[#allocation2] sm:$0xff]  ;;  %v63_v6 = vld [vmem:[#allocation2 + $0x8] sm:$0xff]  ;;  %p284_p0 = pnand %p283_p13, %p277_p10 }
  0x40   :  { %196 = vmatmul.mubr.msk.bf16.vlgmr.msra.gmra.mrb[0].mxu0 %vm59_vm0, %v209_v3 }
 0x113   :  { %v125_v5 = vpop.f32.mrb[0].mxu0 }
 0x114   :  { %v132_v7 = vadd.f32 %v125_v5, %v62_v4  ;;  %v197_v8 = vpop.f32.mrb[1].mxu0 }
 0x115   :  { %v128_v9 = vpop.f32.mrb[2].mxu0 }
 0x116   :  { %134 = vst.msk [vmem:[#allocation2] sm:$0xff] %vm59_vm0, %v132_v7  ;;  %v133_v10 = vadd.f32 %v128_v9, %v63_v6  ;;  %v198_v11 = vpop.f32.mrb[3].mxu0 }
 0x118   :  { %135 = vst.msk [vmem:[#allocation2 + $0x8] sm:$0xff] %vm59_vm0, %v133_v10 }
 0x11d   :  { %v139_v13 = vld [vmem:[#allocation2] sm:$0xff] }
 0x11e   :  { %v148_v14 = vadd.f32 %v183_v12, %v139_v13 }
 0x11f   :  { %v140_v15 = vld [vmem:[#allocation2 + $0x8] sm:$0xff] }
 0x120   :  { %v149_v16 = vadd.f32 %v183_v12, %v140_v15  ;;  %v186_v17 = vpack.c.bf16 %v148_v14, %v148_v14 }
 0x122   :  { %v187_v18 = vpack.c.bf16 %v149_v16, %v149_v16  ;;  %159 = vst.msk [vmem:[#allocation9] sm:$0xf] %vm158_vm2, %v186_v17 }
 0x124   :  { %160 = vst.msk [vmem:[#allocation9 + $0x4] sm:$0xf] %vm158_vm2, %v187_v18 }
 0x125   :  { %287 = shalt.err (!%p284_p0)
}
 0x126   :  { %s288_s28 = scalar_lea.hbm %s404_s3, 128 }
 0x127   :  { %p289_p1 = scmp.ne.s32.totalorder %s404_s3, %s288_s28  ;;  %p292_p2 = scmp.lt.u32.totalorder %s288_s28, %s404_s3 }
 0x129   :  { %p294_p3 = pnand %p292_p2, %p289_p1 }
 0x12b   :  { %297 = shalt.err (!%p294_p3)
}
 0x12c   :  { %172 = dma.vmem_to_hbm [thread:$0]  %s167_s22, 128, %s404_s3, [#allocation5], %s306_s24, %s306_s24, %s307_s25  }
 0x12d   :  { %302 = dma.done.wait [#allocation5], 128  }
 0x12e   :  { %303 = vsyncadd [#allocation5], 4294967168 }
 0x12f   :  { %176 = vsyncpa [#allocation4], 1 }
 0x130   :  { %177 = vsyncpa [#allocation7], 1 }
 0x131   :  { %178 = vsyncpa [#allocation5], 1 }

// kernel: decoder_base_forward.19
= control target key start
LH: loop header
LB: loop body
LE: loop exit
PB: predicated region body
PF: predicated region fallthrough
CT: control target
= control target key end

     0   :  { %11 = vsyncpa [#allocation4], 0  ;;  %s648_s0 = inlined_call_operand.hbm [shape: bf16[16,32], index: 0, kind: input, shape index: {}]   ;;  %s649_s1 = inlined_call_operand.hbm [shape: bf16[32,32], index: 1, kind: input, shape index: {}]   ;;  %s650_s2 = inlined_call_operand.hbm [shape: f32[1,32], index: 2, kind: input, shape index: {}]   ;;  %s651_s3 = inlined_call_operand.hbm [shape: bf16[16,32], index: 3, kind: input, shape index: {}]   ;;  %s652_s4 = inlined_call_operand.hbm [shape: f32[1,32], index: 4, kind: input, shape index: {}]   ;;  %s653_s5 = inlined_call_operand.hbm [shape: f32[1,32], index: 5, kind: input, shape index: {}]   ;;  %s654_s6 = inlined_call_operand.hbm [shape: bf16[16,32], index: 6, kind: output, shape index: {}]  }
   0x1   :  { %12 = vsyncpa [#allocation7], 0 }
   0x2   :  { %13 = vsyncpa [#allocation10], 0 }
   0x3   :  { %14 = vsyncpa [#allocation13], 0 }
   0x4   :  { %15 = vsyncpa [#allocation5], 0  ;;  %s490_s21 = smov [#allocation6]   ;;  %s491_s23 = smov [#allocation9]  }
   0x5   :  { %s33_s22 = sshll.u32 %s490_s21, 4  ;;  %s55_s24 = sshll.u32 %s491_s23, 4  ;;  %s34_s22 = int_to_ptr.vmem [resolvable:$true] %s33_s22  ;;  %s536_s24 = int_to_ptr.vmem [resolvable:$true] %s55_s24 }
   0x6   :  { %s326_s27 = scalar_lea.hbm %s649_s1, 256 }
   0x7   :  { %p327_p0 = scmp.ne.s32.totalorder %s649_s1, %s326_s27  ;;  %p330_p1 = scmp.lt.u32.totalorder %s326_s27, %s649_s1 }
   0x9   :  { %p332_p2 = pnand %p330_p1, %p327_p0 }
   0xb   :  { %335 = shalt.err (!%p332_p2)
}
   0xc   :  { %s336_s8 = scalar_lea.vmem %s34_s22, 256  ;;  %p341_p4 = scmp.lt.s32.totalorder %s34_s22, %s34_s22 }
   0xd   :  { %p337_p3 = scmp.ne.s32.totalorder %s34_s22, %s336_s8  ;;  %p342_p5 = scmp.lt.s32.totalorder %s336_s8, %s336_s8 }
   0xf   :  { %p343_p6 = por %p342_p5, %p341_p4 }
  0x11   :  { %p344_p7 = pnand %p343_p6, %p337_p3 }
  0x13   :  { %347 = shalt.err (!%p344_p7)
}
  0x14   :  { %s492_s9 = smov 64   ;;  %s493_s10 = smov 4  }
  0x15   :  { %39 = dma.hbm_to_vmem [thread:$0]  %s649_s1, 256, %s34_s22, [#allocation7], %s492_s9, %s492_s9, %s493_s10  }
  0x16   :  { %s348_s15 = scalar_lea.hbm %s651_s3, 128 }
  0x17   :  { %p349_p8 = scmp.ne.s32.totalorder %s651_s3, %s348_s15  ;;  %p352_p9 = scmp.lt.u32.totalorder %s348_s15, %s651_s3 }
  0x19   :  { %p354_p10 = pnand %p352_p9, %p349_p8 }
  0x1b   :  { %357 = shalt.err (!%p354_p10)
}
  0x1c   :  { %s358_s20 = scalar_lea.vmem %s536_s24, 128  ;;  %p363_p12 = scmp.lt.s32.totalorder %s536_s24, %s536_s24 }
  0x1d   :  { %p359_p11 = scmp.ne.s32.totalorder %s536_s24, %s358_s20  ;;  %p364_p13 = scmp.lt.s32.totalorder %s358_s20, %s358_s20 }
  0x1f   :  { %p365_p0 = por %p364_p13, %p363_p12 }
  0x21   :  { %p366_p1 = pnand %p365_p0, %p359_p11 }
  0x23   :  { %369 = shalt.err (!%p366_p1)
}
  0x24   :  { %61 = dma.hbm_to_vmem [thread:$0]  %s651_s3, 128, %s536_s24, [#allocation10], %s492_s9, %s492_s9, %s493_s10  }
  0x25   :  { %s494_s22 = smov [#allocation3]   ;;  %s495_s25 = smov [#allocation8]  }
  0x26   :  { %s21_s23 = sshll.u32 %s494_s22, 4  ;;  %s46_s26 = sshll.u32 %s495_s25, 4  ;;  %s22_s23 = int_to_ptr.vmem [resolvable:$true] %s21_s23  ;;  %s47_s26 = int_to_ptr.vmem [resolvable:$true] %s46_s26 }
  0x27   :  { %s370_s29 = scalar_lea.hbm %s648_s0, 128 }
  0x28   :  { %p371_p2 = scmp.ne.s32.totalorder %s648_s0, %s370_s29  ;;  %p374_p3 = scmp.lt.u32.totalorder %s370_s29, %s648_s0 }
  0x2a   :  { %p376_p4 = pnand %p374_p3, %p371_p2 }
  0x2c   :  { %379 = shalt.err (!%p376_p4)
}
  0x2d   :  { %s380_s3 = scalar_lea.vmem %s22_s23, 128  ;;  %p385_p6 = scmp.lt.s32.totalorder %s22_s23, %s22_s23 }
  0x2e   :  { %p381_p5 = scmp.ne.s32.totalorder %s22_s23, %s380_s3  ;;  %p386_p7 = scmp.lt.s32.totalorder %s380_s3, %s380_s3 }
  0x30   :  { %p387_p8 = por %p386_p7, %p385_p6 }
  0x32   :  { %p388_p9 = pnand %p387_p8, %p381_p5 }
  0x34   :  { %391 = shalt.err (!%p388_p9)
}
  0x35   :  { %27 = dma.hbm_to_vmem [thread:$0]  %s648_s0, 128, %s22_s23, [#allocation4], %s492_s9, %s492_s9, %s493_s10  }
  0x36   :  { %s392_s15 = scalar_lea.hbm %s650_s2, 16 }
  0x37   :  { %p393_p10 = scmp.ne.s32.totalorder %s650_s2, %s392_s15  ;;  %p396_p11 = scmp.lt.u32.totalorder %s392_s15, %s650_s2 }
  0x39   :  { %p398_p12 = pnand %p396_p11, %p393_p10 }
  0x3b   :  { %401 = shalt.err (!%p398_p12)
}
  0x3c   :  { %s402_s20 = scalar_lea.vmem %s47_s26, 16  ;;  %s406_s1 = scalar_lea.vmem %s47_s26, 32 }
  0x3d   :  { %p403_p13 = scmp.ne.s32.totalorder %s47_s26, %s402_s20  ;;  %p407_p0 = scmp.lt.s32.totalorder %s47_s26, %s47_s26 }
  0x3e   :  { %p408_p1 = scmp.lt.s32.totalorder %s406_s1, %s402_s20 }
  0x40   :  { %p409_p2 = por %p408_p1, %p407_p0 }
  0x42   :  { %p410_p3 = pnand %p409_p2, %p403_p13 }
  0x44   :  { %413 = shalt.err (!%p410_p3)
}
  0x45   :  { %49 = dma.hbm_to_vmem [thread:$0]  %s650_s2, 16, %s47_s26, [#allocation7]  }
  0x46   :  { %s496_s22 = smov [#allocation11]   ;;  %s497_s25 = smov [#allocation12]  }
  0x47   :  { %s68_s23 = sshll.u32 %s496_s22, 4  ;;  %s78_s27 = sshll.u32 %s497_s25, 4  ;;  %s69_s23 = int_to_ptr.vmem [resolvable:$true] %s68_s23  ;;  %s79_s27 = int_to_ptr.vmem [resolvable:$true] %s78_s27 }
  0x48   :  { %s414_s30 = scalar_lea.hbm %s652_s4, 16 }
  0x49   :  { %p415_p4 = scmp.ne.s32.totalorder %s652_s4, %s414_s30  ;;  %p418_p5 = scmp.lt.u32.totalorder %s414_s30, %s652_s4 }
  0x4b   :  { %p420_p6 = pnand %p418_p5, %p415_p4 }
  0x4d   :  { %423 = shalt.err (!%p420_p6)
}
  0x4e   :  { %s424_s2 = scalar_lea.vmem %s69_s23, 16  ;;  %s428_s26 = scalar_lea.vmem %s69_s23, 32 }
  0x4f   :  { %p425_p7 = scmp.ne.s32.totalorder %s69_s23, %s424_s2  ;;  %p429_p8 = scmp.lt.s32.totalorder %s69_s23, %s69_s23 }
  0x50   :  { %p430_p9 = scmp.lt.s32.totalorder %s428_s26, %s424_s2 }
  0x52   :  { %p431_p10 = por %p430_p9, %p429_p8 }
  0x54   :  { %p432_p11 = pnand %p431_p10, %p425_p7 }
  0x56   :  { %435 = shalt.err (!%p432_p11)
}
  0x57   :  { %71 = dma.hbm_to_vmem [thread:$0]  %s652_s4, 16, %s69_s23, [#allocation10]  }
  0x58   :  { %s436_s15 = scalar_lea.hbm %s653_s5, 16 }
  0x59   :  { %p437_p12 = scmp.ne.s32.totalorder %s653_s5, %s436_s15  ;;  %p440_p13 = scmp.lt.u32.totalorder %s436_s15, %s653_s5 }
  0x5b   :  { %p442_p0 = pnand %p440_p13, %p437_p12 }
  0x5d   :  { %445 = shalt.err (!%p442_p0)
}
  0x5e   :  { %s446_s20 = scalar_lea.vmem %s79_s27, 16  ;;  %s450_s1 = scalar_lea.vmem %s79_s27, 32 }
  0x5f   :  { %p447_p1 = scmp.ne.s32.totalorder %s79_s27, %s446_s20  ;;  %p451_p2 = scmp.lt.s32.totalorder %s79_s27, %s79_s27 }
  0x60   :  { %p452_p3 = scmp.lt.s32.totalorder %s450_s1, %s446_s20 }
  0x62   :  { %p453_p4 = por %p452_p3, %p451_p2 }
  0x64   :  { %p454_p5 = pnand %p453_p4, %p447_p1 }
  0x66   :  { %457 = shalt.err (!%p454_p5)
}
  0x67   :  { %81 = dma.hbm_to_vmem [thread:$0]  %s653_s5, 16, %s79_s27, [#allocation13]  }
  0x68   :  { %480 = dma.done.wait [#allocation4], 128  }
  0x69   :  { %481 = vsyncadd [#allocation4], 4294967168 }
  0x6a   :  { %482 = dma.done.wait [#allocation7], 272  }
  0x6b   :  { %483 = vsyncadd [#allocation7], 4294967024 }
  0x6c   :  { %484 = dma.done.wait [#allocation10], 144  }
  0x6d   :  { %485 = vsyncadd [#allocation10], 4294967152 }
  0x6e   :  { %486 = dma.done.wait [#allocation13], 16  }
  0x6f   :  { %487 = vsyncadd [#allocation13], 4294967280  ;;  %vm105_vm0 = vcmask 261120   ;;  %v498_v0 = vmov 0.0   ;;  %vm499_vm1 = vmmov 0   ;;  %v319_v1 = vld [vmem:[#allocation6] sm:$0xff]  }
  0x70   :  { %106 = vst.msk [vmem:[#allocation2] sm:$0xff] %vm105_vm0, %v498_v0  ;;  %107 = vst.msk [vmem:[#allocation2 + $0x8] sm:$0xff] %vm105_vm0, %v498_v0  ;;  %300 = vmatprep.subr.bf16.mxu0 %v498_v0  ;;  %304 = vmatprep.mubr.msk.bf16.mxu0 %vm499_vm1, %v498_v0  ;;  %v320_v2 = vld [vmem:[#allocation6 + $0x8] sm:$0xff]   ;;  %v321_v3 = vld [vmem:[#allocation3] sm:$0xff]   ;;  %vm259_vm2 = vcmask 257024   ;;  %s500_s5 = smov [#allocation14]  }
  0x71   :  { %301 = vmatpush3.bf16.msra.mxu0 %v319_v1  ;;  %v294_v12 = vld [vmem:[#allocation9] sm:$0xff]   ;;  %v286_v13 = vld [vmem:[#allocation8] ss:$0 sm:$0xff]  ;;  %v287_v44 = vld [vmem:[#allocation11] ss:$0 sm:$0xff]  ;;  %s267_s21 = sshll.u32 %s500_s5, 4  ;;  %s268_s21 = int_to_ptr.vmem [resolvable:$true] %s267_s21 }
  0x72   :  { %302 = vmatprep.subr.bf16.mxu0 %v498_v0  ;;  %v295_v14 = vunpack.c.l.bf16 %v294_v12  ;;  %v296_v17 = vunpack.c.h.bf16 %v294_v12  ;;  %v288_v46 = vld [vmem:[#allocation12] ss:$0 sm:$0xff]  ;;  %s458_s22 = scalar_lea.vmem %s268_s21, 128  ;;  %p463_p7 = scmp.lt.s32.totalorder %s268_s21, %s268_s21 }
  0x73   :  { %p459_p6 = scmp.ne.s32.totalorder %s268_s21, %s458_s22  ;;  %p464_p8 = scmp.lt.s32.totalorder %s458_s22, %s458_s22 }
  0x75   :  { %303 = vmatpush3.bf16.msra.mxu0 %v320_v2  ;;  %p465_p9 = por %p464_p8, %p463_p7 }
  0x77   :  { %v108_v4 = vld [vmem:[#allocation2] sm:$0xff]  ;;  %v109_v6 = vld [vmem:[#allocation2 + $0x8] sm:$0xff]  ;;  %p466_p10 = pnand %p465_p9, %p459_p6 }
  0x78   :  { %305 = vmatmul.mubr.msk.bf16.vlgmr.msra.gmra.mrb[0].mxu0 %vm105_vm0, %v321_v3 }
 0x14b   :  { %v171_v5 = vpop.f32.mrb[0].mxu0 }
 0x14c   :  { %v178_v7 = vadd.f32 %v171_v5, %v108_v4  ;;  %v306_v8 = vpop.f32.mrb[1].mxu0 }
 0x14d   :  { %v174_v9 = vpop.f32.mrb[2].mxu0 }
 0x14e   :  { %180 = vst.msk [vmem:[#allocation2] sm:$0xff] %vm105_vm0, %v178_v7  ;;  %v179_v10 = vadd.f32 %v174_v9, %v109_v6  ;;  %v307_v11 = vpop.f32.mrb[3].mxu0 }
 0x150   :  { %181 = vst.msk [vmem:[#allocation2 + $0x8] sm:$0xff] %vm105_vm0, %v179_v10 }
 0x155   :  { %v185_v15 = vld [vmem:[#allocation2] sm:$0xff] }
 0x156   :  { %v194_v16 = vadd.f32 %v286_v13, %v185_v15 }
 0x157   :  { %v186_v18 = vld [vmem:[#allocation2 + $0x8] sm:$0xff] }
 0x158   :  { %v200_v19 = vadd.f32 %v295_v14, %v194_v16  ;;  %v195_v20 = vadd.f32 %v286_v13, %v186_v18 }
 0x15a   :  { %v202_v21 = vsel %vm105_vm0, %v200_v19, 0.0  ;;  %v211_v22 = vmul.f32 %v200_v19, %v200_v19  ;;  %v201_v23 = vadd.f32 %v296_v17, %v195_v20 }
 0x15b   :  { %203 = vadd.xlane.f32.xlu0 %v202_v21 }
 0x15c   :  { %v213_v24 = vsel %vm105_vm0, %v211_v22, 0.0  ;;  %v212_v25 = vmul.f32 %v201_v23, %v201_v23  ;;  %v205_v26 = vsel %vm105_vm0, %v201_v23, 0.0 }
 0x15d   :  { %214 = vadd.xlane.f32.xlu1 %v213_v24 }
 0x15e   :  { %v216_v27 = vsel %vm105_vm0, %v212_v25, 0.0 }
 0x15f   :  { %206 = vadd.xlane.f32.xlu0 %v205_v26 }
 0x161   :  { %217 = vadd.xlane.f32.xlu1 %v216_v27 }
 0x1e8   :  { %v204_v28 = vpop.xlane.xlu0 %203 }
 0x1e9   :  { %v209_v29 = vmul.f32 0.03125, %v204_v28 }
 0x1ea   :  { %v215_v30 = vpop.xlane.xlu1 %214 }
 0x1eb   :  { %v221_v31 = vmul.f32 %v209_v29, %v209_v29  ;;  %v219_v32 = vmul.f32 0.03125, %v215_v30  ;;  %v225_v42 = vsub.f32 %v200_v19, %v209_v29 }
 0x1ec   :  { %v207_v33 = vpop.xlane.xlu0 %206 }
 0x1ed   :  { %v223_v34 = vsub.f32 %v219_v32, %v221_v31  ;;  %v210_v35 = vmul.f32 0.03125, %v207_v33 }
 0x1ee   :  { %v218_v36 = vpop.xlane.xlu1 %217 }
 0x1ef   :  { %v227_v37 = vadd.f32 1e-05, %v223_v34  ;;  %v222_v38 = vmul.f32 %v210_v35, %v210_v35  ;;  %v220_v39 = vmul.f32 0.03125, %v218_v36  ;;  %v226_v47 = vsub.f32 %v201_v23, %v210_v35 }
 0x1f1   :  { %322 = vrsqrt.f32 %v227_v37  ;;  %v224_v40 = vsub.f32 %v220_v39, %v222_v38 }
 0x1f3   :  { %v228_v41 = vadd.f32 1e-05, %v224_v40 }
 0x1f5   :  { %324 = vrsqrt.f32 %v228_v41 }
 0x1fb   :  { %v323_v43 = vpop.eup %322 }
 0x1fc   :  { %v231_v45 = vmul.f32 %v323_v43, %v225_v42 }
 0x1fe   :  { %v240_v48 = vmul.f32 %v287_v44, %v231_v45 }
 0x1ff   :  { %v325_v49 = vpop.eup %324 }
 0x200   :  { %v232_v50 = vmul.f32 %v325_v49, %v226_v47  ;;  %v249_v51 = vadd.f32 %v288_v46, %v240_v48 }
 0x202   :  { %v241_v52 = vmul.f32 %v287_v44, %v232_v50  ;;  %v291_v53 = vpack.c.bf16 %v249_v51, %v249_v51 }
 0x204   :  { %v250_v54 = vadd.f32 %v288_v46, %v241_v52  ;;  %260 = vst.msk [vmem:[#allocation14] sm:$0xf] %vm259_vm2, %v291_v53 }
 0x206   :  { %v292_v55 = vpack.c.bf16 %v250_v54, %v250_v54 }
 0x208   :  { %261 = vst.msk [vmem:[#allocation14 + $0x4] sm:$0xf] %vm259_vm2, %v292_v55 }
 0x209   :  { %469 = shalt.err (!%p466_p10)
}
 0x20a   :  { %s470_s27 = scalar_lea.hbm %s654_s6, 128 }
 0x20b   :  { %p471_p11 = scmp.ne.s32.totalorder %s654_s6, %s470_s27  ;;  %p474_p12 = scmp.lt.u32.totalorder %s470_s27, %s654_s6 }
 0x20d   :  { %p476_p13 = pnand %p474_p12, %p471_p11 }
 0x20f   :  { %479 = shalt.err (!%p476_p13)
}
 0x210   :  { %273 = dma.vmem_to_hbm [thread:$0]  %s268_s21, 128, %s654_s6, [#allocation5], %s492_s9, %s492_s9, %s493_s10  }
 0x211   :  { %488 = dma.done.wait [#allocation5], 128  }
 0x212   :  { %489 = vsyncadd [#allocation5], 4294967168 }
 0x213   :  { %277 = vsyncpa [#allocation4], 1 }
 0x214   :  { %278 = vsyncpa [#allocation7], 1 }
 0x215   :  { %279 = vsyncpa [#allocation10], 1 }
 0x216   :  { %280 = vsyncpa [#allocation13], 1 }
 0x217   :  { %281 = vsyncpa [#allocation5], 1 }

// kernel: decoder_base_forward.21
= control target key start
LH: loop header
LB: loop body
LE: loop exit
PB: predicated region body
PF: predicated region fallthrough
CT: control target
= control target key end

     0   :  { %8 = vsyncpa [#allocation4], 0  ;;  %s433_s0 = inlined_call_operand.hbm [shape: bf16[24,32], index: 0, kind: input, shape index: {}]   ;;  %s434_s1 = inlined_call_operand.hbm [shape: bf16[32,64], index: 1, kind: input, shape index: {}]   ;;  %s435_s2 = inlined_call_operand.hbm [shape: f32[1,64], index: 2, kind: input, shape index: {}]   ;;  %s436_s3 = inlined_call_operand.hbm [shape: bf16[24,64], index: 3, kind: output, shape index: {}]  }
   0x1   :  { %9 = vsyncpa [#allocation7], 0 }
   0x2   :  { %10 = vsyncpa [#allocation5], 0  ;;  %s336_s12 = smov [#allocation6]   ;;  %s337_s14 = smov [#allocation3]  }
   0x3   :  { %s28_s13 = sshll.u32 %s336_s12, 4  ;;  %s16_s15 = sshll.u32 %s337_s14, 4  ;;  %s29_s13 = int_to_ptr.vmem [resolvable:$true] %s28_s13  ;;  %s363_s15 = int_to_ptr.vmem [resolvable:$true] %s16_s15 }
   0x4   :  { %s242_s18 = scalar_lea.hbm %s434_s1, 256 }
   0x5   :  { %p243_p0 = scmp.ne.s32.totalorder %s434_s1, %s242_s18  ;;  %p246_p1 = scmp.lt.u32.totalorder %s242_s18, %s434_s1 }
   0x7   :  { %p248_p2 = pnand %p246_p1, %p243_p0 }
   0x9   :  { %251 = shalt.err (!%p248_p2)
}
   0xa   :  { %s252_s23 = scalar_lea.vmem %s29_s13, 256  ;;  %p257_p4 = scmp.lt.s32.totalorder %s29_s13, %s29_s13 }
   0xb   :  { %p253_p3 = scmp.ne.s32.totalorder %s29_s13, %s252_s23  ;;  %p258_p5 = scmp.lt.s32.totalorder %s252_s23, %s252_s23 }
   0xd   :  { %p259_p6 = por %p258_p5, %p257_p4 }
   0xf   :  { %p260_p7 = pnand %p259_p6, %p253_p3 }
  0x11   :  { %263 = shalt.err (!%p260_p7)
}
  0x12   :  { %s338_s24 = smov 64   ;;  %s339_s25 = smov 4  }
  0x13   :  { %34 = dma.hbm_to_vmem [thread:$0]  %s434_s1, 256, %s29_s13, [#allocation7], %s338_s24, %s338_s24, %s339_s25  }
  0x14   :  { %s264_s30 = scalar_lea.hbm %s433_s0, 192 }
  0x15   :  { %p265_p8 = scmp.ne.s32.totalorder %s433_s0, %s264_s30  ;;  %p268_p9 = scmp.lt.u32.totalorder %s264_s30, %s433_s0 }
  0x17   :  { %p270_p10 = pnand %p268_p9, %p265_p8 }
  0x19   :  { %273 = shalt.err (!%p270_p10)
}
  0x1a   :  { %s274_s8 = scalar_lea.vmem %s363_s15, 192  ;;  %p279_p12 = scmp.lt.s32.totalorder %s363_s15, %s363_s15 }
  0x1b   :  { %p275_p11 = scmp.ne.s32.totalorder %s363_s15, %s274_s8  ;;  %p280_p13 = scmp.lt.s32.totalorder %s274_s8, %s274_s8 }
  0x1d   :  { %p281_p0 = por %p280_p13, %p279_p12 }
  0x1f   :  { %p282_p1 = pnand %p281_p0, %p275_p11 }
  0x21   :  { %285 = shalt.err (!%p282_p1)
}
  0x22   :  { %22 = dma.hbm_to_vmem [thread:$0]  %s433_s0, 192, %s363_s15, [#allocation4], %s338_s24, %s338_s24, %s339_s25  }
  0x23   :  { %s340_s10 = smov [#allocation8]   ;;  %s286_s14 = scalar_lea.hbm %s435_s2, 16 }
  0x24   :  { %s41_s11 = sshll.u32 %s340_s10, 4  ;;  %p287_p2 = scmp.ne.s32.totalorder %s435_s2, %s286_s14  ;;  %s42_s11 = int_to_ptr.vmem [resolvable:$true] %s41_s11 }
  0x25   :  { %p290_p3 = scmp.lt.u32.totalorder %s286_s14, %s435_s2 }
  0x27   :  { %p292_p4 = pnand %p290_p3, %p287_p2 }
  0x29   :  { %295 = shalt.err (!%p292_p4)
}
  0x2a   :  { %s296_s20 = scalar_lea.vmem %s42_s11, 16  ;;  %s300_s0 = scalar_lea.vmem %s42_s11, 32 }
  0x2b   :  { %p297_p5 = scmp.ne.s32.totalorder %s42_s11, %s296_s20  ;;  %p301_p6 = scmp.lt.s32.totalorder %s42_s11, %s42_s11 }
  0x2c   :  { %p302_p7 = scmp.lt.s32.totalorder %s300_s0, %s296_s20 }
  0x2e   :  { %p303_p8 = por %p302_p7, %p301_p6 }
  0x30   :  { %p304_p9 = pnand %p303_p8, %p297_p5 }
  0x32   :  { %307 = shalt.err (!%p304_p9)
}
  0x33   :  { %44 = dma.hbm_to_vmem [thread:$0]  %s435_s2, 16, %s42_s11, [#allocation7]  }
  0x34   :  { %330 = dma.done.wait [#allocation4], 192  }
  0x35   :  { %331 = vsyncadd [#allocation4], 4294967104 }
  0x36   :  { %332 = dma.done.wait [#allocation7], 272  }
  0x37   :  { %333 = vsyncadd [#allocation7], 4294967024  ;;  %vm59_vm0 = vcmask 523264   ;;  %v341_v0 = vmov 0.0   ;;  %v238_v1 = vld [vmem:[#allocation6] sm:$0xff]   ;;  %v239_v2 = vld [vmem:[#allocation6 + $0x8] sm:$0xff]  }
  0x38   :  { %62 = vst.msk [vmem:[#allocation2 + $0x10] sm:$0xff] %vm59_vm0, %v341_v0  ;;  %60 = vst.msk [vmem:[#allocation2] sm:$0xff] %vm59_vm0, %v341_v0  ;;  %vm93_vm1 = vcmask 261120   ;;  %223 = vmatprep.subr.bf16.mxu0 %v238_v1  ;;  %v240_v3 = vld [vmem:[#allocation3] sm:$0xff]   ;;  %v241_v4 = vld [vmem:[#allocation3 + $0x8] ss:$0 sps:$4 sm:$0xff]  }
  0x39   :  { %61 = vst.msk [vmem:[#allocation2 + $0x8] sm:$0xff] %vm59_vm0, %v341_v0  ;;  %224 = vmatpush3.bf16.msra.mxu0 %v238_v1  ;;  %227 = vmatprep.mubr.msk.bf16.mxu0 %vm93_vm1, %v240_v3  ;;  %v212_v15 = vld [vmem:[#allocation8] ss:$0 sm:$0xff]  ;;  %vm184_vm2 = vcmask 519168   ;;  %s342_s2 = smov [#allocation9]  }
  0x3a   :  { %225 = vmatprep.subr.bf16.mxu0 %v239_v2  ;;  %s193_s22 = sshll.u32 %s342_s2, 4  ;;  %s194_s22 = int_to_ptr.vmem [resolvable:$true] %s193_s22 }
  0x3b   :  { %s308_s23 = scalar_lea.vmem %s194_s22, 192  ;;  %p313_p11 = scmp.lt.s32.totalorder %s194_s22, %s194_s22 }
  0x3c   :  { %p309_p10 = scmp.ne.s32.totalorder %s194_s22, %s308_s23  ;;  %p314_p12 = scmp.lt.s32.totalorder %s308_s23, %s308_s23 }
  0x3d   :  { %226 = vmatpush3.bf16.msra.mxu0 %v239_v2 }
  0x3e   :  { %p315_p13 = por %p314_p12, %p313_p11 }
  0x3f   :  { %v65_v5 = vld [vmem:[#allocation2 + $0x10] sm:$0xff]  ;;  %v63_v6 = vld [vmem:[#allocation2] sm:$0xff] }
  0x40   :  { %228 = vmatmul.mubr.msk.bf16.vlgmr.msra.gmra.mrb[0].mxu0 %vm93_vm1, %v241_v4  ;;  %v64_v10 = vld [vmem:[#allocation2 + $0x8] sm:$0xff]  ;;  %p316_p0 = pnand %p315_p13, %p309_p10 }
 0x113   :  { %v229_v7 = vpop.f32.mrb[0].mxu0 }
 0x114   :  { %v150_v8 = vadd.f32 %v229_v7, %v65_v5  ;;  %v134_v9 = vpop.f32.mrb[1].mxu0 }
 0x115   :  { %v148_v11 = vadd.f32 %v134_v9, %v63_v6  ;;  %v230_v12 = vpop.f32.mrb[2].mxu0 }
 0x116   :  { %154 = vst.msk [vmem:[#allocation2 + $0x10] sm:$0xff] %vm59_vm0, %v150_v8  ;;  %v137_v13 = vpop.f32.mrb[3].mxu0 }
 0x117   :  { %152 = vst.msk [vmem:[#allocation2] sm:$0xff] %vm59_vm0, %v148_v11  ;;  %v149_v14 = vadd.f32 %v137_v13, %v64_v10 }
 0x119   :  { %153 = vst.msk [vmem:[#allocation2 + $0x8] sm:$0xff] %vm59_vm0, %v149_v14 }
 0x11d   :  { %v160_v16 = vld [vmem:[#allocation2 + $0x10] sm:$0xff] }
 0x11e   :  { %v158_v17 = vld [vmem:[#allocation2] sm:$0xff]  ;;  %v170_v18 = vadd.f32 %v212_v15, %v160_v16 }
 0x11f   :  { %v168_v19 = vadd.f32 %v212_v15, %v158_v17 }
 0x120   :  { %v159_v20 = vld [vmem:[#allocation2 + $0x8] sm:$0xff]  ;;  %v218_v21 = vpack.c.bf16 %v170_v18, %v170_v18 }
 0x121   :  { %v169_v22 = vadd.f32 %v212_v15, %v159_v20  ;;  %v216_v23 = vpack.c.bf16 %v168_v19, %v168_v19 }
 0x122   :  { %187 = vst.msk [vmem:[#allocation9 + $0x8] sm:$0xf] %vm184_vm2, %v218_v21 }
 0x123   :  { %v217_v24 = vpack.c.bf16 %v169_v22, %v169_v22  ;;  %185 = vst.msk [vmem:[#allocation9] sm:$0xf] %vm184_vm2, %v216_v23 }
 0x125   :  { %186 = vst.msk [vmem:[#allocation9 + $0x4] sm:$0xf] %vm184_vm2, %v217_v24 }
 0x126   :  { %319 = shalt.err (!%p316_p0)
}
 0x127   :  { %s320_s28 = scalar_lea.hbm %s436_s3, 192 }
 0x128   :  { %p321_p1 = scmp.ne.s32.totalorder %s436_s3, %s320_s28  ;;  %p324_p2 = scmp.lt.u32.totalorder %s320_s28, %s436_s3 }
 0x12a   :  { %p326_p3 = pnand %p324_p2, %p321_p1 }
 0x12c   :  { %329 = shalt.err (!%p326_p3)
}
 0x12d   :  { %199 = dma.vmem_to_hbm [thread:$0]  %s194_s22, 192, %s436_s3, [#allocation5], %s338_s24, %s338_s24, %s339_s25  }
 0x12e   :  { %334 = dma.done.wait [#allocation5], 192  }
 0x12f   :  { %335 = vsyncadd [#allocation5], 4294967104 }
 0x130   :  { %203 = vsyncpa [#allocation4], 1 }
 0x131   :  { %204 = vsyncpa [#allocation7], 1 }
 0x132   :  { %205 = vsyncpa [#allocation5], 1 }

// kernel: decoder_base_forward.22
= control target key start
LH: loop header
LB: loop body
LE: loop exit
PB: predicated region body
PF: predicated region fallthrough
CT: control target
= control target key end

     0   :  { %s1231_s0 = inlined_call_operand.hbm [shape: bf16[8,8,8], index: 0, kind: input, shape index: {}]   ;;  %s1232_s1 = inlined_call_operand.hbm [shape: bf16[8,12,8], index: 1, kind: input, shape index: {}]   ;;  %s1233_s2 = inlined_call_operand.hbm [shape: bf16[8,12,8], index: 2, kind: input, shape index: {}]   ;;  %s1234_s3 = inlined_call_operand.hbm [shape: bf16[8,8,8], index: 3, kind: output, shape index: {}]  }
   0x1   :  { %1242 = sst [smem:[#allocation18_spill]] %s1232_s1 }
   0x2   :  { %8 = vsyncpa [#allocation6], 0 }
   0x3   :  { %10 = vsyncpa [#allocation6 + $0x1], 0 }
   0x4   :  { %11 = vsyncpa [#allocation9], 0 }
   0x5   :  { %13 = vsyncpa [#allocation9 + $0x1], 0 }
   0x6   :  { %14 = vsyncpa [#allocation7], 0 }
   0x7   :  { %16 = vsyncpa [#allocation7 + $0x1], 0  ;;  %s953_s12 = smov 0   ;;  %s955_s13 = smov 0  }
   0x8   :  { %s957_s14 = smov 0   ;;  %s959_s15 = smov 0  }
   0x9   :  { %s961_s16 = smov 0   ;;  %s963_s17 = smov 0  }
   0xa LB: > { %1243 = sst [smem:[#allocation15_spill]] %s909_s14  ;;  %s984_s18 = sadd.s32 4294967295, %s921_s17   ;;  %s921_s17 = sphi %s963_s17, %s22_s17   ;;  %s917_s16 = sphi %s961_s16, %s1266_s16   ;;  %s913_s15 = sphi %s959_s15, %s1265_s15   ;;  %s909_s14 = sphi %s957_s14, %s1261_s14   ;;  %s905_s13 = sphi %s955_s13, %s1264_s13   ;;  %s901_s12 = sphi %s953_s12, %s1263_s12  }
   0xb   : > { %s615_s19 = sadd.s32 4294967294, %s921_s17   ;;  %s41_s20 = sadd.s32 1, %s917_s16 }
   0xc   : > { %s50_s21 = sadd.s32 1, %s909_s14  ;;  %p43_p0 = scmp.ge.s32.totalorder %s41_s20, 8 }
   0xd   : > { %p57_p1 = scmp.ne.s32.totalorder %s909_s14, %s905_s13  ;;  %p58_p2 = scmp.eq.s32.totalorder %s921_s17, 0 }
   0xe   : > { %p63_p3 = scmp.ne.s32.totalorder %s905_s13, %s901_s12  ;;  %s1268_s20 = smov (%p43_p0, %s41_s20), 0 }
   0xf   : > { %1244 = sst [smem:[#allocation16_spill]] %s1268_s20  ;;  %p996_p4 = por %p58_p2, %p57_p1 }
  0x10   : > { %p64_p5 = scmp.eq.s32.totalorder %s984_s18, 0  ;;  %s45_s23 = ssub.s32 %s917_s16, %s1268_s20 }
  0x11   : > { %p145_p6 = scmp.eq.s32.totalorder %s984_s18, 7  ;;  %p48_p7 = scmp.eq.s32.totalorder %s45_s23, 0 }
  0x12   : > { %p1004_p8 = por %p64_p5, %p63_p3  ;;  %p151_p10 = scmp.eq.s32.totalorder %s615_s19, 7 }
  0x13   : > { %p1008_p9 = por %p145_p6, %p57_p1  ;;  %p679_p12 = scmp.lt.s32.totalorder %s921_s17, 8 }
  0x14   : > { %s1246_s24 = scalar_select %p1004_p8, 1, 0 }
  0x15   : > { %s1247_s25 = scalar_select %p1008_p9, 1, 0 }
  0x16   : > { %s1013_s26 = scalar_select %p48_p7, %s909_s14, %s50_s21  }
  0x17   : > { %p1015_p11 = por %p151_p10, %p63_p3  ;;  %s1021_s28 = sand.u32 1, %s909_s14  }
  0x18   : > { %1248 = sst [smem:[#allocation17_spill]] %s1013_s26  ;;  %s190_s29 = sand.u32 1, %s921_s17  }
  0x19   : > { %s1249_s27 = scalar_select %p1015_p11, 1, 0 }
  0x1a   : > { %s620_s30 = sshll.u32 %s1021_s28, 3  ;;  %p1027_p13 = pnand %p679_p12, %p996_p4 }
  0x1b   : > { %s639_s5 = sshll.u32 %s917_s16, 7  ;;  %s1251_s1 = sld [smem:[#allocation18_spill]] }
  0x1c   : > { %s1250_s4 = scalar_select %p1027_p13, 1, 0 }
  0x1d   : > { %s194_s9 = scalar_lea.vmem [#allocation8], %s620_s30  ;;  %s1043_s11 = scalar_lea.sflag [#allocation9], %s190_s29 }
  0x1e   : > { %s203_s10 = sshll.u32 %s194_s9, 4  ;;  %p1049_p1 = pneg %p1027_p13  ;;  %s1041_s10 = int_to_ptr.vmem [resolvable:$true] %s203_s10 }
  0x21   : > { %s1037_s8 = scalar_lea.hbm %s1251_s1, %s639_s5  ;;  %s750_s6 = scalar_lea.hbm %s1251_s1, 1024 }
  0x22   : > { %s745_s19 = scalar_lea.hbm %s1037_s8, 128  ;;  %p751_p4 = scmp.lt.u32.totalorder %s1037_s8, %s1251_s1 }
  0x23   : > { %p746_p0 = scmp.ne.s32.totalorder %s1037_s8, %s745_s19  ;;  %p752_p5 = scmp.lt.u32.totalorder %s750_s6, %s745_s19 }
  0x24   : > { %p754_p7 = scmp.lt.u32.totalorder %s745_s19, %s1037_s8 }
  0x25   : > { %p748_p2 = pnand %p1049_p1, %p746_p0  ;;  %p753_p6 = por %p752_p5, %p751_p4 }
  0x27   : > { %p749_p3 = pneg %p748_p2  ;;  %p755_p10 = por %p754_p7, %p753_p6 }
  0x29   : > { %p756_p12 = pnand %p755_p10, %p749_p3 }
  0x2b   : > { %759 = shalt.err (!%p756_p12)
}
  0x2c   : > { %s760_s29 = scalar_lea.vmem %s1041_s10, 128  ;;  %s923_s22 = smov [#allocation8]  }
  0x2d   : > { %p761_p0 = scmp.ne.s32.totalorder %s1041_s10, %s760_s29  ;;  %s765_s23 = sshll.u32 %s923_s22, 4  ;;  %s766_s23 = int_to_ptr.vmem [resolvable:$false] %s765_s23 }
  0x2e   : > { %s767_s7 = scalar_lea.vmem %s766_s23, 256  ;;  %p768_p9 = scmp.lt.s32.totalorder %s1041_s10, %s766_s23 }
  0x2f   : > { %p763_p2 = pnand %p761_p0, %p1049_p1  ;;  %p769_p8 = scmp.lt.s32.totalorder %s767_s7, %s760_s29 }
  0x31   : > { %p764_p11 = pneg %p763_p2  ;;  %p770_p4 = por %p769_p8, %p768_p9 }
  0x33   : > { %p771_p5 = pnand %p770_p4, %p764_p11 }
  0x35   : > { %774 = shalt.err (!%p771_p5)
}
  0x36   : > { %s1239_s19 = smov 64   ;;  %s925_s6 = smov 4  }
  0x37   : > { %671 = dma.hbm_to_vmem [thread:$0]  (!%p1027_p13), %s1037_s8, 128, %s1041_s10, %s1043_s11, %s1239_s19, %s1239_s19, %s925_s6  }
  0x38   : > { %s1081_s22 = scalar_lea.hbm %s1233_s2, %s639_s5  ;;  %p626_p8 = scmp.ge.s32.totalorder %s921_s17, 1 }
  0x39   : > { %s217_s23 = scalar_lea.vmem [#allocation10], %s620_s30  ;;  %p234_p9 = scmp.lt.s32.totalorder %s921_s17, 9 }
  0x3a   : > { %s226_s7 = sshll.u32 %s217_s23, 4  ;;  %s618_s20 = sshll.u32 %s1021_s28, 2  ;;  %s1098_s7 = int_to_ptr.vmem [resolvable:$true] %s226_s7 }
  0x3b   : > { %p1087_p11 = pnand %p626_p8, %p234_p9  ;;  %s619_s26 = sshll.u32 %s917_s16, 6 }
  0x3c   : > { %s1096_s10 = scalar_lea.hbm %s1231_s0, %s619_s26  ;;  %s175_s30 = scalar_lea.vmem [#allocation5], %s618_s20 }
  0x3d   : > { %s1253_s1 = scalar_select %p1087_p11, 1, 0 }
  0x3e   : > { %s183_s5 = sshll.u32 %s175_s30, 4  ;;  %s172_s9 = scalar_lea.sflag [#allocation6], %s1021_s28  ;;  %s184_s5 = int_to_ptr.vmem [resolvable:$true] %s183_s5 }
  0x3f   : > { %s775_s29 = scalar_lea.hbm %s1096_s10, 64  ;;  %s780_s14 = scalar_lea.hbm %s1231_s0, 512 }
  0x40   : > { %p776_p3 = scmp.ne.s32.totalorder %s1096_s10, %s775_s29  ;;  %p781_p10 = scmp.lt.u32.totalorder %s1096_s10, %s1231_s0 }
  0x41   : > { %p782_p12 = scmp.lt.u32.totalorder %s780_s14, %s775_s29  ;;  %p784_p2 = scmp.lt.u32.totalorder %s775_s29, %s1096_s10 }
  0x42   : > { %p778_p6 = pnand %p776_p3, %p1049_p1 }
  0x43   : > { %p783_p0 = por %p782_p12, %p781_p10 }
  0x44   : > { %p779_p7 = pneg %p778_p6 }
  0x45   : > { %p785_p4 = por %p784_p2, %p783_p0 }
  0x47   : > { %p786_p5 = pnand %p785_p4, %p779_p7 }
  0x49   : > { %789 = shalt.err (!%p786_p5)
}
  0x4a   : > { %s790_s20 = scalar_lea.vmem %s184_s5, 64  ;;  %s926_s28 = smov [#allocation5]  }
  0x4b   : > { %p791_p8 = scmp.ne.s32.totalorder %s184_s5, %s790_s20  ;;  %s795_s30 = sshll.u32 %s926_s28, 4  ;;  %s796_s30 = int_to_ptr.vmem [resolvable:$false] %s795_s30 }
  0x4c   : > { %s797_s19 = scalar_lea.vmem %s796_s30, 128  ;;  %p798_p6 = scmp.lt.s32.totalorder %s184_s5, %s796_s30 }
  0x4d   : > { %p793_p9 = pnand %p791_p8, %p1049_p1  ;;  %p799_p11 = scmp.lt.s32.totalorder %s797_s19, %s790_s20 }
  0x4f   : > { %p794_p3 = pneg %p793_p9  ;;  %p800_p13 = por %p799_p11, %p798_p6 }
  0x51   : > { %p801_p10 = pnand %p800_p13, %p794_p3 }
  0x53   : > { %804 = shalt.err (!%p801_p10)
}
  0x54   : > { %p1254_p12 = scmp.ne.s32.totalorder %s1250_s4, 0  ;;  %s805_s29 = scalar_lea.hbm %s1081_s22, 128 }
  0x55   : > { %p806_p7 = scmp.ne.s32.totalorder %s1081_s22, %s805_s29  ;;  %s810_s26 = scalar_lea.hbm %s1233_s2, 1024 }
  0x56   : > { %668 = dma.hbm_to_vmem [thread:$0]  (!%p1254_p12), %s1096_s10, 64, %s184_s5, %s172_s9  }
  0x57   : > { %p808_p0 = pnand %p806_p7, %p1049_p1  ;;  %p811_p13 = scmp.lt.u32.totalorder %s1081_s22, %s1233_s2 }
  0x58   : > { %p812_p11 = scmp.lt.u32.totalorder %s810_s26, %s805_s29  ;;  %p814_p5 = scmp.lt.u32.totalorder %s805_s29, %s1081_s22 }
  0x59   : > { %p809_p2 = pneg %p808_p0 }
  0x5a   : > { %p813_p4 = por %p812_p11, %p811_p13 }
  0x5c   : > { %p815_p8 = por %p814_p5, %p813_p4 }
  0x5e   : > { %p816_p9 = pnand %p815_p8, %p809_p2 }
  0x60   : > { %819 = shalt.err (!%p816_p9)
}
  0x61   : > { %s820_s10 = scalar_lea.vmem %s1098_s7, 128  ;;  %s927_s5 = smov [#allocation10]  }
  0x62   : > { %p821_p3 = scmp.ne.s32.totalorder %s1098_s7, %s820_s10  ;;  %s825_s9 = sshll.u32 %s927_s5, 4  ;;  %s826_s9 = int_to_ptr.vmem [resolvable:$false] %s825_s9 }
  0x63   : > { %s827_s28 = scalar_lea.vmem %s826_s9, 256  ;;  %p828_p7 = scmp.lt.s32.totalorder %s1098_s7, %s826_s9 }
  0x64   : > { %p823_p6 = pnand %p821_p3, %p1049_p1  ;;  %p829_p0 = scmp.lt.s32.totalorder %s827_s28, %s820_s10 }
  0x66   : > { %p824_p10 = pneg %p823_p6  ;;  %p830_p13 = por %p829_p0, %p828_p7 }
  0x68   : > { %p831_p11 = pnand %p830_p13, %p824_p10 }
  0x6a   : > { %834 = shalt.err (!%p831_p11)
}
  0x6b   : > { %s1255_s30 = smov 64   ;;  %p1256_p1 = scmp.ne.s32.totalorder %s1253_s1, 0 }
  0x6c   : > { %674 = dma.hbm_to_vmem [thread:$0]  (!%p1254_p12), %s1081_s22, 128, %s1098_s7, %s1043_s11, %s1255_s30, %s1255_s30, %s925_s6  }
  0x6d   : > { %238 = sbr.rel (%p1256_p1) target bundleno = 940 (0x3ac), region = 32  ;;  %s1146_s21 = sand.u32 (!%p1256_p1), 1, %s905_s13  }
  0x6e   : > { %s627_s19 = sshll.u32 (!%p1256_p1), %s1146_s21, 2  ;;  %s241_s29 = scalar_lea.sflag (!%p1256_p1), [#allocation6], %s1146_s21 }
  0x6f   : > { %s244_s4 = scalar_lea.vmem (!%p1256_p1), [#allocation5], %s627_s19  ;;  %p1257_p2 = scmp.ne.s32.totalorder (!%p1256_p1), %s1246_s24, 0 }
  0x74   : > { %888 = dma.done.wait (%p1257_p2), %s241_s29, 64  }
  0x75   : > { %890 = vsyncadd (%p1257_p2), %s241_s29, 4294967232  ;;  %s249_s1 = sand.u32 1, %s984_s18   ;;  %s628_s11 = sshll.u32 %s1146_s21, 3 }
  0x76   : > { %s250_s6 = scalar_lea.sflag [#allocation9], %s249_s1  ;;  %s253_s22 = scalar_lea.vmem [#allocation8], %s628_s11 }
  0x77   : > { %892 = dma.done.wait (%p1257_p2), %s250_s6, 256  }
  0x78   : > { %894 = vsyncadd (%p1257_p2), %s250_s6, 4294967040  ;;  %vm305_vm0 = vcmask 64512   ;;  %v928_v0 = vmov 0.0   ;;  %vm929_vm1 = vmmov 0   ;;  %v737_v1 = vld [vmem:[%s253_s22] sm:$0x3f]  }
  0x79   : > { %645 = vmatprep.subr.bf16.mxu0 %v928_v0  ;;  %306 = vst.msk [vmem:[#allocation4] sm:$0xff] %vm305_vm0, %v928_v0  ;;  %647 = vmatprep.mubr.msk.bf16.mxu0 %vm929_vm1, %v928_v0  ;;  %v320_v2 = vsel %vm305_vm0, %v737_v1, 0  ;;  %v307_v3 = vld [vmem:[%s244_s4] sm:$0xf]  ;;  %vm302_vm2 = vcmask 7168   ;;  %v930_v4 = vmov -inf  }
  0x7a   : > { %651 = vmatprep.subr.bf16.mxu1 %v928_v0  ;;  %653 = vmatprep.mubr.msk.bf16.mxu1 %vm929_vm1, %v928_v0  ;;  %303 = vst.msk [vmem:[#allocation2] sm:$0xff] %vm302_vm2, %v930_v4  ;;  %304 = vst.msk [vmem:[#allocation3] sm:$0xff] %vm302_vm2, %v928_v0  ;;  %vm363_vm3 = vcmask 97280   ;;  %v931_v10 = vmov 0   ;;  %vm405_vm4 = vcmask 1045504   ;;  %s262_s18 = scalar_lea.vmem [#allocation10], %s628_s11 }
  0x7b   : > { %646 = vmatpush3.bf16.xpose.msra.mxu0 %v320_v2  ;;  %735 = vset.pattern.permute.xlu0 %v931_v10  ;;  %v738_v15 = vld [vmem:[%s262_s18] sm:$0x3f]   ;;  %s636_s24 = sshll.u32 %s913_s15, 6  ;;  %s294_s7 = scalar_lea.vmem [#allocation11], %s627_s19  ;;  %vm465_vm5 = vcmask 60416  }
  0x7c   : > { %736 = vset.pattern.permute.xlu1 %v931_v10  ;;  %v407_v16 = vsel %vm405_vm4, %v738_v15, 0  ;;  %s482_s23 = sshll.u32 %s294_s7, 4  ;;  %s1183_s8 = scalar_lea.hbm %s1234_s3, %s636_s24  ;;  %s1185_s23 = int_to_ptr.vmem [resolvable:$true] %s482_s23 }
  0x7d   : > { %652 = vmatpush3.bf16.msra.mxu1 %v407_v16  ;;  %s468_s20 = scalar_lea.sflag [#allocation7], %s1146_s21  ;;  %s835_s10 = scalar_lea.vmem %s1185_s23, 64 }
  0x7e   : > { %p836_p12 = scmp.ne.s32.totalorder %s1185_s23, %s835_s10  ;;  %p1258_p4 = scmp.ne.s32.totalorder %s1247_s25, 0 }
  0x7f   : > { %s932_s15 = smov [#allocation11]  }
  0x80   : > { %v387_v31 = vld [vmem:[#allocation4] sm:$0xff]  ;;  %p837_p5 = pnand %p836_p12, %p1258_p4  ;;  %s839_s5 = sshll.u32 %s932_s15, 4  ;;  %s840_s5 = int_to_ptr.vmem [resolvable:$false] %s839_s5 }
  0x81   : > { %v362_v11 = vld [vmem:[#allocation2] sm:$0xff]  ;;  %v379_v25 = vld [vmem:[#allocation3] sm:$0xff]  ;;  %s841_s9 = scalar_lea.vmem %s840_s5, 128  ;;  %p842_p9 = scmp.lt.s32.totalorder %s1185_s23, %s840_s5 }
  0x82   : > { %648 = vmatmul.mubr.msk.bf16.vlgmr.msra.gmra.mrb[0].mxu0 %vm305_vm0, %v307_v3  ;;  %p838_p8 = pneg %p837_p5  ;;  %p843_p3 = scmp.lt.s32.totalorder %s841_s9, %s835_s10 }
  0x84   : > { %p844_p6 = por %p843_p3, %p842_p9 }
  0x86   : > { %p845_p10 = pnand %p844_p6, %p838_p8 }
 0x155   : > { %v356_v5 = vpop.f32.mrb[0].mxu0 }
 0x156   : > { %v649_v6 = vpop.f32.mrb[1].mxu0  ;;  %v364_v7 = vsel %vm363_vm3, %v356_v5, -inf }
 0x157   : > { %365 = vmax.xlane.f32.xlu0 %v364_v7  ;;  %v359_v8 = vpop.f32.mrb[2].mxu0 }
 0x158   : > { %v650_v9 = vpop.f32.mrb[3].mxu0 }
 0x1e4   : > { %v366_v12 = vpop.xlane.xlu0 %365 }
 0x1e5   : > { %v367_v13 = vmax.f32 %v362_v11, %v366_v12 }
 0x1e7   : > { %v368_v14 = vsub.f32 %v362_v11, %v367_v13  ;;  %451 = vst.msk [vmem:[#allocation2] sm:$0xff] %vm302_vm2, %v367_v13  ;;  %373 = vperm.xlu0 %735, %v367_v13  }
 0x1e9   : > { %v369_v23 = vmul.f32 1.442695, %v368_v14 }
 0x266   : > { %v374_v17 = vpop.permute.xlu0 %373 }
 0x267   : > { %v376_v18 = vsub.f32 %v356_v5, %v374_v17 }
 0x269   : > { %v377_v19 = vmul.f32 1.442695, %v376_v18 }
 0x26b   : > { %739 = vpow2.f32 %v377_v19 }
 0x26c   : > { %741 = vpow2.f32 %v369_v23 }
 0x275   : > { %v740_v20 = vpop.eup %739 }
 0x276   : > { %v381_v21 = vsel %vm363_vm3, %v740_v20, 0.0  ;;  %v394_v22 = vpack.c.bf16 %v740_v20, %v740_v20  ;;  %v742_v24 = vpop.eup %741 }
 0x277   : > { %382 = vadd.xlane.f32.xlu1 %v381_v21  ;;  %v380_v26 = vmul.f32 %v742_v24, %v379_v25 }
 0x278   : > { %654 = vmatmul.mubr.msk.bf16.vlgmr.msra.gmra.mrb[0].mxu1 %vm363_vm3, %v394_v22 }
 0x288   : > { %390 = vperm.xlu1 %736, %v742_v24  }
 0x304   : > { %v383_v27 = vpop.xlane.xlu1 %382 }
 0x305   : > { %v384_v28 = vadd.f32 %v383_v27, %v380_v26 }
 0x307   : > { %386 = vst.msk [vmem:[#allocation3] sm:$0xff] %vm302_vm2, %v384_v28 }
 0x308   : > { %v391_v32 = vpop.permute.xlu1 %390 }
 0x309   : > { %v393_v33 = vmul.f32 %v391_v32, %v387_v31 }
 0x30e   : > { %v456_v29 = vld [vmem:[#allocation3] sm:$0xff] }
 0x30f   : > { %743 = vrcp.f32 %v456_v29 }
 0x319   : > { %v744_v30 = vpop.eup %743 }
 0x31a   : > { %460 = vperm.xlu1 %736, %v744_v30  }
 0x34b   : > { %v443_v34 = vpop.f32.mrb[0].mxu1 }
 0x34c   : > { %v449_v35 = vadd.f32 %v443_v34, %v393_v33  ;;  %v655_v36 = vpop.f32.mrb[1].mxu1 }
 0x34d   : > { %v446_v37 = vpop.f32.mrb[2].mxu1 }
 0x34e   : > { %450 = vst.msk [vmem:[#allocation4] sm:$0xff] %vm305_vm0, %v449_v35  ;;  %v656_v38 = vpop.f32.mrb[3].mxu1 }
 0x355   : > { %v455_v39 = vld [vmem:[#allocation4] sm:$0xff] }
 0x399   : > { %v461_v40 = vpop.permute.xlu1 %460 }
 0x39a   : > { %v463_v41 = vmul.f32 %v461_v40, %v455_v39 }
 0x39c   : > { %v464_v42 = vpack.c.bf16 %v463_v41, %v463_v41 }
 0x39e   : > { %466 = vst.msk [vmem:[%s294_s7] sm:$0xf] %vm465_vm5, %v464_v42 }
 0x39f   : > { %848 = shalt.err (!%p845_p10)
}
 0x3a0   : > { %s849_s28 = scalar_lea.hbm %s1183_s8, 64  ;;  %s853_s19 = scalar_lea.hbm %s1234_s3, 512 }
 0x3a1   : > { %p850_p7 = scmp.ne.s32.totalorder %s1183_s8, %s849_s28  ;;  %p854_p11 = scmp.lt.u32.totalorder %s1183_s8, %s1234_s3 }
 0x3a2   : > { %p855_p1 = scmp.lt.u32.totalorder %s853_s19, %s849_s28  ;;  %p857_p12 = scmp.lt.u32.totalorder %s849_s28, %s1183_s8 }
 0x3a3   : > { %p851_p0 = pnand %p850_p7, %p1258_p4 }
 0x3a4   : > { %p856_p2 = por %p855_p1, %p854_p11 }
 0x3a5   : > { %p852_p13 = pneg %p851_p0 }
 0x3a6   : > { %p858_p5 = por %p857_p12, %p856_p2 }
 0x3a8   : > { %p859_p8 = pnand %p858_p5, %p852_p13 }
 0x3aa   : > { %862 = shalt.err (!%p859_p8)
}
 0x3ab   : > { %663 = dma.vmem_to_hbm [thread:$0]  (%p1258_p4), %s1185_s23, 64, %s1183_s8, %s468_s20  }
 0x3ac PF: > { %p680_p9 = scmp.ge.s32.totalorder %s921_s17, 2  ;;  %s494_s1 = sand.u32 1, %s901_s12  }
 0x3ad   : > { %p1259_p3 = scmp.ne.s32.totalorder %s1249_s27, 0  ;;  %s495_s11 = scalar_lea.sflag [#allocation7], %s494_s1 }
 0x3af   : > { %p676_p6 = pnand %p680_p9, %p1259_p3 }
 0x3b1   : > { %896 = dma.done.wait (!%p676_p6), %s495_s11, 64  }
 0x3b2   : > { %898 = vsyncadd (!%p676_p6), %s495_s11, 4294967232  ;;  %s22_s17 = sadd.s32 1, %s921_s17   ;;  %s1260_s6 = sld [smem:[#allocation15_spill]] }
 0x3b3   : > { %p19_p10 = scmp.ge.s32.totalorder %s22_s17, 10   ;;  %s1261_s14 = sld [smem:[#allocation17_spill]] }
 0x3b4   : > { %s1262_s25 = sld [smem:[#allocation16_spill]]  ;;  %s1263_s12 = smov %s905_s13 }
 0x3b5   : > { %s1265_s15 = smov %s917_s16  ;;  %21 = sbr.rel (!%p19_p10) target bundleno = 10 (0xa), region = 109 }
 0x3b8   : > { %s1264_s13 = smov %s1260_s6 }
 0x3ba   : > { %s1266_s16 = smov %s1262_s25 }
 0x3bc   :  { %500 = vsyncpa [#allocation6], 1 }
 0x3bd   :  { %502 = vsyncpa [#allocation6 + $0x1], 1 }
 0x3be   :  { %503 = vsyncpa [#allocation9], 1 }
 0x3bf   :  { %505 = vsyncpa [#allocation9 + $0x1], 1 }
 0x3c0   :  { %506 = vsyncpa [#allocation7], 1 }
 0x3c1   :  { %508 = vsyncpa [#allocation7 + $0x1], 1 }

// kernel: decoder_base_forward.24
= control target key start
LH: loop header
LB: loop body
LE: loop exit
PB: predicated region body
PF: predicated region fallthrough
CT: control target
= control target key end

     0   :  { %12 = vsyncpa [#allocation3], 0  ;;  %s795_s0 = inlined_call_operand.hbm [shape: bf16[16,32], index: 0, kind: input, shape index: {}]   ;;  %s796_s1 = inlined_call_operand.hbm [shape: bf16[32,64], index: 1, kind: input, shape index: {}]   ;;  %s797_s2 = inlined_call_operand.hbm [shape: f32[1,64], index: 2, kind: input, shape index: {}]   ;;  %s798_s3 = inlined_call_operand.hbm [shape: bf16[64,32], index: 3, kind: input, shape index: {}]   ;;  %s799_s4 = inlined_call_operand.hbm [shape: f32[1,32], index: 4, kind: input, shape index: {}]   ;;  %s800_s5 = inlined_call_operand.hbm [shape: f32[1,32], index: 5, kind: input, shape index: {}]   ;;  %s801_s6 = inlined_call_operand.hbm [shape: f32[1,32], index: 6, kind: input, shape index: {}]   ;;  %s802_s7 = inlined_call_operand.hbm [shape: bf16[16,32], index: 7, kind: output, shape index: {}]  }
   0x1   :  { %13 = vsyncpa [#allocation6], 0 }
   0x2   :  { %14 = vsyncpa [#allocation9], 0 }
   0x3   :  { %15 = vsyncpa [#allocation12], 0 }
   0x4   :  { %16 = vsyncpa [#allocation4], 0  ;;  %s616_s24 = smov [#allocation5]   ;;  %s617_s26 = smov [#allocation8]  }
   0x5   :  { %s34_s25 = sshll.u32 %s616_s24, 4  ;;  %s56_s27 = sshll.u32 %s617_s26, 4  ;;  %s35_s25 = int_to_ptr.vmem [resolvable:$true] %s34_s25  ;;  %s668_s27 = int_to_ptr.vmem [resolvable:$true] %s56_s27 }
   0x6   :  { %s430_s30 = scalar_lea.hbm %s796_s1, 256 }
   0x7   :  { %p431_p0 = scmp.ne.s32.totalorder %s796_s1, %s430_s30  ;;  %p434_p1 = scmp.lt.u32.totalorder %s430_s30, %s796_s1 }
   0x9   :  { %p436_p2 = pnand %p434_p1, %p431_p0 }
   0xb   :  { %439 = shalt.err (!%p436_p2)
}
   0xc   :  { %s440_s12 = scalar_lea.vmem %s35_s25, 256  ;;  %p445_p4 = scmp.lt.s32.totalorder %s35_s25, %s35_s25 }
   0xd   :  { %p441_p3 = scmp.ne.s32.totalorder %s35_s25, %s440_s12  ;;  %p446_p5 = scmp.lt.s32.totalorder %s440_s12, %s440_s12 }
   0xf   :  { %p447_p6 = por %p446_p5, %p445_p4 }
  0x11   :  { %p448_p7 = pnand %p447_p6, %p441_p3 }
  0x13   :  { %451 = shalt.err (!%p448_p7)
}
  0x14   :  { %s618_s13 = smov 64   ;;  %s619_s14 = smov 4  }
  0x15   :  { %40 = dma.hbm_to_vmem [thread:$0]  %s796_s1, 256, %s35_s25, [#allocation6], %s618_s13, %s618_s13, %s619_s14  }
  0x16   :  { %s452_s19 = scalar_lea.hbm %s798_s3, 512 }
  0x17   :  { %p453_p8 = scmp.ne.s32.totalorder %s798_s3, %s452_s19  ;;  %p456_p9 = scmp.lt.u32.totalorder %s452_s19, %s798_s3 }
  0x19   :  { %p458_p10 = pnand %p456_p9, %p453_p8 }
  0x1b   :  { %461 = shalt.err (!%p458_p10)
}
  0x1c   :  { %s462_s24 = scalar_lea.vmem %s668_s27, 512  ;;  %p467_p12 = scmp.lt.s32.totalorder %s668_s27, %s668_s27 }
  0x1d   :  { %p463_p11 = scmp.ne.s32.totalorder %s668_s27, %s462_s24  ;;  %p468_p13 = scmp.lt.s32.totalorder %s462_s24, %s462_s24 }
  0x1f   :  { %p469_p0 = por %p468_p13, %p467_p12 }
  0x21   :  { %p470_p1 = pnand %p469_p0, %p463_p11 }
  0x23   :  { %473 = shalt.err (!%p470_p1)
}
  0x24   :  { %62 = dma.hbm_to_vmem [thread:$0]  %s798_s3, 512, %s668_s27, [#allocation9], %s618_s13, %s618_s13, %s619_s14  }
  0x25   :  { %s620_s26 = smov [#allocation11]   ;;  %s621_s29 = smov [#allocation2]  }
  0x26   :  { %s79_s28 = sshll.u32 %s620_s26, 4  ;;  %s22_s30 = sshll.u32 %s621_s29, 4  ;;  %s80_s28 = int_to_ptr.vmem [resolvable:$true] %s79_s28  ;;  %s705_s30 = int_to_ptr.vmem [resolvable:$true] %s22_s30 }
  0x27   :  { %s474_s10 = scalar_lea.hbm %s800_s5, 16 }
  0x28   :  { %p475_p2 = scmp.ne.s32.totalorder %s800_s5, %s474_s10  ;;  %p478_p3 = scmp.lt.u32.totalorder %s474_s10, %s800_s5 }
  0x2a   :  { %p480_p4 = pnand %p478_p3, %p475_p2 }
  0x2c   :  { %483 = shalt.err (!%p480_p4)
}
  0x2d   :  { %s484_s3 = scalar_lea.vmem %s80_s28, 16  ;;  %s488_s27 = scalar_lea.vmem %s80_s28, 32 }
  0x2e   :  { %p485_p5 = scmp.ne.s32.totalorder %s80_s28, %s484_s3  ;;  %p489_p6 = scmp.lt.s32.totalorder %s80_s28, %s80_s28 }
  0x2f   :  { %p490_p7 = scmp.lt.s32.totalorder %s488_s27, %s484_s3 }
  0x31   :  { %p491_p8 = por %p490_p7, %p489_p6 }
  0x33   :  { %p492_p9 = pnand %p491_p8, %p485_p5 }
  0x35   :  { %495 = shalt.err (!%p492_p9)
}
  0x36   :  { %82 = dma.hbm_to_vmem [thread:$0]  %s800_s5, 16, %s80_s28, [#allocation12]  }
  0x37   :  { %s496_s21 = scalar_lea.hbm %s795_s0, 128 }
  0x38   :  { %p497_p10 = scmp.ne.s32.totalorder %s795_s0, %s496_s21  ;;  %p500_p11 = scmp.lt.u32.totalorder %s496_s21, %s795_s0 }
  0x3a   :  { %p502_p12 = pnand %p500_p11, %p497_p10 }
  0x3c   :  { %505 = shalt.err (!%p502_p12)
}
  0x3d   :  { %s506_s25 = scalar_lea.vmem %s705_s30, 128  ;;  %p511_p0 = scmp.lt.s32.totalorder %s705_s30, %s705_s30 }
  0x3e   :  { %p507_p13 = scmp.ne.s32.totalorder %s705_s30, %s506_s25  ;;  %p512_p1 = scmp.lt.s32.totalorder %s506_s25, %s506_s25 }
  0x40   :  { %p513_p2 = por %p512_p1, %p511_p0 }
  0x42   :  { %p514_p3 = pnand %p513_p2, %p507_p13 }
  0x44   :  { %517 = shalt.err (!%p514_p3)
}
  0x45   :  { %28 = dma.hbm_to_vmem [thread:$0]  %s795_s0, 128, %s705_s30, [#allocation3], %s618_s13, %s618_s13, %s619_s14  }
  0x46   :  { %s622_s28 = smov [#allocation7]   ;;  %s623_s8 = smov [#allocation10]  }
  0x47   :  { %s47_s29 = sshll.u32 %s622_s28, 4  ;;  %s69_s9 = sshll.u32 %s623_s8, 4  ;;  %s48_s29 = int_to_ptr.vmem [resolvable:$true] %s47_s29  ;;  %s70_s9 = int_to_ptr.vmem [resolvable:$true] %s69_s9 }
  0x48   :  { %s518_s12 = scalar_lea.hbm %s797_s2, 16 }
  0x49   :  { %p519_p4 = scmp.ne.s32.totalorder %s797_s2, %s518_s12  ;;  %p522_p5 = scmp.lt.u32.totalorder %s518_s12, %s797_s2 }
  0x4b   :  { %p524_p6 = pnand %p522_p5, %p519_p4 }
  0x4d   :  { %527 = shalt.err (!%p524_p6)
}
  0x4e   :  { %s528_s0 = scalar_lea.vmem %s48_s29, 16  ;;  %s532_s30 = scalar_lea.vmem %s48_s29, 32 }
  0x4f   :  { %p529_p7 = scmp.ne.s32.totalorder %s48_s29, %s528_s0  ;;  %p533_p8 = scmp.lt.s32.totalorder %s48_s29, %s48_s29 }
  0x50   :  { %p534_p9 = scmp.lt.s32.totalorder %s532_s30, %s528_s0 }
  0x52   :  { %p535_p10 = por %p534_p9, %p533_p8 }
  0x54   :  { %p536_p11 = pnand %p535_p10, %p529_p7 }
  0x56   :  { %539 = shalt.err (!%p536_p11)
}
  0x57   :  { %50 = dma.hbm_to_vmem [thread:$0]  %s797_s2, 16, %s48_s29, [#allocation6]  }
  0x58   :  { %s540_s21 = scalar_lea.hbm %s799_s4, 16 }
  0x59   :  { %p541_p12 = scmp.ne.s32.totalorder %s799_s4, %s540_s21  ;;  %p544_p13 = scmp.lt.u32.totalorder %s540_s21, %s799_s4 }
  0x5b   :  { %p546_p0 = pnand %p544_p13, %p541_p12 }
  0x5d   :  { %549 = shalt.err (!%p546_p0)
}
  0x5e   :  { %s550_s25 = scalar_lea.vmem %s70_s9, 16  ;;  %s554_s5 = scalar_lea.vmem %s70_s9, 32 }
  0x5f   :  { %p551_p1 = scmp.ne.s32.totalorder %s70_s9, %s550_s25  ;;  %p555_p2 = scmp.lt.s32.totalorder %s70_s9, %s70_s9 }
  0x60   :  { %p556_p3 = scmp.lt.s32.totalorder %s554_s5, %s550_s25 }
  0x62   :  { %p557_p4 = por %p556_p3, %p555_p2 }
  0x64   :  { %p558_p5 = pnand %p557_p4, %p551_p1 }
  0x66   :  { %561 = shalt.err (!%p558_p5)
}
  0x67   :  { %72 = dma.hbm_to_vmem [thread:$0]  %s799_s4, 16, %s70_s9, [#allocation9]  }
  0x68   :  { %s624_s28 = smov [#allocation13]   ;;  %s562_s11 = scalar_lea.hbm %s801_s6, 16 }
  0x69   :  { %s89_s29 = sshll.u32 %s624_s28, 4  ;;  %p563_p6 = scmp.ne.s32.totalorder %s801_s6, %s562_s11  ;;  %s90_s29 = int_to_ptr.vmem [resolvable:$true] %s89_s29 }
  0x6a   :  { %p566_p7 = scmp.lt.u32.totalorder %s562_s11, %s801_s6 }
  0x6c   :  { %p568_p8 = pnand %p566_p7, %p563_p6 }
  0x6e   :  { %571 = shalt.err (!%p568_p8)
}
  0x6f   :  { %s572_s27 = scalar_lea.vmem %s90_s29, 16  ;;  %s576_s4 = scalar_lea.vmem %s90_s29, 32 }
  0x70   :  { %p573_p9 = scmp.ne.s32.totalorder %s90_s29, %s572_s27  ;;  %p577_p10 = scmp.lt.s32.totalorder %s90_s29, %s90_s29 }
  0x71   :  { %p578_p11 = scmp.lt.s32.totalorder %s576_s4, %s572_s27 }
  0x73   :  { %p579_p12 = por %p578_p11, %p577_p10 }
  0x75   :  { %p580_p13 = pnand %p579_p12, %p573_p9 }
  0x77   :  { %583 = shalt.err (!%p580_p13)
}
  0x78   :  { %92 = dma.hbm_to_vmem [thread:$0]  %s801_s6, 16, %s90_s29, [#allocation12]  }
  0x79   :  { %606 = dma.done.wait [#allocation3], 128  }
  0x7a   :  { %607 = vsyncadd [#allocation3], 4294967168 }
  0x7b   :  { %608 = dma.done.wait [#allocation6], 272  }
  0x7c   :  { %609 = vsyncadd [#allocation6], 4294967024 }
  0x7d   :  { %610 = dma.done.wait [#allocation9], 528  }
  0x7e   :  { %611 = vsyncadd [#allocation9], 4294966768 }
  0x7f   :  { %612 = dma.done.wait [#allocation12], 32  }
  0x80   :  { %613 = vsyncadd [#allocation12], 4294967264  ;;  %v625_v0 = vmov 0.0   ;;  %vm626_vm0 = vmmov 0   ;;  %v418_v1 = vld [vmem:[#allocation5] sm:$0xff]   ;;  %v419_v2 = vld [vmem:[#allocation5 + $0x8] sm:$0xff]  }
  0x81   :  { %386 = vmatprep.subr.bf16.mxu0 %v625_v0  ;;  %390 = vmatprep.mubr.msk.bf16.mxu0 %vm626_vm0, %v625_v0  ;;  %v115_v3 = vld [vmem:[#allocation2] sm:$0xff]   ;;  %vm145_vm1 = vcmask 261120   ;;  %v423_v6 = vld [vmem:[#allocation8 + $0x10] sm:$0xff]   ;;  %v424_v7 = vld [vmem:[#allocation8 + $0x18] sm:$0xff]   ;;  %vm232_vm2 = vcmask 523264   ;;  %vm338_vm3 = vcmask 257024  }
  0x82   :  { %394 = vmatprep.subr.bf16.mxu1 %v625_v0  ;;  %402 = vmatprep.mubr.msk.bf16.mxu1 %vm626_vm0, %v625_v0  ;;  %v421_v4 = vld [vmem:[#allocation8] sm:$0xff]   ;;  %v422_v5 = vld [vmem:[#allocation8 + $0x8] sm:$0xff]   ;;  %v361_v8 = vld [vmem:[#allocation7] ss:$0 sm:$0xff]  ;;  %v277_v19 = vunpack.c.l.bf16 %v115_v3  ;;  %v278_v23 = vunpack.c.h.bf16 %v115_v3  ;;  %s627_s6 = smov [#allocation14]  }
  0x83   :  { %387 = vmatpush3.bf16.msra.mxu0 %v418_v1  ;;  %395 = vmatpush3.bf16.msra.mxu1 %v421_v4  ;;  %v366_v18 = vld [vmem:[#allocation10] ss:$0 sm:$0xff]  ;;  %v372_v51 = vld [vmem:[#allocation11] ss:$0 sm:$0xff]  ;;  %v373_v53 = vld [vmem:[#allocation13] ss:$0 sm:$0xff] }
  0x84   :  { %388 = vmatprep.subr.bf16.mxu0 %v625_v0  ;;  %396 = vmatprep.subr.bf16.mxu1 %v625_v0  ;;  %s346_s30 = sshll.u32 %s627_s6, 4  ;;  %s347_s30 = int_to_ptr.vmem [resolvable:$true] %s346_s30 }
  0x85   :  { %s584_s17 = scalar_lea.vmem %s347_s30, 128  ;;  %p589_p1 = scmp.lt.s32.totalorder %s347_s30, %s347_s30 }
  0x86   :  { %p585_p0 = scmp.ne.s32.totalorder %s347_s30, %s584_s17  ;;  %p590_p2 = scmp.lt.s32.totalorder %s584_s17, %s584_s17 }
  0x87   :  { %389 = vmatpush3.bf16.msra.mxu0 %v419_v2  ;;  %397 = vmatpush3.bf16.msra.mxu1 %v422_v5 }
  0x88   :  { %398 = vmatprep.subr.bf16.mxu1 %v625_v0  ;;  %p591_p3 = por %p590_p2, %p589_p1 }
  0x8a   :  { %391 = vmatmul.mubr.msk.bf16.vlgmr.msra.gmra.mrb[0].mxu0 %vm145_vm1, %v115_v3  ;;  %p592_p4 = pnand %p591_p3, %p585_p0 }
  0x8b   :  { %399 = vmatpush3.bf16.msra.mxu1 %v423_v6 }
  0x8c   :  { %400 = vmatprep.subr.bf16.mxu1 %v625_v0 }
  0x8f   :  { %401 = vmatpush3.bf16.msra.mxu1 %v424_v7 }
 0x15d   :  { %v183_v9 = vpop.f32.mrb[0].mxu0 }
 0x15e   :  { %v184_v10 = vadd.f32 %v361_v8, %v183_v9  ;;  %v392_v11 = vpop.f32.mrb[1].mxu0 }
 0x15f   :  { %v186_v12 = vpop.f32.mrb[2].mxu0 }
 0x160   :  { %v187_v13 = vadd.f32 %v361_v8, %v186_v12  ;;  %v393_v14 = vpop.f32.mrb[3].mxu0  ;;  %v190_v15 = vmax.f32 %v184_v10, 0.0 }
 0x162   :  { %v191_v16 = vmax.f32 %v187_v13, 0.0 }
 0x164   :  { %v192_v17 = vpack.c.bf16 %v191_v16, %v190_v15 }
 0x166   :  { %403 = vmatmul.mubr.msk.bf16.vlgmr.msra.gmra.mrb[0].mxu1 %vm232_vm2, %v192_v17 }
 0x239   :  { %v270_v20 = vpop.f32.mrb[0].mxu1 }
 0x23a   :  { %v271_v21 = vadd.f32 %v366_v18, %v270_v20  ;;  %v404_v22 = vpop.f32.mrb[1].mxu1 }
 0x23b   :  { %v273_v24 = vpop.f32.mrb[2].mxu1 }
 0x23c   :  { %v279_v25 = vadd.f32 %v277_v19, %v271_v21  ;;  %v274_v26 = vadd.f32 %v366_v18, %v273_v24  ;;  %v405_v27 = vpop.f32.mrb[3].mxu1 }
 0x23e   :  { %v280_v28 = vadd.f32 %v278_v23, %v274_v26  ;;  %v281_v29 = vsel %vm145_vm1, %v279_v25, 0.0  ;;  %v290_v30 = vmul.f32 %v279_v25, %v279_v25 }
 0x23f   :  { %282 = vadd.xlane.f32.xlu0 %v281_v29 }
 0x240   :  { %v292_v31 = vsel %vm145_vm1, %v290_v30, 0.0  ;;  %v291_v32 = vmul.f32 %v280_v28, %v280_v28  ;;  %v284_v33 = vsel %vm145_vm1, %v280_v28, 0.0 }
 0x241   :  { %293 = vadd.xlane.f32.xlu1 %v292_v31 }
 0x242   :  { %v295_v34 = vsel %vm145_vm1, %v291_v32, 0.0 }
 0x243   :  { %285 = vadd.xlane.f32.xlu0 %v284_v33 }
 0x245   :  { %296 = vadd.xlane.f32.xlu1 %v295_v34 }
 0x2cc   :  { %v283_v35 = vpop.xlane.xlu0 %282 }
 0x2cd   :  { %v288_v36 = vmul.f32 0.03125, %v283_v35 }
 0x2ce   :  { %v294_v37 = vpop.xlane.xlu1 %293 }
 0x2cf   :  { %v300_v38 = vmul.f32 %v288_v36, %v288_v36  ;;  %v298_v39 = vmul.f32 0.03125, %v294_v37  ;;  %v304_v49 = vsub.f32 %v279_v25, %v288_v36 }
 0x2d0   :  { %v286_v40 = vpop.xlane.xlu0 %285 }
 0x2d1   :  { %v302_v41 = vsub.f32 %v298_v39, %v300_v38  ;;  %v289_v42 = vmul.f32 0.03125, %v286_v40 }
 0x2d2   :  { %v297_v43 = vpop.xlane.xlu1 %296 }
 0x2d3   :  { %v306_v44 = vadd.f32 1e-05, %v302_v41  ;;  %v301_v45 = vmul.f32 %v289_v42, %v289_v42  ;;  %v299_v46 = vmul.f32 0.03125, %v297_v43  ;;  %v305_v54 = vsub.f32 %v280_v28, %v289_v42 }
 0x2d5   :  { %426 = vrsqrt.f32 %v306_v44  ;;  %v303_v47 = vsub.f32 %v299_v46, %v301_v45 }
 0x2d7   :  { %v307_v48 = vadd.f32 1e-05, %v303_v47 }
 0x2d9   :  { %428 = vrsqrt.f32 %v307_v48 }
 0x2df   :  { %v427_v50 = vpop.eup %426 }
 0x2e0   :  { %v310_v52 = vmul.f32 %v427_v50, %v304_v49 }
 0x2e2   :  { %v319_v55 = vmul.f32 %v372_v51, %v310_v52 }
 0x2e3   :  { %v429_v56 = vpop.eup %428 }
 0x2e4   :  { %v311_v57 = vmul.f32 %v429_v56, %v305_v54  ;;  %v328_v58 = vadd.f32 %v373_v53, %v319_v55 }
 0x2e6   :  { %v320_v59 = vmul.f32 %v372_v51, %v311_v57  ;;  %v376_v60 = vpack.c.bf16 %v328_v58, %v328_v58 }
 0x2e8   :  { %v329_v61 = vadd.f32 %v373_v53, %v320_v59  ;;  %339 = vst.msk [vmem:[#allocation14] sm:$0xf] %vm338_vm3, %v376_v60 }
 0x2ea   :  { %v377_v62 = vpack.c.bf16 %v329_v61, %v329_v61 }
 0x2ec   :  { %340 = vst.msk [vmem:[#allocation14 + $0x4] sm:$0xf] %vm338_vm3, %v377_v62 }
 0x2ed   :  { %595 = shalt.err (!%p592_p4)
}
 0x2ee   :  { %s596_s20 = scalar_lea.hbm %s802_s7, 128 }
 0x2ef   :  { %p597_p5 = scmp.ne.s32.totalorder %s802_s7, %s596_s20  ;;  %p600_p6 = scmp.lt.u32.totalorder %s596_s20, %s802_s7 }
 0x2f1   :  { %p602_p7 = pnand %p600_p6, %p597_p5 }
 0x2f3   :  { %605 = shalt.err (!%p602_p7)
}
 0x2f4   :  { %352 = dma.vmem_to_hbm [thread:$0]  %s347_s30, 128, %s802_s7, [#allocation4], %s618_s13, %s618_s13, %s619_s14  }
 0x2f5   :  { %614 = dma.done.wait [#allocation4], 128  }
 0x2f6   :  { %615 = vsyncadd [#allocation4], 4294967168 }
 0x2f7   :  { %356 = vsyncpa [#allocation3], 1 }
 0x2f8   :  { %357 = vsyncpa [#allocation6], 1 }
 0x2f9   :  { %358 = vsyncpa [#allocation9], 1 }
 0x2fa   :  { %359 = vsyncpa [#allocation12], 1 }
 0x2fb   :  { %360 = vsyncpa [#allocation4], 1 }

// kernel: decoder_base_forward.33
= control target key start
LH: loop header
LB: loop body
LE: loop exit
PB: predicated region body
PF: predicated region fallthrough
CT: control target
= control target key end

     0   :  { %8 = vsyncpa [#allocation3], 0  ;;  %s327_s0 = inlined_call_operand.hbm [shape: bf16[16,32], index: 0, kind: input, shape index: {}]   ;;  %s328_s1 = inlined_call_operand.hbm [shape: f32[1,32], index: 1, kind: input, shape index: {}]   ;;  %s329_s2 = inlined_call_operand.hbm [shape: f32[1,32], index: 2, kind: input, shape index: {}]   ;;  %s330_s3 = inlined_call_operand.hbm [shape: f32[16,32], index: 3, kind: output, shape index: {}]  }
   0x1   :  { %9 = vsyncpa [#allocation6], 0 }
   0x2   :  { %10 = vsyncpa [#allocation4], 0  ;;  %s238_s12 = smov [#allocation5]   ;;  %s239_s14 = smov [#allocation2]  }
   0x3   :  { %s29_s13 = sshll.u32 %s238_s12, 4  ;;  %s16_s15 = sshll.u32 %s239_s14, 4  ;;  %s30_s13 = int_to_ptr.vmem [resolvable:$true] %s29_s13  ;;  %s266_s15 = int_to_ptr.vmem [resolvable:$true] %s16_s15 }
   0x4   :  { %s144_s18 = scalar_lea.hbm %s328_s1, 16 }
   0x5   :  { %p145_p0 = scmp.ne.s32.totalorder %s328_s1, %s144_s18  ;;  %p148_p1 = scmp.lt.u32.totalorder %s144_s18, %s328_s1 }
   0x7   :  { %p150_p2 = pnand %p148_p1, %p145_p0 }
   0x9   :  { %153 = shalt.err (!%p150_p2)
}
   0xa   :  { %s154_s23 = scalar_lea.vmem %s30_s13, 16  ;;  %s158_s24 = scalar_lea.vmem %s30_s13, 32 }
   0xb   :  { %p155_p3 = scmp.ne.s32.totalorder %s30_s13, %s154_s23  ;;  %p159_p4 = scmp.lt.s32.totalorder %s30_s13, %s30_s13 }
   0xc   :  { %p160_p5 = scmp.lt.s32.totalorder %s158_s24, %s154_s23 }
   0xe   :  { %p161_p6 = por %p160_p5, %p159_p4 }
  0x10   :  { %p162_p7 = pnand %p161_p6, %p155_p3 }
  0x12   :  { %165 = shalt.err (!%p162_p7)
}
  0x13   :  { %32 = dma.hbm_to_vmem [thread:$0]  %s328_s1, 16, %s30_s13, [#allocation6]  }
  0x14   :  { %s166_s29 = scalar_lea.hbm %s327_s0, 128 }
  0x15   :  { %p167_p8 = scmp.ne.s32.totalorder %s327_s0, %s166_s29  ;;  %p170_p9 = scmp.lt.u32.totalorder %s166_s29, %s327_s0 }
  0x17   :  { %p172_p10 = pnand %p170_p9, %p167_p8 }
  0x19   :  { %175 = shalt.err (!%p172_p10)
}
  0x1a   :  { %s176_s7 = scalar_lea.vmem %s266_s15, 128  ;;  %p181_p12 = scmp.lt.s32.totalorder %s266_s15, %s266_s15 }
  0x1b   :  { %p177_p11 = scmp.ne.s32.totalorder %s266_s15, %s176_s7  ;;  %p182_p13 = scmp.lt.s32.totalorder %s176_s7, %s176_s7 }
  0x1d   :  { %p183_p0 = por %p182_p13, %p181_p12 }
  0x1f   :  { %p184_p1 = pnand %p183_p0, %p177_p11 }
  0x21   :  { %187 = shalt.err (!%p184_p1)
}
  0x22   :  { %s240_s1 = smov 64   ;;  %s241_s8 = smov 4  }
  0x23   :  { %22 = dma.hbm_to_vmem [thread:$0]  %s327_s0, 128, %s266_s15, [#allocation3], %s240_s1, %s240_s1, %s241_s8  }
  0x24   :  { %s242_s11 = smov [#allocation7]   ;;  %s188_s16 = scalar_lea.hbm %s329_s2, 16 }
  0x25   :  { %s39_s12 = sshll.u32 %s242_s11, 4  ;;  %p189_p2 = scmp.ne.s32.totalorder %s329_s2, %s188_s16  ;;  %s40_s12 = int_to_ptr.vmem [resolvable:$true] %s39_s12 }
  0x26   :  { %p192_p3 = scmp.lt.u32.totalorder %s188_s16, %s329_s2 }
  0x28   :  { %p194_p4 = pnand %p192_p3, %p189_p2 }
  0x2a   :  { %197 = shalt.err (!%p194_p4)
}
  0x2b   :  { %s198_s21 = scalar_lea.vmem %s40_s12, 16  ;;  %s202_s0 = scalar_lea.vmem %s40_s12, 32 }
  0x2c   :  { %p199_p5 = scmp.ne.s32.totalorder %s40_s12, %s198_s21  ;;  %p203_p6 = scmp.lt.s32.totalorder %s40_s12, %s40_s12 }
  0x2d   :  { %p204_p7 = scmp.lt.s32.totalorder %s202_s0, %s198_s21 }
  0x2f   :  { %p205_p8 = por %p204_p7, %p203_p6 }
  0x31   :  { %p206_p9 = pnand %p205_p8, %p199_p5 }
  0x33   :  { %209 = shalt.err (!%p206_p9)
}
  0x34   :  { %42 = dma.hbm_to_vmem [thread:$0]  %s329_s2, 16, %s40_s12, [#allocation6]  }
  0x35   :  { %232 = dma.done.wait [#allocation3], 128  }
  0x36   :  { %233 = vsyncadd [#allocation3], 4294967168 }
  0x37   :  { %234 = dma.done.wait [#allocation6], 32  }
  0x38   :  { %235 = vsyncadd [#allocation6], 4294967264  ;;  %v129_v0 = vld [vmem:[#allocation2] sm:$0xff]   ;;  %vm56_vm0 = vcmask 261120   ;;  %v126_v25 = vld [vmem:[#allocation5] ss:$0 sm:$0xff] }
  0x39   :  { %v130_v1 = vunpack.c.l.bf16 %v129_v0  ;;  %v131_v2 = vunpack.c.h.bf16 %v129_v0  ;;  %v127_v27 = vld [vmem:[#allocation7] ss:$0 sm:$0xff]  ;;  %s243_s2 = smov [#allocation8]  }
  0x3a   :  { %s113_s23 = sshll.u32 %s243_s2, 4  ;;  %s114_s23 = int_to_ptr.vmem [resolvable:$true] %s113_s23 }
  0x3b   :  { %v57_v3 = vsel %vm56_vm0, %v130_v1, 0.0  ;;  %v66_v4 = vmul.f32 %v130_v1, %v130_v1  ;;  %v67_v5 = vmul.f32 %v131_v2, %v131_v2  ;;  %v60_v7 = vsel %vm56_vm0, %v131_v2, 0.0  ;;  %s210_s24 = scalar_lea.vmem %s114_s23, 256  ;;  %p215_p11 = scmp.lt.s32.totalorder %s114_s23, %s114_s23 }
  0x3c   :  { %58 = vadd.xlane.f32.xlu0 %v57_v3  ;;  %p211_p10 = scmp.ne.s32.totalorder %s114_s23, %s210_s24  ;;  %p216_p12 = scmp.lt.s32.totalorder %s210_s24, %s210_s24 }
  0x3d   :  { %v68_v6 = vsel %vm56_vm0, %v66_v4, 0.0  ;;  %v71_v8 = vsel %vm56_vm0, %v67_v5, 0.0 }
  0x3e   :  { %69 = vadd.xlane.f32.xlu1 %v68_v6  ;;  %p217_p13 = por %p216_p12, %p215_p11 }
  0x40   :  { %61 = vadd.xlane.f32.xlu0 %v60_v7  ;;  %p218_p0 = pnand %p217_p13, %p211_p10 }
  0x42   :  { %72 = vadd.xlane.f32.xlu1 %v71_v8 }
  0xc9   :  { %v59_v9 = vpop.xlane.xlu0 %58 }
  0xca   :  { %v64_v10 = vmul.f32 0.03125, %v59_v9 }
  0xcb   :  { %v70_v11 = vpop.xlane.xlu1 %69 }
  0xcc   :  { %v76_v12 = vmul.f32 %v64_v10, %v64_v10  ;;  %v74_v13 = vmul.f32 0.03125, %v70_v11  ;;  %v80_v23 = vsub.f32 %v130_v1, %v64_v10 }
  0xcd   :  { %v62_v14 = vpop.xlane.xlu0 %61 }
  0xce   :  { %v78_v15 = vsub.f32 %v74_v13, %v76_v12  ;;  %v65_v16 = vmul.f32 0.03125, %v62_v14 }
  0xcf   :  { %v73_v17 = vpop.xlane.xlu1 %72 }
  0xd0   :  { %v82_v18 = vadd.f32 1e-05, %v78_v15  ;;  %v77_v19 = vmul.f32 %v65_v16, %v65_v16  ;;  %v75_v20 = vmul.f32 0.03125, %v73_v17  ;;  %v81_v28 = vsub.f32 %v131_v2, %v65_v16 }
  0xd2   :  { %140 = vrsqrt.f32 %v82_v18  ;;  %v79_v21 = vsub.f32 %v75_v20, %v77_v19 }
  0xd4   :  { %v83_v22 = vadd.f32 1e-05, %v79_v21 }
  0xd6   :  { %142 = vrsqrt.f32 %v83_v22 }
  0xdc   :  { %v141_v24 = vpop.eup %140 }
  0xdd   :  { %v86_v26 = vmul.f32 %v141_v24, %v80_v23 }
  0xdf   :  { %v95_v29 = vmul.f32 %v126_v25, %v86_v26 }
  0xe0   :  { %v143_v30 = vpop.eup %142 }
  0xe1   :  { %v87_v31 = vmul.f32 %v143_v30, %v81_v28  ;;  %v104_v32 = vadd.f32 %v127_v27, %v95_v29 }
  0xe3   :  { %v96_v33 = vmul.f32 %v126_v25, %v87_v31  ;;  %106 = vst.msk [vmem:[#allocation8] sm:$0xff] %vm56_vm0, %v104_v32 }
  0xe5   :  { %v105_v34 = vadd.f32 %v127_v27, %v96_v33 }
  0xe7   :  { %107 = vst.msk [vmem:[#allocation8 + $0x8] sm:$0xff] %vm56_vm0, %v105_v34 }
  0xe8   :  { %221 = shalt.err (!%p218_p0)
}
  0xe9   :  { %s222_s27 = scalar_lea.hbm %s330_s3, 256 }
  0xea   :  { %p223_p1 = scmp.ne.s32.totalorder %s330_s3, %s222_s27  ;;  %p226_p2 = scmp.lt.u32.totalorder %s222_s27, %s330_s3 }
  0xec   :  { %p228_p3 = pnand %p226_p2, %p223_p1 }
  0xee   :  { %231 = shalt.err (!%p228_p3)
}
  0xef   :  { %s244_s5 = smov 128   ;;  %s245_s6 = smov 8  }
  0xf0   :  { %119 = dma.vmem_to_hbm [thread:$0]  %s114_s23, 256, %s330_s3, [#allocation4], %s244_s5, %s244_s5, %s245_s6  }
  0xf1   :  { %236 = dma.done.wait [#allocation4], 256  }
  0xf2   :  { %237 = vsyncadd [#allocation4], 4294967040 }
  0xf3   :  { %123 = vsyncpa [#allocation3], 1 }
  0xf4   :  { %124 = vsyncpa [#allocation6], 1 }
  0xf5   :  { %125 = vsyncpa [#allocation4], 1 }

</bundles_post_ra>
